<compile_context>
chip_gen: v7x
topology: tpu7x:2x2x1
jax: 0.10.0
libtpu: 0.0.40
codegen_flags: <defaults>
</compile_context>

<pallas_src>
import numpy as np
import jax
import jax.numpy as jnp
from jax import lax
from jax.experimental import pallas as pl
from jax.experimental.pallas import tpu as pltpu

# ---------------------------------------------------------------------------
# Shrunk but self-consistent configuration.
# Original module constants: n_events=16, resonance_size=32768, n_frames=128.
# Hard constraint kept: resonance_size // 256 == n_frames (512/256 windowing).
# ---------------------------------------------------------------------------
SAMPLERATE = 22050
BATCH = 2
N_EVENTS = 4
LATENT_DIM = 16
CHANNELS = 8
RESONANCE_SIZE = 4096
N_ATOMS = 16
N_PIECEWISE = 3
N_FRAMES = RESONANCE_SIZE // 256          # 16
COARSE_COEFFS = 257
WINDOW = 512
STEP = 256
BASE_RESONANCE = 0.02
RES_FACTOR = (1.0 - BASE_RESONANCE) * 0.99
IMPULSE_LEN = 512

# Mix kernel splits R in two so v7x's 2 TensorCores each get a parallel step.
# At this config every tile is well under the scoped-VMEM limit on all
# generations; if scaled back to resonance_size=32768, cap R tiles at <=16384
# and/or set pltpu.CompilerParams(vmem_limit_bytes=...) for v7x (64 MiB VMEM).
R_TILE_MIX = RESONANCE_SIZE // 2          # 2048

assert RESONANCE_SIZE % STEP == 0 and RESONANCE_SIZE // STEP == N_FRAMES
assert R_TILE_MIX % 128 == 0 and RESONANCE_SIZE % R_TILE_MIX == 0
assert (RESONANCE_SIZE + STEP) % 128 == 0
assert (BATCH * N_EVENTS) % 8 == 0        # sublane tile


# ---------------------------------------------------------------------------
# Pallas kernels
# ---------------------------------------------------------------------------
def _resonance_kernel(latent_ref, w_ref, b_ref, atoms_ref, d_ref, wi_ref, out_ref):
    # latent (N,L)  w (1,L,A)  b (1,1,A)  atoms (A,R)  d (N,F)  wi (F,R)  out (1,N,R)
    sel = jnp.dot(latent_ref[...], w_ref[0], preferred_element_type=jnp.float32)
    sel = jnp.maximum(sel + b_ref[0], 0.0)                               # relu(Linear)
    res = jnp.dot(sel, atoms_ref[...], preferred_element_type=jnp.float32)   # (N, R)
    # 256x linear upsample of the frame-rate decay, fused as a matmul against a
    # precomputed interpolation matrix (no (N,R) HBM read, no XLA gather).
    decay = jnp.dot(d_ref[...], wi_ref[...], preferred_element_type=jnp.float32)
    out_ref[0] = res * decay


def build_resonances(latent_flat, w_sel_t, b_sel, atoms, d_frames, interp_w):
    N, L = latent_flat.shape
    P, _, A = w_sel_t.shape
    R = atoms.shape[-1]
    F = d_frames.shape[-1]
    return pl.pallas_call(
        _resonance_kernel,
        out_shape=jax.ShapeDtypeStruct((P, N, R), jnp.float32),
        grid=(P,),
        in_specs=[
            pl.BlockSpec((N, L), lambda p: (0, 0)),
            pl.BlockSpec((1, L, A), lambda p: (p, 0, 0)),
            pl.BlockSpec((1, 1, A), lambda p: (p, 0, 0)),
            pl.BlockSpec((A, R), lambda p: (0, 0)),
            pl.BlockSpec((N, F), lambda p: (0, 0)),
            pl.BlockSpec((F, R), lambda p: (0, 0)),
        ],
        out_specs=pl.BlockSpec((1, N, R), lambda p: (p, 0, 0)),
        compiler_params=pltpu.CompilerParams(dimension_semantics=("parallel",)),
    )(latent_flat, w_sel_t, b_sel, atoms, d_frames, interp_w)


def _mix_kernel(mx_ref, wi_ref, conv_ref, out_ref):
    # mx (P,N,F)  wi (F,TR)  conv (P,N,TR)  out (N,TR)
    wi = wi_ref[...]
    # upsample the frame-rate mixture logits in-kernel (matmul vs interp matrix)
    logits = [jnp.dot(mx_ref[p], wi, preferred_element_type=jnp.float32)
              for p in range(N_PIECEWISE)]
    m = logits[0]
    for p in range(1, N_PIECEWISE):
        m = jnp.maximum(m, logits[p])
    exps = [jnp.exp(l - m) for l in logits]                # softmax over piecewise
    denom = exps[0]
    for p in range(1, N_PIECEWISE):
        denom = denom + exps[p]
    acc = exps[0] * conv_ref[0]
    for p in range(1, N_PIECEWISE):
        acc = acc + exps[p] * conv_ref[p]
    out_ref[...] = acc * pl.reciprocal(denom, approx=True)  # weighted sum


def mix_and_sum(mx_frames, interp_w, convs):
    P, N, F = mx_frames.shape
    R = convs.shape[-1]
    return pl.pallas_call(
        _mix_kernel,
        out_shape=jax.ShapeDtypeStruct((N, R), jnp.float32),
        grid=(R // R_TILE_MIX,),
        in_specs=[pl.BlockSpec((P, N, F), lambda r: (0, 0, 0)),
                  pl.BlockSpec((F, R_TILE_MIX), lambda r: (0, r)),
                  pl.BlockSpec((P, N, R_TILE_MIX), lambda r: (0, 0, r))],
        out_specs=pl.BlockSpec((N, R_TILE_MIX), lambda r: (0, r)),
        compiler_params=pltpu.CompilerParams(dimension_semantics=("parallel",)),
    )(mx_frames, interp_w, convs)


def _window_norm_kernel(x_ref, hann_ref, o_ref):
    # x (N, R+STEP)  hann (1, WINDOW)  o (N, n_win*WINDOW)
    # Fused: overlapping 512/256 frame extraction + Hann window + per-window
    # unit_norm.  Static unrolled loop; all slices are 256-aligned lane slices.
    hann = hann_ref[...]
    for f in range(N_FRAMES):
        frame = x_ref[:, pl.ds(f * STEP, WINDOW)] * hann              # (N, 512)
        n = jnp.sqrt(jnp.sum(frame * frame, axis=-1, keepdims=True))  # (N, 1)
        o_ref[:, pl.ds(f * WINDOW, WINDOW)] = (
            frame * pl.reciprocal(n + 1e-8, approx=True))


def window_norm(padded, hann):
    N, Rp = padded.shape
    cols = N_FRAMES * WINDOW
    return pl.pallas_call(
        _window_norm_kernel,
        out_shape=jax.ShapeDtypeStruct((N, cols), jnp.float32),
        grid=(1,),
        in_specs=[pl.BlockSpec((N, Rp), lambda i: (0, 0)),
                  pl.BlockSpec((1, WINDOW), lambda i: (0, 0))],
        out_specs=pl.BlockSpec((N, cols), lambda i: (0, 0)),
        compiler_params=pltpu.CompilerParams(dimension_semantics=("arbitrary",)),
    )(padded, hann)


def _final_blend_kernel(fc_ref, imp_ref, w0_ref, w1_ref, o_ref):
    # fc, imp (N, R)   w0, w1 (N, 128) lane-broadcast weights
    fc = fc_ref[...]
    n = jnp.sqrt(jnp.sum(fc * fc, axis=-1, keepdims=True))            # (N, 1)
    fcn = fc * pl.reciprocal(n + 1e-8, approx=True)                   # unit_norm
    w0 = w0_ref[...][:, 0:1]
    w1 = w1_ref[...][:, 0:1]
    o_ref[...] = fcn * w0 + imp_ref[...] * w1


def final_blend(fc, imp, w0b, w1b):
    N, R = fc.shape
    return pl.pallas_call(
        _final_blend_kernel,
        out_shape=jax.ShapeDtypeStruct((N, R), jnp.float32),
        grid=(1,),
        in_specs=[pl.BlockSpec((N, R), lambda i: (0, 0)),
                  pl.BlockSpec((N, R), lambda i: (0, 0)),
                  pl.BlockSpec((N, 128), lambda i: (0, 0)),
                  pl.BlockSpec((N, 128), lambda i: (0, 0))],
        out_specs=pl.BlockSpec((N, R), lambda i: (0, 0)),
        compiler_params=pltpu.CompilerParams(dimension_semantics=("arbitrary",)),
    )(fc, imp, w0b, w1b)


# ---------------------------------------------------------------------------
# Plain-JAX glue (parameter setup, tiny convs, FFTs)
# ---------------------------------------------------------------------------
def make_interp_matrix(in_size, out_size):
    """Dense M (in,out): x @ M == F.interpolate(x, out, mode='linear',
    align_corners=False) along the last axis."""
    j = np.arange(out_size, dtype=np.float64)
    scale = in_size / out_size
    src = np.clip((j + 0.5) * scale - 0.5, 0.0, in_size - 1)
    lo = np.floor(src).astype(np.int64)
    hi = np.minimum(lo + 1, in_size - 1)
    frac = src - lo
    m = np.zeros((in_size, out_size), dtype=np.float32)
    cols = np.arange(out_size)
    m[lo, cols] += (1.0 - frac)
    m[hi, cols] += frac
    return jnp.asarray(m, jnp.float32)


def fft_convolve(a, b):
    # TODO(synk): FFT has no Pallas TPU equivalent; kept as XLA rfft/irfft.
    n = a.shape[-1]
    pa = [(0, 0)] * (a.ndim - 1) + [(0, n)]
    pb = [(0, 0)] * (b.ndim - 1) + [(0, b.shape[-1])]
    spec = jnp.fft.rfft(jnp.pad(a, pa), axis=-1) * jnp.fft.rfft(jnp.pad(b, pb), axis=-1)
    return jnp.fft.irfft(spec, axis=-1)[..., :n]


def conv_upsample_apply(p, latent_flat):
    # ConvUpsample: Linear -> (N, C, 8) -> [nearest x2, Conv1d(k=3,pad=1),
    # LeakyReLU(0.2)]* -> Conv1d to out_channels.  weight_norm is a pure
    # reparameterisation -> identical forward.  Kept in plain JAX (tiny).
    w0, b0 = p["begin"]
    h = latent_flat @ w0.T + b0
    h = h.reshape(-1, CHANNELS, 8)
    for wc, bc in p["layers"]:
        h = jnp.repeat(h, 2, axis=-1)                                # nearest x2
        h = lax.conv_general_dilated(h, wc, (1,), ((1, 1),),
                                     dimension_numbers=("NCH", "OIH", "NCH"))
        h = h + bc[None, :, None]
        h = jnp.where(h > 0, h, 0.2 * h)                             # LeakyReLU
    wf, bf = p["final"]
    h = lax.conv_general_dilated(h, wf, (1,), ((1, 1),),
                                 dimension_numbers=("NCH", "OIH", "NCH"))
    return h + bf[None, :, None]                                     # (N, out, F)


def make_atoms(n_atoms, resonance_size):
    low_samples = SAMPLERATE // 40
    high_samples = SAMPLERATE // 4000
    spacings = np.linspace(low_samples, high_samples, n_atoms)
    oversample = 8
    atoms = np.zeros((n_atoms, resonance_size * oversample), dtype=np.float32)
    for i, spacing in enumerate(spacings):
        sp = int(spacing * oversample)
        atoms[i, ::sp + 1] = 1.0
    atoms = atoms.reshape(n_atoms, resonance_size, oversample).mean(axis=-1)
    return jnp.asarray(atoms, jnp.float32)


def init_params(key):
    def linear(k, out_f, in_f, scale=0.1):
        kw, kb = jax.random.split(k)
        return (jax.random.normal(kw, (out_f, in_f), jnp.float32) * scale,
                jax.random.normal(kb, (out_f,), jnp.float32) * scale)

    def conv1d(k, out_c, in_c, ks=3, scale=0.1):
        kw, kb = jax.random.split(k)
        return (jax.random.normal(kw, (out_c, in_c, ks), jnp.float32) * scale,
                jax.random.normal(kb, (out_c,), jnp.float32) * scale)

    def conv_upsample_params(k, out_channels):
        n_layers = int(np.log2(N_FRAMES) - np.log2(8))
        ks = jax.random.split(k, n_layers + 2)
        return dict(
            begin=linear(ks[0], CHANNELS * 8, LATENT_DIM),
            layers=[conv1d(ks[1 + i], CHANNELS, CHANNELS) for i in range(n_layers)],
            final=conv1d(ks[-1], out_channels, CHANNELS),
        )

    keys = jax.random.split(key, 6)
    sel = [linear(k, N_ATOMS, LATENT_DIM)
           for k in jax.random.split(keys[0], N_PIECEWISE)]
    w_sel = jnp.stack([w for w, _ in sel])                 # (P, A, L)
    b_sel = jnp.stack([b for _, b in sel])                 # (P, A)
    hann = (0.5 - 0.5 * np.cos(2.0 * np.pi * np.arange(WINDOW) / WINDOW))
    return dict(
        sel_w_t=jnp.transpose(w_sel, (0, 2, 1)),           # (P, L, A) pre-transposed
        sel_b=b_sel[:, None, :],                           # (P, 1, A)
        decay=linear(keys[1], N_FRAMES, LATENT_DIM),
        final_mix=linear(keys[2], 2, LATENT_DIM),
        to_filter=conv_upsample_params(keys[3], COARSE_COEFFS),
        to_mixture=conv_upsample_params(keys[4], N_PIECEWISE),
        atoms=make_atoms(N_ATOMS, RESONANCE_SIZE),
        interp_w=make_interp_matrix(N_FRAMES, RESONANCE_SIZE),   # (F, R)
        hann=jnp.asarray(hann, jnp.float32).reshape(1, WINDOW),
    )


# ---------------------------------------------------------------------------
# Forward pass
# ---------------------------------------------------------------------------
def resonance_forward(params, latent, impulse):
    B, E, L = latent.shape
    N = B * E
    R = RESONANCE_SIZE
    latent_flat = latent.reshape(N, L)

    # imp = F.pad(impulse, (0, R - impulse_len))
    imp = jnp.pad(impulse, ((0, 0), (0, 0), (0, R - impulse.shape[-1])))
    imp = imp.reshape(N, R)

    # decay envelope at frame rate; 256x upsample happens inside the kernel
    wd, bd = params["decay"]
    d = jax.nn.sigmoid(latent_flat @ wd.T + bd)                     # (N, F)
    d = BASE_RESONANCE + d * RES_FACTOR
    d = jnp.exp(jnp.cumsum(jnp.log(1e-12 + d), axis=-1))            # (N, F)

    # per-frame spectral filter (F.interpolate 257->257 is the identity)
    filt = conv_upsample_apply(params["to_filter"], latent_flat)    # (N, 257, F)
    filt = jax.nn.sigmoid(jnp.transpose(filt, (0, 2, 1)))           # (N, F, 257)

    # --- Pallas kernel 1: relu(linear) @ atoms * upsampled-decay, per piecewise
    res_all = build_resonances(latent_flat, params["sel_w_t"], params["sel_b"],
                               params["atoms"], d, params["interp_w"])  # (P, N, R)

    # convolve each resonance with the impulse (XLA FFT)
    conv_all = fft_convolve(res_all, imp[None, :, :])               # (P, N, R)

    # time-varying mixture over piecewise components, logits at frame rate
    mx = conv_upsample_apply(params["to_mixture"], latent_flat)     # (N, P, F)
    mx = jnp.transpose(mx, (1, 0, 2))                               # (P, N, F)
    # --- Pallas kernel 2: in-kernel 256x upsample + softmax over P + weighted sum
    final_convs = mix_and_sum(mx, params["interp_w"], conv_all)     # (N, R)

    # --- Pallas kernel 3: fused framing (512/256) + Hann window + unit_norm
    padded = jnp.pad(final_convs, ((0, 0), (0, STEP)))              # (N, R+STEP)
    framed = window_norm(padded, params["hann"])                    # (N, F*512)
    framed = framed.reshape(N, N_FRAMES, WINDOW)

    # spectral filtering: rfft * filt, irfft
    # TODO(synk): rfft/irfft kept in plain JAX (XLA FFT); no Pallas equivalent.
    spec = jnp.fft.rfft(framed, axis=-1) * filt                     # (N, F, 257)
    filtered = jnp.fft.irfft(spec, axis=-1)                         # (N, F, 512)

    # overlap_add(apply_window=False) with hop 256, trimmed to R
    first = jnp.pad(filtered[..., :STEP].reshape(N, N_FRAMES * STEP),
                    ((0, 0), (0, STEP)))
    second = jnp.pad(filtered[..., STEP:].reshape(N, N_FRAMES * STEP),
                     ((0, 0), (STEP, 0)))
    fc = (first + second)[..., :R]                                  # (N, R)

    # final 2-way mix between resonance and raw impulse
    wfm, bfm = params["final_mix"]
    final_mx = jax.nn.softmax(latent_flat @ wfm.T + bfm, axis=-1)   # (N, 2)
    w0b = jnp.broadcast_to(final_mx[:, 0:1], (N, 128))              # lane-dense
    w1b = jnp.broadcast_to(final_mx[:, 1:2], (N, 128))
    # --- Pallas kernel 4: unit_norm(fc) * w0 + imp * w1 ---
    final = final_blend(fc, imp, w0b, w1b)                          # (N, R)
    return final.reshape(B, E, R)


# ---------------------------------------------------------------------------
if __name__ == "__main__":
    key = jax.random.PRNGKey(0)
    pkey, lkey, ikey = jax.random.split(key, 3)
    params = init_params(pkey)

    latent = jax.random.normal(lkey, (BATCH, N_EVENTS, LATENT_DIM), jnp.float32)
    impulse = jax.random.normal(ikey, (BATCH, N_EVENTS, IMPULSE_LEN), jnp.float32)

    fwd = jax.jit(lambda l, i: resonance_forward(params, l, i))
    out = fwd(latent, impulse)
    out = jax.block_until_ready(out)

    assert out.shape == (BATCH, N_EVENTS, RESONANCE_SIZE), out.shape
    assert bool(jnp.all(jnp.isfinite(out)))
    print("KERNEL_OK")
</pallas_src>

<mosaic_0001>
module attributes {stable_mosaic.version = 11 : i64} {
  func.func @_resonance_kernel(%arg0: i32, %arg1: memref<8x16xf32, #tpu.memory_space<vmem>>, %arg2: memref<1x16x16xf32, #tpu.memory_space<vmem>>, %arg3: memref<1x1x16xf32, #tpu.memory_space<vmem>>, %arg4: memref<16x4096xf32, #tpu.memory_space<vmem>>, %arg5: memref<8x16xf32, #tpu.memory_space<vmem>>, %arg6: memref<16x4096xf32, #tpu.memory_space<vmem>>, %arg7: memref<1x8x4096xf32, #tpu.memory_space<vmem>>) attributes {dimension_semantics = [#tpu.dimension_semantics<parallel>], iteration_bounds = array<i64: 3>, scalar_prefetch = 0 : i64, scratch_operands = 0 : i64, tpu.core_type = #tpu.core_type<tc>, window_params = [{pipeline_mode = #tpu.pipeline_mode<synchronous>, transform_indices = @transform_0, window_bounds = array<i64: 8, 16>}, {transform_indices = @transform_1, window_bounds = array<i64: 1, 16, 16>}, {transform_indices = @transform_2, window_bounds = array<i64: 1, 1, 16>}, {pipeline_mode = #tpu.pipeline_mode<synchronous>, transform_indices = @transform_3, window_bounds = array<i64: 16, 4096>}, {pipeline_mode = #tpu.pipeline_mode<synchronous>, transform_indices = @transform_4, window_bounds = array<i64: 8, 16>}, {pipeline_mode = #tpu.pipeline_mode<synchronous>, transform_indices = @transform_5, window_bounds = array<i64: 16, 4096>}, {transform_indices = @transform_6, window_bounds = array<i64: 1, 8, 4096>}]} {
    %c0 = arith.constant 0 : index
    %c0_0 = arith.constant 0 : index
    %0 = vector.load %arg1[%c0, %c0_0] : memref<8x16xf32, #tpu.memory_space<vmem>>, vector<8x16xf32>
    %c0_1 = arith.constant 0 : index
    %c0_2 = arith.constant 0 : index
    %c0_3 = arith.constant 0 : index
    %1 = vector.load %arg2[%c0_1, %c0_2, %c0_3] : memref<1x16x16xf32, #tpu.memory_space<vmem>>, vector<1x16x16xf32>
    %2 = vector.shape_cast %1 : vector<1x16x16xf32> to vector<16x16xf32>
    %cst = arith.constant dense<0.000000e+00> : vector<8x16xf32>
    %3 = tpu.matmul %0, %2, %cst {dimension_numbers = #tpu.dot_dimension_numbers<[1], [0], [0], [1], [0, 0, 1, 1], [], []>} : vector<8x16xf32>, vector<16x16xf32>, vector<8x16xf32> -> vector<8x16xf32>
    %c0_4 = arith.constant 0 : index
    %c0_5 = arith.constant 0 : index
    %c0_6 = arith.constant 0 : index
    %4 = vector.load %arg3[%c0_4, %c0_5, %c0_6] : memref<1x1x16xf32, #tpu.memory_space<vmem>>, vector<1x1x16xf32>
    %5 = vector.shape_cast %4 : vector<1x1x16xf32> to vector<1x16xf32>
    %6 = vector.broadcast %5 : vector<1x16xf32> to vector<8x16xf32>
    %7 = arith.addf %3, %6 : vector<8x16xf32>
    %cst_7 = arith.constant 0.000000e+00 : f32
    %8 = vector.broadcast %cst_7 : f32 to vector<8x16xf32>
    %9 = arith.maximumf %7, %8 : vector<8x16xf32>
    %c0_8 = arith.constant 0 : index
    %c0_9 = arith.constant 0 : index
    %10 = vector.load %arg4[%c0_8, %c0_9] : memref<16x4096xf32, #tpu.memory_space<vmem>>, vector<16x4096xf32>
    %cst_10 = arith.constant dense<0.000000e+00> : vector<8x4096xf32>
    %11 = tpu.matmul %9, %10, %cst_10 {dimension_numbers = #tpu.dot_dimension_numbers<[1], [0], [0], [1], [0, 0, 1, 1], [], []>} : vector<8x16xf32>, vector<16x4096xf32>, vector<8x4096xf32> -> vector<8x4096xf32>
    %c0_11 = arith.constant 0 : index
    %c0_12 = arith.constant 0 : index
    %12 = vector.load %arg5[%c0_11, %c0_12] : memref<8x16xf32, #tpu.memory_space<vmem>>, vector<8x16xf32>
    %c0_13 = arith.constant 0 : index
    %c0_14 = arith.constant 0 : index
    %13 = vector.load %arg6[%c0_13, %c0_14] : memref<16x4096xf32, #tpu.memory_space<vmem>>, vector<16x4096xf32>
    %cst_15 = arith.constant dense<0.000000e+00> : vector<8x4096xf32>
    %14 = tpu.matmul %12, %13, %cst_15 {dimension_numbers = #tpu.dot_dimension_numbers<[1], [0], [0], [1], [0, 0, 1, 1], [], []>} : vector<8x16xf32>, vector<16x4096xf32>, vector<8x4096xf32> -> vector<8x4096xf32>
    %15 = arith.mulf %11, %14 : vector<8x4096xf32>
    %c0_16 = arith.constant 0 : index
    %c0_17 = arith.constant 0 : index
    %c0_18 = arith.constant 0 : index
    %16 = vector.load %arg7[%c0_16, %c0_17, %c0_18] : memref<1x8x4096xf32, #tpu.memory_space<vmem>>, vector<1x8x4096xf32>
    %17 = vector.shape_cast %16 : vector<1x8x4096xf32> to vector<8x4096xf32>
    %18 = vector.shape_cast %15 : vector<8x4096xf32> to vector<1x8x4096xf32>
    tpu.vector_store %arg7[%c0_16, %c0_17, %c0_18], %18 {strides = array<i32>} : memref<1x8x4096xf32, #tpu.memory_space<vmem>>, vector<1x8x4096xf32>,
    return
  }
  func.func @transform_0(%arg0: i32) -> (i32, i32) {
    %c0_i32 = arith.constant 0 : i32
    %c0_i32_0 = arith.constant 0 : i32
    %c0_i32_1 = arith.constant 0 : i32
    return %c0_i32, %c0_i32_0 : i32, i32
  }
  func.func @transform_1(%arg0: i32) -> (i32, i32, i32) {
    %c0_i32 = arith.constant 0 : i32
    %c0_i32_0 = arith.constant 0 : i32
    %c0_i32_1 = arith.constant 0 : i32
    return %arg0, %c0_i32, %c0_i32_0 : i32, i32, i32
  }
  func.func @transform_2(%arg0: i32) -> (i32, i32, i32) {
    %c0_i32 = arith.constant 0 : i32
    %c0_i32_0 = arith.constant 0 : i32
    %c0_i32_1 = arith.constant 0 : i32
    return %arg0, %c0_i32, %c0_i32_0 : i32, i32, i32
  }
  func.func @transform_3(%arg0: i32) -> (i32, i32) {
    %c0_i32 = arith.constant 0 : i32
    %c0_i32_0 = arith.constant 0 : i32
    %c0_i32_1 = arith.constant 0 : i32
    return %c0_i32, %c0_i32_0 : i32, i32
  }
  func.func @transform_4(%arg0: i32) -> (i32, i32) {
    %c0_i32 = arith.constant 0 : i32
    %c0_i32_0 = arith.constant 0 : i32
    %c0_i32_1 = arith.constant 0 : i32
    return %c0_i32, %c0_i32_0 : i32, i32
  }
  func.func @transform_5(%arg0: i32) -> (i32, i32) {
    %c0_i32 = arith.constant 0 : i32
    %c0_i32_0 = arith.constant 0 : i32
    %c0_i32_1 = arith.constant 0 : i32
    return %c0_i32, %c0_i32_0 : i32, i32
  }
  func.func @transform_6(%arg0: i32) -> (i32, i32, i32) {
    %c0_i32 = arith.constant 0 : i32
    %c0_i32_0 = arith.constant 0 : i32
    %c0_i32_1 = arith.constant 0 : i32
    return %arg0, %c0_i32, %c0_i32_0 : i32, i32, i32
  }
}

module attributes {stable_mosaic.version = 11 : i64} {
  func.func @_mix_kernel(%arg0: i32, %arg1: memref<3x8x16xf32, #tpu.memory_space<vmem>>, %arg2: memref<16x2048xf32, #tpu.memory_space<vmem>>, %arg3: memref<3x8x2048xf32, #tpu.memory_space<vmem>>, %arg4: memref<8x2048xf32, #tpu.memory_space<vmem>>) attributes {dimension_semantics = [#tpu.dimension_semantics<parallel>], iteration_bounds = array<i64: 2>, scalar_prefetch = 0 : i64, scratch_operands = 0 : i64, tpu.core_type = #tpu.core_type<tc>, window_params = [{pipeline_mode = #tpu.pipeline_mode<synchronous>, transform_indices = @transform_0, window_bounds = array<i64: 3, 8, 16>}, {transform_indices = @transform_1, window_bounds = array<i64: 16, 2048>}, {transform_indices = @transform_2, window_bounds = array<i64: 3, 8, 2048>}, {transform_indices = @transform_3, window_bounds = array<i64: 8, 2048>}]} {
    %c0 = arith.constant 0 : index
    %c0_0 = arith.constant 0 : index
    %0 = vector.load %arg2[%c0, %c0_0] : memref<16x2048xf32, #tpu.memory_space<vmem>>, vector<16x2048xf32>
    %c0_1 = arith.constant 0 : index
    %c0_2 = arith.constant 0 : index
    %c0_3 = arith.constant 0 : index
    %1 = vector.load %arg1[%c0_1, %c0_2, %c0_3] : memref<3x8x16xf32, #tpu.memory_space<vmem>>, vector<1x8x16xf32>
    %2 = vector.shape_cast %1 : vector<1x8x16xf32> to vector<8x16xf32>
    %cst = arith.constant dense<0.000000e+00> : vector<8x2048xf32>
    %3 = tpu.matmul %2, %0, %cst {dimension_numbers = #tpu.dot_dimension_numbers<[1], [0], [0], [1], [0, 0, 1, 1], [], []>} : vector<8x16xf32>, vector<16x2048xf32>, vector<8x2048xf32> -> vector<8x2048xf32>
    %c1 = arith.constant 1 : index
    %c0_4 = arith.constant 0 : index
    %c0_5 = arith.constant 0 : index
    %4 = vector.load %arg1[%c1, %c0_4, %c0_5] : memref<3x8x16xf32, #tpu.memory_space<vmem>>, vector<1x8x16xf32>
    %5 = vector.shape_cast %4 : vector<1x8x16xf32> to vector<8x16xf32>
    %cst_6 = arith.constant dense<0.000000e+00> : vector<8x2048xf32>
    %6 = tpu.matmul %5, %0, %cst_6 {dimension_numbers = #tpu.dot_dimension_numbers<[1], [0], [0], [1], [0, 0, 1, 1], [], []>} : vector<8x16xf32>, vector<16x2048xf32>, vector<8x2048xf32> -> vector<8x2048xf32>
    %c2 = arith.constant 2 : index
    %c0_7 = arith.constant 0 : index
    %c0_8 = arith.constant 0 : index
    %7 = vector.load %arg1[%c2, %c0_7, %c0_8] : memref<3x8x16xf32, #tpu.memory_space<vmem>>, vector<1x8x16xf32>
    %8 = vector.shape_cast %7 : vector<1x8x16xf32> to vector<8x16xf32>
    %cst_9 = arith.constant dense<0.000000e+00> : vector<8x2048xf32>
    %9 = tpu.matmul %8, %0, %cst_9 {dimension_numbers = #tpu.dot_dimension_numbers<[1], [0], [0], [1], [0, 0, 1, 1], [], []>} : vector<8x16xf32>, vector<16x2048xf32>, vector<8x2048xf32> -> vector<8x2048xf32>
    %10 = arith.maximumf %3, %6 : vector<8x2048xf32>
    %11 = arith.maximumf %10, %9 : vector<8x2048xf32>
    %12 = arith.subf %3, %11 : vector<8x2048xf32>
    %13 = math.exp %12 : vector<8x2048xf32>
    %14 = arith.subf %6, %11 : vector<8x2048xf32>
    %15 = math.exp %14 : vector<8x2048xf32>
    %16 = arith.subf %9, %11 : vector<8x2048xf32>
    %17 = math.exp %16 : vector<8x2048xf32>
    %18 = arith.addf %13, %15 : vector<8x2048xf32>
    %19 = arith.addf %18, %17 : vector<8x2048xf32>
    %c0_10 = arith.constant 0 : index
    %c0_11 = arith.constant 0 : index
    %c0_12 = arith.constant 0 : index
    %20 = vector.load %arg3[%c0_10, %c0_11, %c0_12] : memref<3x8x2048xf32, #tpu.memory_space<vmem>>, vector<1x8x2048xf32>
    %21 = vector.shape_cast %20 : vector<1x8x2048xf32> to vector<8x2048xf32>
    %22 = arith.mulf %13, %21 : vector<8x2048xf32>
    %c1_13 = arith.constant 1 : index
    %c0_14 = arith.constant 0 : index
    %c0_15 = arith.constant 0 : index
    %23 = vector.load %arg3[%c1_13, %c0_14, %c0_15] : memref<3x8x2048xf32, #tpu.memory_space<vmem>>, vector<1x8x2048xf32>
    %24 = vector.shape_cast %23 : vector<1x8x2048xf32> to vector<8x2048xf32>
    %25 = arith.mulf %15, %24 : vector<8x2048xf32>
    %26 = arith.addf %22, %25 : vector<8x2048xf32>
    %c2_16 = arith.constant 2 : index
    %c0_17 = arith.constant 0 : index
    %c0_18 = arith.constant 0 : index
    %27 = vector.load %arg3[%c2_16, %c0_17, %c0_18] : memref<3x8x2048xf32, #tpu.memory_space<vmem>>, vector<1x8x2048xf32>
    %28 = vector.shape_cast %27 : vector<1x8x2048xf32> to vector<8x2048xf32>
    %29 = arith.mulf %17, %28 : vector<8x2048xf32>
    %30 = arith.addf %26, %29 : vector<8x2048xf32>
    %31 = tpu.reciprocal %19 {approx = true} : vector<8x2048xf32> -> vector<8x2048xf32>
    %32 = arith.mulf %30, %31 : vector<8x2048xf32>
    %c0_19 = arith.constant 0 : index
    %c0_20 = arith.constant 0 : index
    %33 = vector.load %arg4[%c0_19, %c0_20] : memref<8x2048xf32, #tpu.memory_space<vmem>>, vector<8x2048xf32>
    tpu.vector_store %arg4[%c0_19, %c0_20], %32 {strides = array<i32>} : memref<8x2048xf32, #tpu.memory_space<vmem>>, vector<8x2048xf32>,
    return
  }
  func.func @transform_0(%arg0: i32) -> (i32, i32, i32) {
    %c0_i32 = arith.constant 0 : i32
    %c0_i32_0 = arith.constant 0 : i32
    %c0_i32_1 = arith.constant 0 : i32
    %c0_i32_2 = arith.constant 0 : i32
    return %c0_i32, %c0_i32_0, %c0_i32_1 : i32, i32, i32
  }
  func.func @transform_1(%arg0: i32) -> (i32, i32) {
    %c0_i32 = arith.constant 0 : i32
    %c0_i32_0 = arith.constant 0 : i32
    return %c0_i32, %arg0 : i32, i32
  }
  func.func @transform_2(%arg0: i32) -> (i32, i32, i32) {
    %c0_i32 = arith.constant 0 : i32
    %c0_i32_0 = arith.constant 0 : i32
    %c0_i32_1 = arith.constant 0 : i32
    return %c0_i32, %c0_i32_0, %arg0 : i32, i32, i32
  }
  func.func @transform_3(%arg0: i32) -> (i32, i32) {
    %c0_i32 = arith.constant 0 : i32
    %c0_i32_0 = arith.constant 0 : i32
    return %c0_i32, %arg0 : i32, i32
  }
}

module attributes {stable_mosaic.version = 11 : i64} {
  func.func @_window_norm_kernel(%arg0: i32, %arg1: memref<8x4352xf32, #tpu.memory_space<vmem>>, %arg2: memref<1x512xf32, #tpu.memory_space<vmem>>, %arg3: memref<8x8192xf32, #tpu.memory_space<vmem>>) attributes {dimension_semantics = [#tpu.dimension_semantics<arbitrary>], iteration_bounds = array<i64: 1>, scalar_prefetch = 0 : i64, scratch_operands = 0 : i64, tpu.core_type = #tpu.core_type<tc>, window_params = [{pipeline_mode = #tpu.pipeline_mode<synchronous>, transform_indices = @transform_0, window_bounds = array<i64: 8, 4352>}, {pipeline_mode = #tpu.pipeline_mode<synchronous>, transform_indices = @transform_1, window_bounds = array<i64: 1, 512>}, {pipeline_mode = #tpu.pipeline_mode<synchronous>, transform_indices = @transform_2, window_bounds = array<i64: 8, 8192>}]} {
    %c0 = arith.constant 0 : index
    %c0_0 = arith.constant 0 : index
    %0 = vector.load %arg2[%c0, %c0_0] : memref<1x512xf32, #tpu.memory_space<vmem>>, vector<1x512xf32>
    %c0_1 = arith.constant 0 : index
    %c0_2 = arith.constant 0 : index
    %1 = vector.load %arg1[%c0_1, %c0_2] : memref<8x4352xf32, #tpu.memory_space<vmem>>, vector<8x512xf32>
    %2 = vector.broadcast %0 : vector<1x512xf32> to vector<8x512xf32>
    %3 = arith.mulf %1, %2 : vector<8x512xf32>
    %4 = arith.mulf %3, %3 : vector<8x512xf32>
    %cst = arith.constant dense<0.000000e+00> : vector<8xf32>
    %5 = vector.multi_reduction <add>, %4, %cst [1] : vector<8x512xf32> to vector<8xf32>
    %6 = vector.shape_cast %5 : vector<8xf32> to vector<8x1xf32>
    %7 = math.sqrt %6 : vector<8x1xf32>
    %cst_3 = arith.constant 9.99999993E-9 : f32
    %8 = vector.broadcast %cst_3 : f32 to vector<8x1xf32>
    %9 = arith.addf %7, %8 : vector<8x1xf32>
    %10 = tpu.reciprocal %9 {approx = true} : vector<8x1xf32> -> vector<8x1xf32>
    %11 = vector.broadcast %10 : vector<8x1xf32> to vector<8x512xf32>
    %12 = arith.mulf %3, %11 : vector<8x512xf32>
    %c0_4 = arith.constant 0 : index
    %c0_5 = arith.constant 0 : index
    %13 = vector.load %arg3[%c0_4, %c0_5] : memref<8x8192xf32, #tpu.memory_space<vmem>>, vector<8x512xf32>
    tpu.vector_store %arg3[%c0_4, %c0_5], %12 {strides = array<i32>} : memref<8x8192xf32, #tpu.memory_space<vmem>>, vector<8x512xf32>,
    %c0_6 = arith.constant 0 : index
    %c256 = arith.constant 256 : index
    %14 = vector.load %arg1[%c0_6, %c256] : memref<8x4352xf32, #tpu.memory_space<vmem>>, vector<8x512xf32>
    %15 = vector.broadcast %0 : vector<1x512xf32> to vector<8x512xf32>
    %16 = arith.mulf %14, %15 : vector<8x512xf32>
    %17 = arith.mulf %16, %16 : vector<8x512xf32>
    %cst_7 = arith.constant dense<0.000000e+00> : vector<8xf32>
    %18 = vector.multi_reduction <add>, %17, %cst_7 [1] : vector<8x512xf32> to vector<8xf32>
    %19 = vector.shape_cast %18 : vector<8xf32> to vector<8x1xf32>
    %20 = math.sqrt %19 : vector<8x1xf32>
    %cst_8 = arith.constant 9.99999993E-9 : f32
    %21 = vector.broadcast %cst_8 : f32 to vector<8x1xf32>
    %22 = arith.addf %20, %21 : vector<8x1xf32>
    %23 = tpu.reciprocal %22 {approx = true} : vector<8x1xf32> -> vector<8x1xf32>
    %24 = vector.broadcast %23 : vector<8x1xf32> to vector<8x512xf32>
    %25 = arith.mulf %16, %24 : vector<8x512xf32>
    %c0_9 = arith.constant 0 : index
    %c512 = arith.constant 512 : index
    %26 = vector.load %arg3[%c0_9, %c512] : memref<8x8192xf32, #tpu.memory_space<vmem>>, vector<8x512xf32>
    tpu.vector_store %arg3[%c0_9, %c512], %25 {strides = array<i32>} : memref<8x8192xf32, #tpu.memory_space<vmem>>, vector<8x512xf32>,
    %c0_10 = arith.constant 0 : index
    %c512_11 = arith.constant 512 : index
    %27 = vector.load %arg1[%c0_10, %c512_11] : memref<8x4352xf32, #tpu.memory_space<vmem>>, vector<8x512xf32>
    %28 = vector.broadcast %0 : vector<1x512xf32> to vector<8x512xf32>
    %29 = arith.mulf %27, %28 : vector<8x512xf32>
    %30 = arith.mulf %29, %29 : vector<8x512xf32>
    %cst_12 = arith.constant dense<0.000000e+00> : vector<8xf32>
    %31 = vector.multi_reduction <add>, %30, %cst_12 [1] : vector<8x512xf32> to vector<8xf32>
    %32 = vector.shape_cast %31 : vector<8xf32> to vector<8x1xf32>
    %33 = math.sqrt %32 : vector<8x1xf32>
    %cst_13 = arith.constant 9.99999993E-9 : f32
    %34 = vector.broadcast %cst_13 : f32 to vector<8x1xf32>
    %35 = arith.addf %33, %34 : vector<8x1xf32>
    %36 = tpu.reciprocal %35 {approx = true} : vector<8x1xf32> -> vector<8x1xf32>
    %37 = vector.broadcast %36 : vector<8x1xf32> to vector<8x512xf32>
    %38 = arith.mulf %29, %37 : vector<8x512xf32>
    %c0_14 = arith.constant 0 : index
    %c1024 = arith.constant 1024 : index
    %39 = vector.load %arg3[%c0_14, %c1024] : memref<8x8192xf32, #tpu.memory_space<vmem>>, vector<8x512xf32>
    tpu.vector_store %arg3[%c0_14, %c1024], %38 {strides = array<i32>} : memref<8x8192xf32, #tpu.memory_space<vmem>>, vector<8x512xf32>,
    %c0_15 = arith.constant 0 : index
    %c768 = arith.constant 768 : index
    %40 = vector.load %arg1[%c0_15, %c768] : memref<8x4352xf32, #tpu.memory_space<vmem>>, vector<8x512xf32>
    %41 = vector.broadcast %0 : vector<1x512xf32> to vector<8x512xf32>
    %42 = arith.mulf %40, %41 : vector<8x512xf32>
    %43 = arith.mulf %42, %42 : vector<8x512xf32>
    %cst_16 = arith.constant dense<0.000000e+00> : vector<8xf32>
    %44 = vector.multi_reduction <add>, %43, %cst_16 [1] : vector<8x512xf32> to vector<8xf32>
    %45 = vector.shape_cast %44 : vector<8xf32> to vector<8x1xf32>
    %46 = math.sqrt %45 : vector<8x1xf32>
    %cst_17 = arith.constant 9.99999993E-9 : f32
    %47 = vector.broadcast %cst_17 : f32 to vector<8x1xf32>
    %48 = arith.addf %46, %47 : vector<8x1xf32>
    %49 = tpu.reciprocal %48 {approx = true} : vector<8x1xf32> -> vector<8x1xf32>
    %50 = vector.broadcast %49 : vector<8x1xf32> to vector<8x512xf32>
    %51 = arith.mulf %42, %50 : vector<8x512xf32>
    %c0_18 = arith.constant 0 : index
    %c1536 = arith.constant 1536 : index
    %52 = vector.load %arg3[%c0_18, %c1536] : memref<8x8192xf32, #tpu.memory_space<vmem>>, vector<8x512xf32>
    tpu.vector_store %arg3[%c0_18, %c1536], %51 {strides = array<i32>} : memref<8x8192xf32, #tpu.memory_space<vmem>>, vector<8x512xf32>,
    %c0_19 = arith.constant 0 : index
    %c1024_20 = arith.constant 1024 : index
    %53 = vector.load %arg1[%c0_19, %c1024_20] : memref<8x4352xf32, #tpu.memory_space<vmem>>, vector<8x512xf32>
    %54 = vector.broadcast %0 : vector<1x512xf32> to vector<8x512xf32>
    %55 = arith.mulf %53, %54 : vector<8x512xf32>
    %56 = arith.mulf %55, %55 : vector<8x512xf32>
    %cst_21 = arith.constant dense<0.000000e+00> : vector<8xf32>
    %57 = vector.multi_reduction <add>, %56, %cst_21 [1] : vector<8x512xf32> to vector<8xf32>
    %58 = vector.shape_cast %57 : vector<8xf32> to vector<8x1xf32>
    %59 = math.sqrt %58 : vector<8x1xf32>
    %cst_22 = arith.constant 9.99999993E-9 : f32
    %60 = vector.broadcast %cst_22 : f32 to vector<8x1xf32>
    %61 = arith.addf %59, %60 : vector<8x1xf32>
    %62 = tpu.reciprocal %61 {approx = true} : vector<8x1xf32> -> vector<8x1xf32>
    %63 = vector.broadcast %62 : vector<8x1xf32> to vector<8x512xf32>
    %64 = arith.mulf %55, %63 : vector<8x512xf32>
    %c0_23 = arith.constant 0 : index
    %c2048 = arith.constant 2048 : index
    %65 = vector.load %arg3[%c0_23, %c2048] : memref<8x8192xf32, #tpu.memory_space<vmem>>, vector<8x512xf32>
    tpu.vector_store %arg3[%c0_23, %c2048], %64 {strides = array<i32>} : memref<8x8192xf32, #tpu.memory_space<vmem>>, vector<8x512xf32>,
    %c0_24 = arith.constant 0 : index
    %c1280 = arith.constant 1280 : index
    %66 = vector.load %arg1[%c0_24, %c1280] : memref<8x4352xf32, #tpu.memory_space<vmem>>, vector<8x512xf32>
    %67 = vector.broadcast %0 : vector<1x512xf32> to vector<8x512xf32>
    %68 = arith.mulf %66, %67 : vector<8x512xf32>
    %69 = arith.mulf %68, %68 : vector<8x512xf32>
    %cst_25 = arith.constant dense<0.000000e+00> : vector<8xf32>
    %70 = vector.multi_reduction <add>, %69, %cst_25 [1] : vector<8x512xf32> to vector<8xf32>
    %71 = vector.shape_cast %70 : vector<8xf32> to vector<8x1xf32>
    %72 = math.sqrt %71 : vector<8x1xf32>
    %cst_26 = arith.constant 9.99999993E-9 : f32
    %73 = vector.broadcast %cst_26 : f32 to vector<8x1xf32>
    %74 = arith.addf %72, %73 : vector<8x1xf32>
    %75 = tpu.reciprocal %74 {approx = true} : vector<8x1xf32> -> vector<8x1xf32>
    %76 = vector.broadcast %75 : vector<8x1xf32> to vector<8x512xf32>
    %77 = arith.mulf %68, %76 : vector<8x512xf32>
    %c0_27 = arith.constant 0 : index
    %c2560 = arith.constant 2560 : index
    %78 = vector.load %arg3[%c0_27, %c2560] : memref<8x8192xf32, #tpu.memory_space<vmem>>, vector<8x512xf32>
    tpu.vector_store %arg3[%c0_27, %c2560], %77 {strides = array<i32>} : memref<8x8192xf32, #tpu.memory_space<vmem>>, vector<8x512xf32>,
    %c0_28 = arith.constant 0 : index
    %c1536_29 = arith.constant 1536 : index
    %79 = vector.load %arg1[%c0_28, %c1536_29] : memref<8x4352xf32, #tpu.memory_space<vmem>>, vector<8x512xf32>
    %80 = vector.broadcast %0 : vector<1x512xf32> to vector<8x512xf32>
    %81 = arith.mulf %79, %80 : vector<8x512xf32>
    %82 = arith.mulf %81, %81 : vector<8x512xf32>
    %cst_30 = arith.constant dense<0.000000e+00> : vector<8xf32>
    %83 = vector.multi_reduction <add>, %82, %cst_30 [1] : vector<8x512xf32> to vector<8xf32>
    %84 = vector.shape_cast %83 : vector<8xf32> to vector<8x1xf32>
    %85 = math.sqrt %84 : vector<8x1xf32>
    %cst_31 = arith.constant 9.99999993E-9 : f32
    %86 = vector.broadcast %cst_31 : f32 to vector<8x1xf32>
    %87 = arith.addf %85, %86 : vector<8x1xf32>
    %88 = tpu.reciprocal %87 {approx = true} : vector<8x1xf32> -> vector<8x1xf32>
    %89 = vector.broadcast %88 : vector<8x1xf32> to vector<8x512xf32>
    %90 = arith.mulf %81, %89 : vector<8x512xf32>
    %c0_32 = arith.constant 0 : index
    %c3072 = arith.constant 3072 : index
    %91 = vector.load %arg3[%c0_32, %c3072] : memref<8x8192xf32, #tpu.memory_space<vmem>>, vector<8x512xf32>
    tpu.vector_store %arg3[%c0_32, %c3072], %90 {strides = array<i32>} : memref<8x8192xf32, #tpu.memory_space<vmem>>, vector<8x512xf32>,
    %c0_33 = arith.constant 0 : index
    %c1792 = arith.constant 1792 : index
    %92 = vector.load %arg1[%c0_33, %c1792] : memref<8x4352xf32, #tpu.memory_space<vmem>>, vector<8x512xf32>
    %93 = vector.broadcast %0 : vector<1x512xf32> to vector<8x512xf32>
    %94 = arith.mulf %92, %93 : vector<8x512xf32>
    %95 = arith.mulf %94, %94 : vector<8x512xf32>
    %cst_34 = arith.constant dense<0.000000e+00> : vector<8xf32>
    %96 = vector.multi_reduction <add>, %95, %cst_34 [1] : vector<8x512xf32> to vector<8xf32>
    %97 = vector.shape_cast %96 : vector<8xf32> to vector<8x1xf32>
    %98 = math.sqrt %97 : vector<8x1xf32>
    %cst_35 = arith.constant 9.99999993E-9 : f32
    %99 = vector.broadcast %cst_35 : f32 to vector<8x1xf32>
    %100 = arith.addf %98, %99 : vector<8x1xf32>
    %101 = tpu.reciprocal %100 {approx = true} : vector<8x1xf32> -> vector<8x1xf32>
    %102 = vector.broadcast %101 : vector<8x1xf32> to vector<8x512xf32>
    %103 = arith.mulf %94, %102 : vector<8x512xf32>
    %c0_36 = arith.constant 0 : index
    %c3584 = arith.constant 3584 : index
    %104 = vector.load %arg3[%c0_36, %c3584] : memref<8x8192xf32, #tpu.memory_space<vmem>>, vector<8x512xf32>
    tpu.vector_store %arg3[%c0_36, %c3584], %103 {strides = array<i32>} : memref<8x8192xf32, #tpu.memory_space<vmem>>, vector<8x512xf32>,
    %c0_37 = arith.constant 0 : index
    %c2048_38 = arith.constant 2048 : index
    %105 = vector.load %arg1[%c0_37, %c2048_38] : memref<8x4352xf32, #tpu.memory_space<vmem>>, vector<8x512xf32>
    %106 = vector.broadcast %0 : vector<1x512xf32> to vector<8x512xf32>
    %107 = arith.mulf %105, %106 : vector<8x512xf32>
    %108 = arith.mulf %107, %107 : vector<8x512xf32>
    %cst_39 = arith.constant dense<0.000000e+00> : vector<8xf32>
    %109 = vector.multi_reduction <add>, %108, %cst_39 [1] : vector<8x512xf32> to vector<8xf32>
    %110 = vector.shape_cast %109 : vector<8xf32> to vector<8x1xf32>
    %111 = math.sqrt %110 : vector<8x1xf32>
    %cst_40 = arith.constant 9.99999993E-9 : f32
    %112 = vector.broadcast %cst_40 : f32 to vector<8x1xf32>
    %113 = arith.addf %111, %112 : vector<8x1xf32>
    %114 = tpu.reciprocal %113 {approx = true} : vector<8x1xf32> -> vector<8x1xf32>
    %115 = vector.broadcast %114 : vector<8x1xf32> to vector<8x512xf32>
    %116 = arith.mulf %107, %115 : vector<8x512xf32>
    %c0_41 = arith.constant 0 : index
    %c4096 = arith.constant 4096 : index
    %117 = vector.load %arg3[%c0_41, %c4096] : memref<8x8192xf32, #tpu.memory_space<vmem>>, vector<8x512xf32>
    tpu.vector_store %arg3[%c0_41, %c4096], %116 {strides = array<i32>} : memref<8x8192xf32, #tpu.memory_space<vmem>>, vector<8x512xf32>,
    %c0_42 = arith.constant 0 : index
    %c2304 = arith.constant 2304 : index
    %118 = vector.load %arg1[%c0_42, %c2304] : memref<8x4352xf32, #tpu.memory_space<vmem>>, vector<8x512xf32>
    %119 = vector.broadcast %0 : vector<1x512xf32> to vector<8x512xf32>
    %120 = arith.mulf %118, %119 : vector<8x512xf32>
    %121 = arith.mulf %120, %120 : vector<8x512xf32>
    %cst_43 = arith.constant dense<0.000000e+00> : vector<8xf32>
    %122 = vector.multi_reduction <add>, %121, %cst_43 [1] : vector<8x512xf32> to vector<8xf32>
    %123 = vector.shape_cast %122 : vector<8xf32> to vector<8x1xf32>
    %124 = math.sqrt %123 : vector<8x1xf32>
    %cst_44 = arith.constant 9.99999993E-9 : f32
    %125 = vector.broadcast %cst_44 : f32 to vector<8x1xf32>
    %126 = arith.addf %124, %125 : vector<8x1xf32>
    %127 = tpu.reciprocal %126 {approx = true} : vector<8x1xf32> -> vector<8x1xf32>
    %128 = vector.broadcast %127 : vector<8x1xf32> to vector<8x512xf32>
    %129 = arith.mulf %120, %128 : vector<8x512xf32>
    %c0_45 = arith.constant 0 : index
    %c4608 = arith.constant 4608 : index
    %130 = vector.load %arg3[%c0_45, %c4608] : memref<8x8192xf32, #tpu.memory_space<vmem>>, vector<8x512xf32>
    tpu.vector_store %arg3[%c0_45, %c4608], %129 {strides = array<i32>} : memref<8x8192xf32, #tpu.memory_space<vmem>>, vector<8x512xf32>,
    %c0_46 = arith.constant 0 : index
    %c2560_47 = arith.constant 2560 : index
    %131 = vector.load %arg1[%c0_46, %c2560_47] : memref<8x4352xf32, #tpu.memory_space<vmem>>, vector<8x512xf32>
    %132 = vector.broadcast %0 : vector<1x512xf32> to vector<8x512xf32>
    %133 = arith.mulf %131, %132 : vector<8x512xf32>
    %134 = arith.mulf %133, %133 : vector<8x512xf32>
    %cst_48 = arith.constant dense<0.000000e+00> : vector<8xf32>
    %135 = vector.multi_reduction <add>, %134, %cst_48 [1] : vector<8x512xf32> to vector<8xf32>
    %136 = vector.shape_cast %135 : vector<8xf32> to vector<8x1xf32>
    %137 = math.sqrt %136 : vector<8x1xf32>
    %cst_49 = arith.constant 9.99999993E-9 : f32
    %138 = vector.broadcast %cst_49 : f32 to vector<8x1xf32>
    %139 = arith.addf %137, %138 : vector<8x1xf32>
    %140 = tpu.reciprocal %139 {approx = true} : vector<8x1xf32> -> vector<8x1xf32>
    %141 = vector.broadcast %140 : vector<8x1xf32> to vector<8x512xf32>
    %142 = arith.mulf %133, %141 : vector<8x512xf32>
    %c0_50 = arith.constant 0 : index
    %c5120 = arith.constant 5120 : index
    %143 = vector.load %arg3[%c0_50, %c5120] : memref<8x8192xf32, #tpu.memory_space<vmem>>, vector<8x512xf32>
    tpu.vector_store %arg3[%c0_50, %c5120], %142 {strides = array<i32>} : memref<8x8192xf32, #tpu.memory_space<vmem>>, vector<8x512xf32>,
    %c0_51 = arith.constant 0 : index
    %c2816 = arith.constant 2816 : index
    %144 = vector.load %arg1[%c0_51, %c2816] : memref<8x4352xf32, #tpu.memory_space<vmem>>, vector<8x512xf32>
    %145 = vector.broadcast %0 : vector<1x512xf32> to vector<8x512xf32>
    %146 = arith.mulf %144, %145 : vector<8x512xf32>
    %147 = arith.mulf %146, %146 : vector<8x512xf32>
    %cst_52 = arith.constant dense<0.000000e+00> : vector<8xf32>
    %148 = vector.multi_reduction <add>, %147, %cst_52 [1] : vector<8x512xf32> to vector<8xf32>
    %149 = vector.shape_cast %148 : vector<8xf32> to vector<8x1xf32>
    %150 = math.sqrt %149 : vector<8x1xf32>
    %cst_53 = arith.constant 9.99999993E-9 : f32
    %151 = vector.broadcast %cst_53 : f32 to vector<8x1xf32>
    %152 = arith.addf %150, %151 : vector<8x1xf32>
    %153 = tpu.reciprocal %152 {approx = true} : vector<8x1xf32> -> vector<8x1xf32>
    %154 = vector.broadcast %153 : vector<8x1xf32> to vector<8x512xf32>
    %155 = arith.mulf %146, %154 : vector<8x512xf32>
    %c0_54 = arith.constant 0 : index
    %c5632 = arith.constant 5632 : index
    %156 = vector.load %arg3[%c0_54, %c5632] : memref<8x8192xf32, #tpu.memory_space<vmem>>, vector<8x512xf32>
    tpu.vector_store %arg3[%c0_54, %c5632], %155 {strides = array<i32>} : memref<8x8192xf32, #tpu.memory_space<vmem>>, vector<8x512xf32>,
    %c0_55 = arith.constant 0 : index
    %c3072_56 = arith.constant 3072 : index
    %157 = vector.load %arg1[%c0_55, %c3072_56] : memref<8x4352xf32, #tpu.memory_space<vmem>>, vector<8x512xf32>
    %158 = vector.broadcast %0 : vector<1x512xf32> to vector<8x512xf32>
    %159 = arith.mulf %157, %158 : vector<8x512xf32>
    %160 = arith.mulf %159, %159 : vector<8x512xf32>
    %cst_57 = arith.constant dense<0.000000e+00> : vector<8xf32>
    %161 = vector.multi_reduction <add>, %160, %cst_57 [1] : vector<8x512xf32> to vector<8xf32>
    %162 = vector.shape_cast %161 : vector<8xf32> to vector<8x1xf32>
    %163 = math.sqrt %162 : vector<8x1xf32>
    %cst_58 = arith.constant 9.99999993E-9 : f32
    %164 = vector.broadcast %cst_58 : f32 to vector<8x1xf32>
    %165 = arith.addf %163, %164 : vector<8x1xf32>
    %166 = tpu.reciprocal %165 {approx = true} : vector<8x1xf32> -> vector<8x1xf32>
    %167 = vector.broadcast %166 : vector<8x1xf32> to vector<8x512xf32>
    %168 = arith.mulf %159, %167 : vector<8x512xf32>
    %c0_59 = arith.constant 0 : index
    %c6144 = arith.constant 6144 : index
    %169 = vector.load %arg3[%c0_59, %c6144] : memref<8x8192xf32, #tpu.memory_space<vmem>>, vector<8x512xf32>
    tpu.vector_store %arg3[%c0_59, %c6144], %168 {strides = array<i32>} : memref<8x8192xf32, #tpu.memory_space<vmem>>, vector<8x512xf32>,
    %c0_60 = arith.constant 0 : index
    %c3328 = arith.constant 3328 : index
    %170 = vector.load %arg1[%c0_60, %c3328] : memref<8x4352xf32, #tpu.memory_space<vmem>>, vector<8x512xf32>
    %171 = vector.broadcast %0 : vector<1x512xf32> to vector<8x512xf32>
    %172 = arith.mulf %170, %171 : vector<8x512xf32>
    %173 = arith.mulf %172, %172 : vector<8x512xf32>
    %cst_61 = arith.constant dense<0.000000e+00> : vector<8xf32>
    %174 = vector.multi_reduction <add>, %173, %cst_61 [1] : vector<8x512xf32> to vector<8xf32>
    %175 = vector.shape_cast %174 : vector<8xf32> to vector<8x1xf32>
    %176 = math.sqrt %175 : vector<8x1xf32>
    %cst_62 = arith.constant 9.99999993E-9 : f32
    %177 = vector.broadcast %cst_62 : f32 to vector<8x1xf32>
    %178 = arith.addf %176, %177 : vector<8x1xf32>
    %179 = tpu.reciprocal %178 {approx = true} : vector<8x1xf32> -> vector<8x1xf32>
    %180 = vector.broadcast %179 : vector<8x1xf32> to vector<8x512xf32>
    %181 = arith.mulf %172, %180 : vector<8x512xf32>
    %c0_63 = arith.constant 0 : index
    %c6656 = arith.constant 6656 : index
    %182 = vector.load %arg3[%c0_63, %c6656] : memref<8x8192xf32, #tpu.memory_space<vmem>>, vector<8x512xf32>
    tpu.vector_store %arg3[%c0_63, %c6656], %181 {strides = array<i32>} : memref<8x8192xf32, #tpu.memory_space<vmem>>, vector<8x512xf32>,
    %c0_64 = arith.constant 0 : index
    %c3584_65 = arith.constant 3584 : index
    %183 = vector.load %arg1[%c0_64, %c3584_65] : memref<8x4352xf32, #tpu.memory_space<vmem>>, vector<8x512xf32>
    %184 = vector.broadcast %0 : vector<1x512xf32> to vector<8x512xf32>
    %185 = arith.mulf %183, %184 : vector<8x512xf32>
    %186 = arith.mulf %185, %185 : vector<8x512xf32>
    %cst_66 = arith.constant dense<0.000000e+00> : vector<8xf32>
    %187 = vector.multi_reduction <add>, %186, %cst_66 [1] : vector<8x512xf32> to vector<8xf32>
    %188 = vector.shape_cast %187 : vector<8xf32> to vector<8x1xf32>
    %189 = math.sqrt %188 : vector<8x1xf32>
    %cst_67 = arith.constant 9.99999993E-9 : f32
    %190 = vector.broadcast %cst_67 : f32 to vector<8x1xf32>
    %191 = arith.addf %189, %190 : vector<8x1xf32>
    %192 = tpu.reciprocal %191 {approx = true} : vector<8x1xf32> -> vector<8x1xf32>
    %193 = vector.broadcast %192 : vector<8x1xf32> to vector<8x512xf32>
    %194 = arith.mulf %185, %193 : vector<8x512xf32>
    %c0_68 = arith.constant 0 : index
    %c7168 = arith.constant 7168 : index
    %195 = vector.load %arg3[%c0_68, %c7168] : memref<8x8192xf32, #tpu.memory_space<vmem>>, vector<8x512xf32>
    tpu.vector_store %arg3[%c0_68, %c7168], %194 {strides = array<i32>} : memref<8x8192xf32, #tpu.memory_space<vmem>>, vector<8x512xf32>,
    %c0_69 = arith.constant 0 : index
    %c3840 = arith.constant 3840 : index
    %196 = vector.load %arg1[%c0_69, %c3840] : memref<8x4352xf32, #tpu.memory_space<vmem>>, vector<8x512xf32>
    %197 = vector.broadcast %0 : vector<1x512xf32> to vector<8x512xf32>
    %198 = arith.mulf %196, %197 : vector<8x512xf32>
    %199 = arith.mulf %198, %198 : vector<8x512xf32>
    %cst_70 = arith.constant dense<0.000000e+00> : vector<8xf32>
    %200 = vector.multi_reduction <add>, %199, %cst_70 [1] : vector<8x512xf32> to vector<8xf32>
    %201 = vector.shape_cast %200 : vector<8xf32> to vector<8x1xf32>
    %202 = math.sqrt %201 : vector<8x1xf32>
    %cst_71 = arith.constant 9.99999993E-9 : f32
    %203 = vector.broadcast %cst_71 : f32 to vector<8x1xf32>
    %204 = arith.addf %202, %203 : vector<8x1xf32>
    %205 = tpu.reciprocal %204 {approx = true} : vector<8x1xf32> -> vector<8x1xf32>
    %206 = vector.broadcast %205 : vector<8x1xf32> to vector<8x512xf32>
    %207 = arith.mulf %198, %206 : vector<8x512xf32>
    %c0_72 = arith.constant 0 : index
    %c7680 = arith.constant 7680 : index
    %208 = vector.load %arg3[%c0_72, %c7680] : memref<8x8192xf32, #tpu.memory_space<vmem>>, vector<8x512xf32>
    tpu.vector_store %arg3[%c0_72, %c7680], %207 {strides = array<i32>} : memref<8x8192xf32, #tpu.memory_space<vmem>>, vector<8x512xf32>,
    return
  }
  func.func @transform_0(%arg0: i32) -> (i32, i32) {
    %c0_i32 = arith.constant 0 : i32
    %c0_i32_0 = arith.constant 0 : i32
    %c0_i32_1 = arith.constant 0 : i32
    return %c0_i32, %c0_i32_0 : i32, i32
  }
  func.func @transform_1(%arg0: i32) -> (i32, i32) {
    %c0_i32 = arith.constant 0 : i32
    %c0_i32_0 = arith.constant 0 : i32
    %c0_i32_1 = arith.constant 0 : i32
    return %c0_i32, %c0_i32_0 : i32, i32
  }
  func.func @transform_2(%arg0: i32) -> (i32, i32) {
    %c0_i32 = arith.constant 0 : i32
    %c0_i32_0 = arith.constant 0 : i32
    %c0_i32_1 = arith.constant 0 : i32
    return %c0_i32, %c0_i32_0 : i32, i32
  }
}

module attributes {stable_mosaic.version = 11 : i64} {
  func.func @_final_blend_kernel(%arg0: i32, %arg1: memref<8x4096xf32, #tpu.memory_space<vmem>>, %arg2: memref<8x4096xf32, #tpu.memory_space<vmem>>, %arg3: memref<8x128xf32, #tpu.memory_space<vmem>>, %arg4: memref<8x128xf32, #tpu.memory_space<vmem>>, %arg5: memref<8x4096xf32, #tpu.memory_space<vmem>>) attributes {dimension_semantics = [#tpu.dimension_semantics<arbitrary>], iteration_bounds = array<i64: 1>, scalar_prefetch = 0 : i64, scratch_operands = 0 : i64, tpu.core_type = #tpu.core_type<tc>, window_params = [{pipeline_mode = #tpu.pipeline_mode<synchronous>, transform_indices = @transform_0, window_bounds = array<i64: 8, 4096>}, {pipeline_mode = #tpu.pipeline_mode<synchronous>, transform_indices = @transform_1, window_bounds = array<i64: 8, 4096>}, {pipeline_mode = #tpu.pipeline_mode<synchronous>, transform_indices = @transform_2, window_bounds = array<i64: 8, 128>}, {pipeline_mode = #tpu.pipeline_mode<synchronous>, transform_indices = @transform_3, window_bounds = array<i64: 8, 128>}, {pipeline_mode = #tpu.pipeline_mode<synchronous>, transform_indices = @transform_4, window_bounds = array<i64: 8, 4096>}]} {
    %c0 = arith.constant 0 : index
    %c0_0 = arith.constant 0 : index
    %0 = vector.load %arg1[%c0, %c0_0] : memref<8x4096xf32, #tpu.memory_space<vmem>>, vector<8x4096xf32>
    %1 = arith.mulf %0, %0 : vector<8x4096xf32>
    %cst = arith.constant dense<0.000000e+00> : vector<8xf32>
    %2 = vector.multi_reduction <add>, %1, %cst [1] : vector<8x4096xf32> to vector<8xf32>
    %3 = vector.shape_cast %2 : vector<8xf32> to vector<8x1xf32>
    %4 = math.sqrt %3 : vector<8x1xf32>
    %cst_1 = arith.constant 9.99999993E-9 : f32
    %5 = vector.broadcast %cst_1 : f32 to vector<8x1xf32>
    %6 = arith.addf %4, %5 : vector<8x1xf32>
    %7 = tpu.reciprocal %6 {approx = true} : vector<8x1xf32> -> vector<8x1xf32>
    %8 = vector.broadcast %7 : vector<8x1xf32> to vector<8x4096xf32>
    %9 = arith.mulf %0, %8 : vector<8x4096xf32>
    %c0_2 = arith.constant 0 : index
    %c0_3 = arith.constant 0 : index
    %10 = vector.load %arg3[%c0_2, %c0_3] : memref<8x128xf32, #tpu.memory_space<vmem>>, vector<8x128xf32>
    %11 = vector.extract_strided_slice %10 {offsets = [0, 0], sizes = [8, 1], strides = [1, 1]} : vector<8x128xf32> to vector<8x1xf32>
    %c0_4 = arith.constant 0 : index
    %c0_5 = arith.constant 0 : index
    %12 = vector.load %arg4[%c0_4, %c0_5] : memref<8x128xf32, #tpu.memory_space<vmem>>, vector<8x128xf32>
    %13 = vector.extract_strided_slice %12 {offsets = [0, 0], sizes = [8, 1], strides = [1, 1]} : vector<8x128xf32> to vector<8x1xf32>
    %14 = vector.broadcast %11 : vector<8x1xf32> to vector<8x4096xf32>
    %15 = arith.mulf %9, %14 : vector<8x4096xf32>
    %c0_6 = arith.constant 0 : index
    %c0_7 = arith.constant 0 : index
    %16 = vector.load %arg2[%c0_6, %c0_7] : memref<8x4096xf32, #tpu.memory_space<vmem>>, vector<8x4096xf32>
    %17 = vector.broadcast %13 : vector<8x1xf32> to vector<8x4096xf32>
    %18 = arith.mulf %16, %17 : vector<8x4096xf32>
    %19 = arith.addf %15, %18 : vector<8x4096xf32>
    %c0_8 = arith.constant 0 : index
    %c0_9 = arith.constant 0 : index
    %20 = vector.load %arg5[%c0_8, %c0_9] : memref<8x4096xf32, #tpu.memory_space<vmem>>, vector<8x4096xf32>
    tpu.vector_store %arg5[%c0_8, %c0_9], %19 {strides = array<i32>} : memref<8x4096xf32, #tpu.memory_space<vmem>>, vector<8x4096xf32>,
    return
  }
  func.func @transform_0(%arg0: i32) -> (i32, i32) {
    %c0_i32 = arith.constant 0 : i32
    %c0_i32_0 = arith.constant 0 : i32
    %c0_i32_1 = arith.constant 0 : i32
    return %c0_i32, %c0_i32_0 : i32, i32
  }
  func.func @transform_1(%arg0: i32) -> (i32, i32) {
    %c0_i32 = arith.constant 0 : i32
    %c0_i32_0 = arith.constant 0 : i32
    %c0_i32_1 = arith.constant 0 : i32
    return %c0_i32, %c0_i32_0 : i32, i32
  }
  func.func @transform_2(%arg0: i32) -> (i32, i32) {
    %c0_i32 = arith.constant 0 : i32
    %c0_i32_0 = arith.constant 0 : i32
    %c0_i32_1 = arith.constant 0 : i32
    return %c0_i32, %c0_i32_0 : i32, i32
  }
  func.func @transform_3(%arg0: i32) -> (i32, i32) {
    %c0_i32 = arith.constant 0 : i32
    %c0_i32_0 = arith.constant 0 : i32
    %c0_i32_1 = arith.constant 0 : i32
    return %c0_i32, %c0_i32_0 : i32, i32
  }
  func.func @transform_4(%arg0: i32) -> (i32, i32) {
    %c0_i32 = arith.constant 0 : i32
    %c0_i32_0 = arith.constant 0 : i32
    %c0_i32_1 = arith.constant 0 : i32
    return %c0_i32, %c0_i32_0 : i32, i32
  }
}

</mosaic_0001>

<bundles_post_ra>
// kernel: _lambda_.4
= control target key start
LH: loop header
LB: loop body
LE: loop exit
PB: predicated region body
PF: predicated region fallthrough
CT: control target
= control target key end

     0   :  { %s3960_s0 = inlined_call_operand.hbm [shape: f32[8,16], index: 0, kind: input, shape index: {}]   ;;  %s3961_s1 = inlined_call_operand.hbm [shape: f32[3,16,16], index: 1, kind: input, shape index: {}]   ;;  %s3962_s2 = inlined_call_operand.hbm [shape: f32[3,1,16], index: 2, kind: input, shape index: {}]   ;;  %s3963_s3 = inlined_call_operand.hbm [shape: f32[16,4096], index: 3, kind: input, shape index: {}]   ;;  %s3964_s4 = inlined_call_operand.vmem [shape: f32[8,16], index: 4, kind: input, shape index: {}]   ;;  %s3965_s5 = inlined_call_operand.hbm [shape: f32[16,4096], index: 5, kind: input, shape index: {}]   ;;  %s3966_s6 = inlined_call_operand.vmem [shape: f32[3,8,4096], index: 6, kind: output, shape index: {}]  }
   0x1   :  { %3976 = sst [smem:[#allocation13_spill]] %s3961_s1 }
   0x2   :  { %3977 = sst [smem:[#allocation14_spill]] %s3963_s3 }
   0x3   :  { %11 = vsyncpa [#allocation3], 0 }
   0x4   :  { %12 = vsyncpa [#allocation5], 0 }
   0x5   :  { %14 = vsyncpa [#allocation5 + $0x1], 0 }
   0x6   :  { %15 = vsyncpa [#allocation8], 0  ;;  %s3529_s21 = smov 0   ;;  %s3531_s22 = smov 0  }
   0x7   :  { %s3533_s23 = smov 0   ;;  %s3535_s24 = smov 0  }
   0x8 LB: > { %s3548_s25 = sadd.s32 4294967295, %s3480_s24   ;;  %p62_p0 = scmp.ne.s32.totalorder %s3472_s22, %s3468_s21  ;;  %s3480_s24 = sphi %s3535_s24, %s4000_s24   ;;  %s3476_s23 = sphi %s3533_s23, %s3999_s23   ;;  %s3472_s22 = sphi %s3531_s22, %s3998_s22   ;;  %s3468_s21 = sphi %s3529_s21, %s3997_s21  }
   0x9   : > { %p3967_p1 = scmp.eq.s32.totalorder %s3548_s25, 0  ;;  %p3017_p2 = scmp.ge.s32.totalorder %s3480_s24, 1 }
   0xa   : > { %p188_p3 = scmp.lt.s32.totalorder %s3480_s24, 4  ;;  %s3482_s28 = smov [#allocation7]  }
   0xb   : > { %p3556_p4 = por %p3967_p1, %p62_p0  ;;  %s211_s29 = sshll.u32 %s3482_s28, 4  ;;  %s212_s29 = int_to_ptr.vmem [resolvable:$true] %s211_s29 }
   0xc   : > { %p3560_p5 = pnand %p3017_p2, %p188_p3  ;;  %s3573_s7 = sadd.s32 1, %s3480_s24  }
   0xd   : > { %s3978_s26 = scalar_select %p3556_p4, 1, 0 }
   0xe   : > { %s3979_s27 = scalar_select %p3560_p5, 1, 0 }
   0xf   : > { %p3228_p6 = pneg %p3560_p5  ;;  %s49_s8 = sadd.s32 1, %s3476_s23 }
  0x10   : > { %s46_s9 = ssub.s32 %s3480_s24, %s3573_s7  ;;  %s3981_s3 = sld [smem:[#allocation14_spill]] }
  0x11   : > { %p3568_p7 = pnand %p3228_p6, %p3967_p1 }
  0x13   : > { %s3980_s30 = scalar_select %p3568_p7, 1, 0 }
  0x14   : > { %p3586_p9 = pneg %p3568_p7 }
  0x16   : > { %s3294_s12 = scalar_lea.hbm %s3981_s3, 8192 }
  0x17   : > { %p3295_p8 = scmp.ne.s32.totalorder %s3981_s3, %s3294_s12  ;;  %p3301_p12 = scmp.lt.u32.totalorder %s3294_s12, %s3981_s3 }
  0x19   : > { %p3297_p10 = pnand %p3586_p9, %p3295_p8 }
  0x1b   : > { %p3298_p11 = pneg %p3297_p10 }
  0x1d   : > { %p3303_p13 = pnand %p3301_p12, %p3298_p11 }
  0x1f   : > { %3306 = shalt.err (!%p3303_p13)
}
  0x20   : > { %s3307_s18 = scalar_lea.vmem %s212_s29, 8192  ;;  %p3315_p6 = scmp.lt.s32.totalorder %s212_s29, %s212_s29 }
  0x21   : > { %p3308_p0 = scmp.ne.s32.totalorder %s212_s29, %s3307_s18  ;;  %p3316_p1 = scmp.lt.s32.totalorder %s3307_s18, %s3307_s18 }
  0x23   : > { %p3310_p2 = pnand %p3308_p0, %p3586_p9  ;;  %p3317_p4 = por %p3316_p1, %p3315_p6 }
  0x25   : > { %p3311_p3 = pneg %p3310_p2 }
  0x27   : > { %p3318_p5 = pnand %p3317_p4, %p3311_p3 }
  0x29   : > { %3321 = shalt.err (!%p3318_p5)
}
  0x2a   : > { %s3973_s19 = smov 4096   ;;  %s3974_s20 = smov 256  }
  0x2b   : > { %3234 = dma.hbm_to_vmem [thread:$0]  (!%p3568_p7), %s3981_s3, 8192, %s212_s29, [#allocation8], %s3973_s19, %s3973_s19, %s3974_s20  }
  0x2c   : > { %p47_p1 = scmp.eq.s32.totalorder %s46_s9, 0  ;;  %p56_p4 = scmp.ne.s32.totalorder %s3476_s23, %s3472_s22 }
  0x2d   : > { %p57_p5 = scmp.eq.s32.totalorder %s3480_s24, 0  ;;  %p3248_p8 = scmp.lt.s32.totalorder %s3480_s24, 3 }
  0x2e   : > { %s3610_s10 = scalar_select %p47_p1, %s3476_s23, %s49_s8  }
  0x2f   : > { %p58_p10 = por %p57_p5, %p56_p4  ;;  %s241_s11 = sand.u32 1, %s3480_s24  }
  0x30   : > { %s3972_s12 = sand.u32 1, %s3476_s23   ;;  %s3069_s14 = sshll.u32 %s3480_s24, 8 }
  0x31   : > { %s3022_s13 = sshll.u32 %s3972_s12, 4  ;;  %s3983_s1 = sld [smem:[#allocation13_spill]] }
  0x32   : > { %s245_s29 = scalar_lea.vmem [#allocation4], %s3022_s13  ;;  %p3622_p11 = pnand %p3248_p8, %p58_p10 }
  0x33   : > { %s252_s9 = sshll.u32 %s245_s29, 4  ;;  %s3628_s21 = scalar_lea.sflag [#allocation5], %s241_s11  ;;  %s3626_s9 = int_to_ptr.vmem [resolvable:$true] %s252_s9 }
  0x34   : > { %p3975_p13 = pneg %p3622_p11 }
  0x37   : > { %s3620_s18 = scalar_lea.hbm %s3983_s1, %s3069_s14  ;;  %s3327_s16 = scalar_lea.hbm %s3983_s1, 768 }
  0x38   : > { %s3322_s28 = scalar_lea.hbm %s3620_s18, 256  ;;  %p3328_p3 = scmp.lt.u32.totalorder %s3620_s18, %s3983_s1 }
  0x39   : > { %p3323_p12 = scmp.ne.s32.totalorder %s3620_s18, %s3322_s28  ;;  %p3329_p6 = scmp.lt.u32.totalorder %s3327_s16, %s3322_s28 }
  0x3a   : > { %p3331_p4 = scmp.lt.u32.totalorder %s3322_s28, %s3620_s18 }
  0x3b   : > { %p3325_p0 = pnand %p3975_p13, %p3323_p12  ;;  %p3330_p1 = por %p3329_p6, %p3328_p3 }
  0x3d   : > { %p3326_p2 = pneg %p3325_p0  ;;  %p3332_p5 = por %p3331_p4, %p3330_p1 }
  0x3f   : > { %p3333_p8 = pnand %p3332_p5, %p3326_p2 }
  0x41   : > { %3336 = shalt.err (!%p3333_p8)
}
  0x42   : > { %s3337_s11 = scalar_lea.vmem %s3626_s9, 256  ;;  %s3485_s13 = smov [#allocation4]  }
  0x43   : > { %p3338_p10 = scmp.ne.s32.totalorder %s3626_s9, %s3337_s11  ;;  %s3342_s14 = sshll.u32 %s3485_s13, 4  ;;  %s3343_s14 = int_to_ptr.vmem [resolvable:$false] %s3342_s14 }
  0x44   : > { %s3344_s17 = scalar_lea.vmem %s3343_s14, 512  ;;  %p3345_p7 = scmp.lt.s32.totalorder %s3626_s9, %s3343_s14 }
  0x45   : > { %p3340_p12 = pnand %p3338_p10, %p3975_p13  ;;  %p3346_p3 = scmp.lt.s32.totalorder %s3344_s17, %s3337_s11 }
  0x47   : > { %p3341_p0 = pneg %p3340_p12  ;;  %p3347_p6 = por %p3346_p3, %p3345_p7 }
  0x49   : > { %p3348_p1 = pnand %p3347_p6, %p3341_p0 }
  0x4b   : > { %3351 = shalt.err (!%p3348_p1)
}
  0x4c   : > { %s3486_s28 = smov 128   ;;  %s3487_s16 = smov 8  }
  0x4d   : > { %3241 = dma.hbm_to_vmem [thread:$0]  (!%p3622_p11), %s3620_s18, 256, %s3626_s9, %s3628_s21, %s3486_s28, %s3486_s28, %s3487_s16  }
  0x4e   : > { %s3488_s29 = smov [#allocation2]   ;;  %s3489_s19 = smov [#allocation9]  }
  0x4f   : > { %s201_s12 = sshll.u32 %s3488_s29, 4  ;;  %s227_s13 = sshll.u32 %s3489_s19, 4  ;;  %s202_s12 = int_to_ptr.vmem [resolvable:$true] %s201_s12  ;;  %s3656_s13 = int_to_ptr.vmem [resolvable:$true] %s227_s13 }
  0x50   : > { %s3352_s17 = scalar_lea.hbm %s3960_s0, 128 }
  0x51   : > { %p3353_p7 = scmp.ne.s32.totalorder %s3960_s0, %s3352_s17  ;;  %p3359_p5 = scmp.lt.u32.totalorder %s3352_s17, %s3960_s0 }
  0x53   : > { %p3355_p2 = pnand %p3353_p7, %p3586_p9 }
  0x55   : > { %p3356_p4 = pneg %p3355_p2 }
  0x57   : > { %p3361_p8 = pnand %p3359_p5, %p3356_p4 }
  0x59   : > { %3364 = shalt.err (!%p3361_p8)
}
  0x5a   : > { %s3365_s19 = scalar_lea.vmem %s202_s12, 128  ;;  %p3373_p3 = scmp.lt.s32.totalorder %s202_s12, %s202_s12 }
  0x5b   : > { %p3366_p10 = scmp.ne.s32.totalorder %s202_s12, %s3365_s19  ;;  %p3374_p6 = scmp.lt.s32.totalorder %s3365_s19, %s3365_s19 }
  0x5d   : > { %p3368_p12 = pnand %p3366_p10, %p3586_p9  ;;  %p3375_p1 = por %p3374_p6, %p3373_p3 }
  0x5f   : > { %p3369_p0 = pneg %p3368_p12 }
  0x61   : > { %p3376_p13 = pnand %p3375_p1, %p3369_p0 }
  0x63   : > { %3379 = shalt.err (!%p3376_p13)
}
  0x64   : > { %p3985_p7 = scmp.ne.s32.totalorder %s3980_s30, 0  ;;  %s3380_s28 = scalar_lea.hbm %s3965_s5, 8192 }
  0x65   : > { %p3381_p2 = scmp.ne.s32.totalorder %s3965_s5, %s3380_s28  ;;  %p3387_p13 = scmp.lt.u32.totalorder %s3380_s28, %s3965_s5 }
  0x66   : > { %3231 = dma.hbm_to_vmem [thread:$0]  (!%p3985_p7), %s3960_s0, 128, %s202_s12, [#allocation3]  }
  0x67   : > { %p3383_p4 = pnand %p3381_p2, %p3586_p9 }
  0x69   : > { %p3384_p5 = pneg %p3383_p4 }
  0x6b   : > { %p3389_p8 = pnand %p3387_p13, %p3384_p5 }
  0x6d   : > { %3392 = shalt.err (!%p3389_p8)
}
  0x6e   : > { %s3393_s12 = scalar_lea.vmem %s3656_s13, 8192  ;;  %p3401_p3 = scmp.lt.s32.totalorder %s3656_s13, %s3656_s13 }
  0x6f   : > { %p3394_p10 = scmp.ne.s32.totalorder %s3656_s13, %s3393_s12  ;;  %p3402_p6 = scmp.lt.s32.totalorder %s3393_s12, %s3393_s12 }
  0x71   : > { %p3396_p12 = pnand %p3394_p10, %p3586_p9  ;;  %p3403_p1 = por %p3402_p6, %p3401_p3 }
  0x73   : > { %p3397_p0 = pneg %p3396_p12 }
  0x75   : > { %p3404_p2 = pnand %p3403_p1, %p3397_p0 }
  0x77   : > { %3407 = shalt.err (!%p3404_p2)
}
  0x78   : > { %s3986_s17 = smov 256   ;;  %s3987_s18 = smov 4096  }
  0x79   : > { %3237 = dma.hbm_to_vmem [thread:$0]  (!%p3985_p7), %s3965_s5, 8192, %s3656_s13, [#allocation8], %s3987_s18, %s3987_s18, %s3986_s17  }
  0x7a   : > { %s3025_s15 = sshll.u32 %s3480_s24, 4  ;;  %s3988_s28 = sand.u32 1, %s3476_s23  }
  0x7b   : > { %s3706_s9 = scalar_lea.hbm %s3962_s2, %s3025_s15  ;;  %s265_s30 = scalar_lea.vmem [#allocation6], %s3988_s28 }
  0x7c   : > { %s272_s16 = sshll.u32 %s265_s30, 4  ;;  %s3408_s29 = scalar_lea.hbm %s3706_s9, 16  ;;  %s273_s16 = int_to_ptr.vmem [resolvable:$true] %s272_s16 }
  0x7d   : > { %p3409_p9 = scmp.ne.s32.totalorder %s3706_s9, %s3408_s29  ;;  %p3989_p4 = pneg %p3622_p11 }
  0x7e   : > { %s3413_s11 = scalar_lea.hbm %s3962_s2, 48  ;;  %p3414_p13 = scmp.lt.u32.totalorder %s3706_s9, %s3962_s2 }
  0x7f   : > { %p3411_p5 = pnand %p3409_p9, %p3989_p4  ;;  %p3415_p8 = scmp.lt.u32.totalorder %s3413_s11, %s3408_s29 }
  0x80   : > { %p3417_p12 = scmp.lt.u32.totalorder %s3408_s29, %s3706_s9 }
  0x81   : > { %p3412_p7 = pneg %p3411_p5  ;;  %p3416_p10 = por %p3415_p8, %p3414_p13 }
  0x83   : > { %p3418_p0 = por %p3417_p12, %p3416_p10 }
  0x85   : > { %p3419_p3 = pnand %p3418_p0, %p3412_p7 }
  0x87   : > { %3422 = shalt.err (!%p3419_p3)
}
  0x88   : > { %s3423_s17 = scalar_lea.vmem %s273_s16, 16  ;;  %p3990_p1 = pmov %p3989_p4 }
  0x89   : > { %p3424_p6 = scmp.ne.s32.totalorder %s273_s16, %s3423_s17  ;;  %s3490_s18 = smov [#allocation6]  }
  0x8a   : > { %s3428_s19 = sshll.u32 %s3490_s18, 4  ;;  %s3429_s19 = int_to_ptr.vmem [resolvable:$false] %s3428_s19 }
  0x8b   : > { %p3426_p2 = pnand %p3424_p6, %p3990_p1  ;;  %s3430_s1 = scalar_lea.vmem %s3429_s19, 32 }
  0x8c   : > { %p3431_p4 = scmp.lt.s32.totalorder %s273_s16, %s3429_s19  ;;  %p3432_p5 = scmp.lt.s32.totalorder %s3430_s1, %s3423_s17 }
  0x8d   : > { %p3427_p9 = pneg %p3426_p2 }
  0x8e   : > { %p3433_p8 = por %p3432_p5, %p3431_p4 }
  0x90   : > { %p3434_p13 = pnand %p3433_p8, %p3427_p9 }
  0x92   : > { %3437 = shalt.err (!%p3434_p13)
}
  0x93   : > { %3244 = dma.hbm_to_vmem [thread:$0]  (!%p3622_p11), %s3706_s9, 16, %s273_s16, %s3628_s21  }
  0x94   : > { %p3991_p7 = scmp.ne.s32.totalorder %s3979_s27, 0 }
  0x95   : > { %p3992_p10 = scmp.eq.s32.totalorder (!%p3991_p7), %s3548_s25, 0 }
  0x96   : > { %281 = sbr.rel (%p3991_p7) target bundleno = 665 (0x299), region = 44 }
  0x9d   : > { %3455 = dma.done.wait (%p3992_p10), [#allocation3], 128   ;;  %p3993_p12 = pmov %p3992_p10 }
  0x9e   : > { %s287_s15 = sand.u32 1, %s3548_s25   ;;  %s289_s20 = sand.u32 1, %s3472_s22  }
  0x9f   : > { %3457 = vsyncadd (%p3993_p12), [#allocation3], 4294967168  ;;  %s3028_s3 = sshll.u32 %s289_s20, 4  ;;  %s288_s28 = scalar_lea.sflag [#allocation5], %s287_s15 }
  0xa0   : > { %s291_s8 = scalar_lea.vmem [#allocation4], %s3028_s3  ;;  %p3994_p0 = scmp.ne.s32.totalorder %s3978_s26, 0 }
  0xa2   : > { %3459 = dma.done.wait (%p3994_p0), %s288_s28, 272  }
  0xa3   : > { %3461 = vsyncadd (%p3994_p0), %s288_s28, 4294967024  ;;  %s3742_s27 = scalar_lea.vmem [#allocation6], %s289_s20  ;;  %p3995_p11 = pmov %p3992_p10 }
  0xa4   : > { %p3996_p3 = pmov %p3992_p10 }
  0xa5   : > { %3463 = dma.done.wait (%p3995_p11), [#allocation8], 16384  }
  0xa6   : > { %3465 = vsyncadd (%p3996_p3), [#allocation8], 4294950912  ;;  %v3491_v0 = vmov 0.0|0.0   ;;  %vm3492_vm0 = vmmov 0   ;;  %v3493_v1 = vmov 0.0   ;;  %v346_v2 = vld [vmem:[%s291_s8] sm:$0xff] }
  0xa7   : > { %3081 = vmatprep.subr.bf16.mxu0 %v3491_v0  ;;  %3078 = vmatprep.mubr.msk.f32.mxu0 %vm3492_vm0, %v3493_v1  ;;  %v347_v3 = vld [vmem:[%s291_s8 + $0x8] sm:$0xff]  ;;  %vm355_vm1 = vcmask 130048   ;;  %p340_p6 = scmp.lt.s32.totalorder %s3548_s25, 2 }
  0xa8   : > { %561 = vmatprep.mubr.f32.mxu1 %v3493_v1  ;;  %v3082_v4 = vpack.c.bf16 %v347_v3, %v346_v2  ;;  %v345_v5 = vld [vmem:[#allocation2] sm:$0xff]  ;;  %v431_v6 = vld [vmem:[#allocation7 + $0x8] sm:$0xff]  ;;  %v430_v11 = vld [vmem:[#allocation7] sm:$0xff] }
  0xa9   : > { %v463_v7 = vld [vmem:[#allocation7 + $0x108] sm:$0xff]  ;;  %v433_v8 = vld [vmem:[#allocation7 + $0x18] sm:$0xff]  ;;  %v462_v12 = vld [vmem:[#allocation7 + $0x100] sm:$0xff]  ;;  %s4002_s25 = smov (!%p340_p6, %s3548_s25), 2 }
  0xaa   : > { %3083 = vmatpush3.bf16.msra.mxu0 %v3082_v4  ;;  %v3084_v9 = vpack.c.bf16 %v463_v7, %v431_v6  ;;  %v465_v10 = vld [vmem:[#allocation7 + $0x118] sm:$0xff]  ;;  %v3086_v14 = vpack.c.bf16 %v462_v12, %v430_v11  ;;  %v432_v15 = vld [vmem:[#allocation7 + $0x10] sm:$0xff]  ;;  %v435_v18 = vld [vmem:[#allocation7 + $0x28] sm:$0xff]  ;;  %s3070_s9 = sshll.u32 %s4002_s25, 8 }
  0xab   : > { %v3088_v13 = vpack.c.bf16 %v465_v10, %v433_v8  ;;  %v464_v16 = vld [vmem:[#allocation7 + $0x110] sm:$0xff]  ;;  %v467_v19 = vld [vmem:[#allocation7 + $0x128] sm:$0xff]  ;;  %v437_v20 = vld [vmem:[#allocation7 + $0x38] sm:$0xff]  ;;  %s3895_s29 = scalar_lea.vmem %s3966_s6, %s3070_s9 }
  0xac   : > { %3085 = vmatprep.subr.bf16.mxu1 %v3084_v9  ;;  %v3090_v17 = vpack.c.bf16 %v464_v16, %v432_v15  ;;  %v3092_v21 = vpack.c.bf16 %v467_v19, %v435_v18  ;;  %v469_v22 = vld [vmem:[#allocation7 + $0x138] sm:$0xff]  ;;  %v3033_v24 = vld [vmem:[%s3742_s27] ss:$0 sm:$0xff]  ;;  %v434_v25 = vld [vmem:[#allocation7 + $0x20] sm:$0xff] }
  0xad   : > { %3079 = vmatmul.mubr.msk.f32.vlgmr.msra.gmra.mrb[0].mxu0 %vm355_vm1, %v345_v5  ;;  %3089 = vmatprep.subr.bf16.mxu0 %v3088_v13  ;;  %v3096_v23 = vpack.c.bf16 %v469_v22, %v437_v20  ;;  %v466_v26 = vld [vmem:[#allocation7 + $0x120] sm:$0xff]  ;;  %v436_v27 = vld [vmem:[#allocation7 + $0x30] sm:$0xff]  ;;  %v439_v30 = vld [vmem:[#allocation7 + $0x48] sm:$0xff] }
  0xae   : > { %632 = vmatprep.mubr.f32.mxu0 %v3493_v1  ;;  %3087 = vmatpush1.bf16.msra.mxu1 %v3086_v14  ;;  %v468_v28 = vld [vmem:[#allocation7 + $0x130] sm:$0xff]  ;;  %v471_v33 = vld [vmem:[#allocation7 + $0x148] sm:$0xff]  ;;  %v441_v34 = vld [vmem:[#allocation7 + $0x58] sm:$0xff]  ;;  %v3094_v36 = vpack.c.bf16 %v466_v26, %v434_v25 }
  0xaf   : > { %3091 = vmatpush1.bf16.msra.mxu0 %v3090_v17  ;;  %3093 = vmatprep.subr.bf16.mxu1 %v3092_v21  ;;  %v473_v35 = vld [vmem:[#allocation7 + $0x158] sm:$0xff]  ;;  %v3098_v37 = vpack.c.bf16 %v468_v28, %v436_v27  ;;  %v438_v38 = vld [vmem:[#allocation7 + $0x40] sm:$0xff]  ;;  %v440_v41 = vld [vmem:[#allocation7 + $0x50] sm:$0xff]  ;;  %v3100_v43 = vpack.c.bf16 %v471_v33, %v439_v30 }
  0xb0   : > { %3097 = vmatprep.subr.bf16.mxu0 %v3096_v23  ;;  %v470_v40 = vld [vmem:[#allocation7 + $0x140] sm:$0xff]  ;;  %v472_v42 = vld [vmem:[#allocation7 + $0x150] sm:$0xff]  ;;  %v3104_v44 = vpack.c.bf16 %v473_v35, %v441_v34  ;;  %v443_v45 = vld [vmem:[#allocation7 + $0x68] sm:$0xff] }
  0xb1   : > { %v475_v46 = vld [vmem:[#allocation7 + $0x168] sm:$0xff]  ;;  %v445_v47 = vld [vmem:[#allocation7 + $0x78] sm:$0xff]  ;;  %v3102_v49 = vpack.c.bf16 %v470_v40, %v438_v38  ;;  %v3106_v50 = vpack.c.bf16 %v472_v42, %v440_v41  ;;  %v442_v51 = vld [vmem:[#allocation7 + $0x60] sm:$0xff] }
  0xb2   : > { %v477_v48 = vld [vmem:[#allocation7 + $0x178] sm:$0xff]  ;;  %v474_v52 = vld [vmem:[#allocation7 + $0x160] sm:$0xff]  ;;  %v444_v53 = vld [vmem:[#allocation7 + $0x70] sm:$0xff]  ;;  %v3108_v55 = vpack.c.bf16 %v475_v46, %v443_v45 }
  0xb3   : > { %v476_v54 = vld [vmem:[#allocation7 + $0x170] sm:$0xff]  ;;  %v3112_v56 = vpack.c.bf16 %v477_v48, %v445_v47  ;;  %v447_v57 = vld [vmem:[#allocation7 + $0x88] sm:$0xff]  ;;  %v449_v59 = vld [vmem:[#allocation7 + $0x98] sm:$0xff]  ;;  %v3110_v61 = vpack.c.bf16 %v474_v52, %v442_v51 }
  0xb4   : > { %v479_v58 = vld [vmem:[#allocation7 + $0x188] sm:$0xff]  ;;  %v481_v60 = vld [vmem:[#allocation7 + $0x198] sm:$0xff]  ;;  %v3114_v62 = vpack.c.bf16 %v476_v54, %v444_v53  ;;  %v446_v63 = vld [vmem:[#allocation7 + $0x80] sm:$0xff] }
  0xb5   : > { %v478_v0 = vld [vmem:[#allocation7 + $0x180] sm:$0xff]  ;;  %v448_v2 = vld [vmem:[#allocation7 + $0x90] sm:$0xff]  ;;  %v3116_v4 = vpack.c.bf16 %v479_v58, %v447_v57  ;;  %v3120_v5 = vpack.c.bf16 %v481_v60, %v449_v59  ;;  %v451_v6 = vld [vmem:[#allocation7 + $0xa8] sm:$0xff] }
  0xb6   : > { %v480_v3 = vld [vmem:[#allocation7 + $0x190] sm:$0xff]  ;;  %v483_v7 = vld [vmem:[#allocation7 + $0x1a8] sm:$0xff]  ;;  %v453_v8 = vld [vmem:[#allocation7 + $0xb8] sm:$0xff]  ;;  %v3118_v10 = vpack.c.bf16 %v478_v0, %v446_v63 }
  0xb7   : > { %v485_v9 = vld [vmem:[#allocation7 + $0x1b8] sm:$0xff]  ;;  %v3122_v11 = vpack.c.bf16 %v480_v3, %v448_v2  ;;  %v450_v12 = vld [vmem:[#allocation7 + $0xa0] sm:$0xff]  ;;  %v452_v14 = vld [vmem:[#allocation7 + $0xb0] sm:$0xff]  ;;  %v3124_v16 = vpack.c.bf16 %v483_v7, %v451_v6 }
  0xb8   : > { %v482_v13 = vld [vmem:[#allocation7 + $0x1a0] sm:$0xff]  ;;  %v484_v15 = vld [vmem:[#allocation7 + $0x1b0] sm:$0xff]  ;;  %v3128_v17 = vpack.c.bf16 %v485_v9, %v453_v8  ;;  %v455_v18 = vld [vmem:[#allocation7 + $0xc8] sm:$0xff] }
  0xb9   : > { %v487_v19 = vld [vmem:[#allocation7 + $0x1c8] sm:$0xff]  ;;  %v457_v20 = vld [vmem:[#allocation7 + $0xd8] sm:$0xff]  ;;  %v3126_v22 = vpack.c.bf16 %v482_v13, %v450_v12  ;;  %v3130_v23 = vpack.c.bf16 %v484_v15, %v452_v14  ;;  %v486_v25 = vld [vmem:[#allocation7 + $0x1c0] sm:$0xff] }
  0xba   : > { %v489_v21 = vld [vmem:[#allocation7 + $0x1d8] sm:$0xff]  ;;  %v456_v26 = vld [vmem:[#allocation7 + $0xd0] sm:$0xff]  ;;  %v3132_v28 = vpack.c.bf16 %v487_v19, %v455_v18  ;;  %v459_v30 = vld [vmem:[#allocation7 + $0xe8] sm:$0xff] }
  0xbb   : > { %v488_v27 = vld [vmem:[#allocation7 + $0x1d0] sm:$0xff]  ;;  %v493_v33 = vld [vmem:[#allocation7 + $0x1f8] sm:$0xff]  ;;  %v1674_v12 = vld [vmem:[#allocation9 + $0x140] sm:$0xff] }
  0xbc   : > { %v3138_v35 = vpack.c.bf16 %v488_v27, %v456_v26  ;;  %v460_v38 = vld [vmem:[#allocation7 + $0xf0] sm:$0xff]  ;;  %v1637_v45 = vld [vmem:[#allocation9 + $0x18] sm:$0xff] }
  0xbd   : > { %v492_v40 = vld [vmem:[#allocation7 + $0x1f0] sm:$0xff]  ;;  %v1669_v46 = vld [vmem:[#allocation9 + $0x118] sm:$0xff] }
  0xbe   : > { %v3146_v48 = vpack.c.bf16 %v492_v40, %v460_v38  ;;  %v1636_v51 = vld [vmem:[#allocation9 + $0x10] sm:$0xff]  ;;  %v3152_v54 = vpack.c.bf16 %v1669_v46, %v1637_v45  ;;  %v1641_v57 = vld [vmem:[#allocation9 + $0x38] sm:$0xff] }
  0xbf   : > { %v1668_v52 = vld [vmem:[#allocation9 + $0x110] sm:$0xff]  ;;  %v1673_v58 = vld [vmem:[#allocation9 + $0x138] sm:$0xff] }
  0xc0   : > { %v3154_v60 = vpack.c.bf16 %v1668_v52, %v1636_v51  ;;  %v1640_v63 = vld [vmem:[#allocation9 + $0x30] sm:$0xff]  ;;  %v3160_v3 = vpack.c.bf16 %v1673_v58, %v1641_v57  ;;  %v1645_v6 = vld [vmem:[#allocation9 + $0x58] sm:$0xff] }
  0xc1   : > { %v1672_v0 = vld [vmem:[#allocation9 + $0x130] sm:$0xff]  ;;  %v1677_v7 = vld [vmem:[#allocation9 + $0x158] sm:$0xff] }
  0xc2   : > { %v3804_v8 = vld [vmem:[%s3964_s4] sm:$0xff]  ;;  %v3168_v15 = vpack.c.bf16 %v1677_v7, %v1645_v6 }
  0xc3   : > { %v1644_v13 = vld [vmem:[#allocation9 + $0x50] sm:$0xff]  ;;  %v1649_v18 = vld [vmem:[#allocation9 + $0x78] sm:$0xff] }
  0xc4   : > { %v1681_v19 = vld [vmem:[#allocation9 + $0x178] sm:$0xff] }
  0xc5   : > { %v3176_v27 = vpack.c.bf16 %v1681_v19, %v1649_v18 }
 0x180   : > { %v425_v29 = vpop.f32.mrb[0].mxu0 }
 0x181   : > { %v426_v31 = vadd.f32 %v3033_v24, %v425_v29  ;;  %v3080_v32 = vpop.f32.mrb[1].mxu0  ;;  %v454_v24 = vld [vmem:[#allocation7 + $0xc0] sm:$0xff]  ;;  %v3136_v29 = vpack.c.bf16 %v489_v21, %v457_v20 }
 0x182   : > { %v461_v32 = vld [vmem:[#allocation7 + $0xf8] sm:$0xff]  ;;  %v3134_v34 = vpack.c.bf16 %v486_v25, %v454_v24  ;;  %v1648_v24 = vld [vmem:[#allocation9 + $0x70] sm:$0xff] }
 0x183   : > { %v3753_v39 = vmax.f32 %v426_v31, 0.0  ;;  %v491_v31 = vld [vmem:[#allocation7 + $0x1e8] sm:$0xff]  ;;  %v3144_v42 = vpack.c.bf16 %v493_v33, %v461_v32  ;;  %v1680_v25 = vld [vmem:[#allocation9 + $0x170] sm:$0xff] }
 0x184   : > { %v3140_v41 = vpack.c.bf16 %v491_v31, %v459_v30  ;;  %v1653_v30 = vld [vmem:[#allocation9 + $0x98] sm:$0xff]  ;;  %v3178_v33 = vpack.c.bf16 %v1680_v25, %v1648_v24 }
 0x185   : > { %3035 = vmatmul.mubr.msk.f32.vlgmr.msra.gmra.mrb[0].mxu1 %vm355_vm1, %v3753_v39  ;;  %3036 = vmatmul.mubr.msk.f32.vlgmr.msra.gmra.mrb[2].mxu0 %vm355_vm1, %v3753_v39  ;;  %v1685_v31 = vld [vmem:[#allocation9 + $0x198] sm:$0xff] }
 0x186   : > { %3095 = vmatpush1.bf16.msra.mxu1 %v3094_v36  ;;  %3099 = vmatpush1.bf16.msra.mxu0 %v3098_v37  ;;  %v458_v36 = vld [vmem:[#allocation7 + $0xe0] sm:$0xff]  ;;  %v3184_v40 = vpack.c.bf16 %v1685_v31, %v1653_v30 }
 0x187   : > { %703 = vmatprep.mubr.f32.mxu1 %v3493_v1  ;;  %774 = vmatprep.mubr.f32.mxu0 %v3493_v1  ;;  %v490_v37 = vld [vmem:[#allocation7 + $0x1e0] sm:$0xff] }
 0x188   : > { %3101 = vmatprep.subr.bf16.mxu1 %v3100_v43  ;;  %3105 = vmatprep.subr.bf16.mxu0 %v3104_v44  ;;  %v1635_v43 = vld [vmem:[#allocation9 + $0x8] sm:$0xff]  ;;  %v3142_v47 = vpack.c.bf16 %v490_v37, %v458_v36  ;;  %v1652_v36 = vld [vmem:[#allocation9 + $0x90] sm:$0xff] }
 0x189   : > { %3037 = vmatmul.mubr.msk.f32.vlgmr.msra.gmra.mrb[2].mxu1 %vm355_vm1, %v3753_v39  ;;  %3038 = vmatmul.mubr.msk.f32.vlgmr.msra.gmra.mrb[4].mxu0 %vm355_vm1, %v3753_v39  ;;  %v1667_v44 = vld [vmem:[#allocation9 + $0x108] sm:$0xff]  ;;  %v1684_v37 = vld [vmem:[#allocation9 + $0x190] sm:$0xff] }
 0x18a   : > { %3103 = vmatpush1.bf16.msra.mxu1 %v3102_v49  ;;  %3107 = vmatpush1.bf16.msra.mxu0 %v3106_v50  ;;  %v1634_v49 = vld [vmem:[#allocation9] sm:$0xff]  ;;  %v3148_v53 = vpack.c.bf16 %v1667_v44, %v1635_v43  ;;  %v1657_v43 = vld [vmem:[#allocation9 + $0xb8] sm:$0xff]  ;;  %v3186_v46 = vpack.c.bf16 %v1684_v37, %v1652_v36 }
 0x18b   : > { %845 = vmatprep.mubr.f32.mxu1 %v3493_v1  ;;  %916 = vmatprep.mubr.f32.mxu0 %v3493_v1  ;;  %v1666_v50 = vld [vmem:[#allocation9 + $0x100] sm:$0xff]  ;;  %v1689_v44 = vld [vmem:[#allocation9 + $0x1b8] sm:$0xff] }
 0x18c   : > { %3109 = vmatprep.subr.bf16.mxu1 %v3108_v55  ;;  %3113 = vmatprep.subr.bf16.mxu0 %v3112_v56  ;;  %v1639_v55 = vld [vmem:[#allocation9 + $0x28] sm:$0xff]  ;;  %v3150_v59 = vpack.c.bf16 %v1666_v50, %v1634_v49  ;;  %v1656_v49 = vld [vmem:[#allocation9 + $0xb0] sm:$0xff]  ;;  %v3192_v52 = vpack.c.bf16 %v1689_v44, %v1657_v43 }
 0x18d   : > { %3039 = vmatmul.mubr.msk.f32.vlgmr.msra.gmra.mrb[4].mxu1 %vm355_vm1, %v3753_v39  ;;  %3040 = vmatmul.mubr.msk.f32.vlgmr.msra.gmra.mrb[6].mxu0 %vm355_vm1, %v3753_v39  ;;  %v1671_v56 = vld [vmem:[#allocation9 + $0x128] sm:$0xff]  ;;  %v1688_v50 = vld [vmem:[#allocation9 + $0x1b0] sm:$0xff] }
 0x18e   : > { %3111 = vmatpush1.bf16.msra.mxu1 %v3110_v61  ;;  %3115 = vmatpush1.bf16.msra.mxu0 %v3114_v62  ;;  %v1638_v61 = vld [vmem:[#allocation9 + $0x20] sm:$0xff]  ;;  %v3156_v2 = vpack.c.bf16 %v1671_v56, %v1639_v55  ;;  %v1661_v55 = vld [vmem:[#allocation9 + $0xd8] sm:$0xff]  ;;  %v3194_v58 = vpack.c.bf16 %v1688_v50, %v1656_v49 }
 0x18f   : > { %987 = vmatprep.mubr.f32.mxu1 %v3493_v1  ;;  %1058 = vmatprep.mubr.f32.mxu0 %v3493_v1  ;;  %v1670_v62 = vld [vmem:[#allocation9 + $0x120] sm:$0xff]  ;;  %v1693_v56 = vld [vmem:[#allocation9 + $0x1d8] sm:$0xff] }
 0x190   : > { %3117 = vmatprep.subr.bf16.mxu1 %v3116_v4  ;;  %3121 = vmatprep.subr.bf16.mxu0 %v3120_v5  ;;  %v1643_v4 = vld [vmem:[#allocation9 + $0x48] sm:$0xff]  ;;  %v3158_v9 = vpack.c.bf16 %v1670_v62, %v1638_v61  ;;  %v1660_v61 = vld [vmem:[#allocation9 + $0xd0] sm:$0xff] }
 0x191   : > { %3041 = vmatmul.mubr.msk.f32.vlgmr.msra.gmra.mrb[6].mxu1 %vm355_vm1, %v3753_v39  ;;  %3042 = vmatmul.mubr.msk.f32.vlgmr.msra.gmra.mrb[8].mxu0 %vm355_vm1, %v3753_v39  ;;  %v1675_v5 = vld [vmem:[#allocation9 + $0x148] sm:$0xff]  ;;  %v1692_v62 = vld [vmem:[#allocation9 + $0x1d0] sm:$0xff] }
 0x192   : > { %3119 = vmatpush1.bf16.msra.mxu1 %v3118_v10  ;;  %3123 = vmatpush1.bf16.msra.mxu0 %v3122_v11  ;;  %v3162_v10 = vpack.c.bf16 %v1672_v0, %v1640_v63  ;;  %v1642_v11 = vld [vmem:[#allocation9 + $0x40] sm:$0xff]  ;;  %v3164_v14 = vpack.c.bf16 %v1675_v5, %v1643_v4  ;;  %v3200_v0 = vpack.c.bf16 %v1693_v56, %v1661_v55  ;;  %v1665_v4 = vld [vmem:[#allocation9 + $0xf8] sm:$0xff] }
 0x193   : > { %1129 = vmatprep.mubr.f32.mxu1 %v3493_v1  ;;  %1200 = vmatprep.mubr.f32.mxu0 %v3493_v1  ;;  %v3166_v20 = vpack.c.bf16 %v1674_v12, %v1642_v11  ;;  %v1697_v5 = vld [vmem:[#allocation9 + $0x1f8] sm:$0xff]  ;;  %v3202_v7 = vpack.c.bf16 %v1692_v62, %v1660_v61  ;;  %v1664_v11 = vld [vmem:[#allocation9 + $0xf0] sm:$0xff] }
 0x194   : > { %3125 = vmatprep.subr.bf16.mxu1 %v3124_v16  ;;  %3129 = vmatprep.subr.bf16.mxu0 %v3128_v17  ;;  %v1647_v16 = vld [vmem:[#allocation9 + $0x68] sm:$0xff]  ;;  %v1696_v12 = vld [vmem:[#allocation9 + $0x1f0] sm:$0xff] }
 0x195   : > { %3043 = vmatmul.mubr.msk.f32.vlgmr.msra.gmra.mrb[8].mxu1 %vm355_vm1, %v3753_v39  ;;  %3044 = vmatmul.mubr.msk.f32.vlgmr.msra.gmra.mrb[10].mxu0 %vm355_vm1, %v3753_v39  ;;  %v1679_v17 = vld [vmem:[#allocation9 + $0x168] sm:$0xff] }
 0x196   : > { %3127 = vmatpush1.bf16.msra.mxu1 %v3126_v22  ;;  %3131 = vmatpush1.bf16.msra.mxu0 %v3130_v23  ;;  %v1646_v22 = vld [vmem:[#allocation9 + $0x60] sm:$0xff]  ;;  %v3172_v26 = vpack.c.bf16 %v1679_v17, %v1647_v16 }
 0x197   : > { %1271 = vmatprep.mubr.f32.mxu1 %v3493_v1  ;;  %1342 = vmatprep.mubr.f32.mxu0 %v3493_v1  ;;  %v1678_v23 = vld [vmem:[#allocation9 + $0x160] sm:$0xff] }
 0x198   : > { %3133 = vmatprep.subr.bf16.mxu1 %v3132_v28  ;;  %3137 = vmatprep.subr.bf16.mxu0 %v3136_v29  ;;  %v1651_v28 = vld [vmem:[#allocation9 + $0x88] sm:$0xff]  ;;  %v3174_v32 = vpack.c.bf16 %v1678_v23, %v1646_v22 }
 0x199   : > { %3045 = vmatmul.mubr.msk.f32.vlgmr.msra.gmra.mrb[10].mxu1 %vm355_vm1, %v3753_v39  ;;  %3046 = vmatmul.mubr.msk.f32.vlgmr.msra.gmra.mrb[12].mxu0 %vm355_vm1, %v3753_v39  ;;  %v1683_v29 = vld [vmem:[#allocation9 + $0x188] sm:$0xff] }
 0x19a   : > { %3135 = vmatpush1.bf16.msra.mxu1 %v3134_v34  ;;  %3139 = vmatpush1.bf16.msra.mxu0 %v3138_v35  ;;  %v1650_v34 = vld [vmem:[#allocation9 + $0x80] sm:$0xff]  ;;  %v3180_v38 = vpack.c.bf16 %v1683_v29, %v1651_v28 }
 0x19b   : > { %1413 = vmatprep.mubr.f32.mxu1 %v3493_v1  ;;  %1484 = vmatprep.mubr.f32.mxu0 %v3493_v1  ;;  %v1682_v35 = vld [vmem:[#allocation9 + $0x180] sm:$0xff] }
 0x19c   : > { %3141 = vmatprep.subr.bf16.mxu1 %v3140_v41  ;;  %3145 = vmatprep.subr.bf16.mxu0 %v3144_v42  ;;  %v1655_v41 = vld [vmem:[#allocation9 + $0xa8] sm:$0xff]  ;;  %v3182_v45 = vpack.c.bf16 %v1682_v35, %v1650_v34 }
 0x19d   : > { %3047 = vmatmul.mubr.msk.f32.vlgmr.msra.gmra.mrb[12].mxu1 %vm355_vm1, %v3753_v39  ;;  %3048 = vmatmul.mubr.msk.f32.vlgmr.msra.gmra.mrb[14].mxu0 %vm355_vm1, %v3753_v39  ;;  %v1687_v42 = vld [vmem:[#allocation9 + $0x1a8] sm:$0xff] }
 0x19e   : > { %3143 = vmatpush1.bf16.msra.mxu1 %v3142_v47  ;;  %3147 = vmatpush1.bf16.msra.mxu0 %v3146_v48  ;;  %v1654_v47 = vld [vmem:[#allocation9 + $0xa0] sm:$0xff]  ;;  %v3188_v51 = vpack.c.bf16 %v1687_v42, %v1655_v41 }
 0x19f   : > { %1555 = vmatprep.mubr.f32.mxu1 %v3493_v1  ;;  %1626 = vmatprep.mubr.f32.mxu0 %v3493_v1  ;;  %v1686_v48 = vld [vmem:[#allocation9 + $0x1a0] sm:$0xff] }
 0x1a0   : > { %3149 = vmatprep.subr.bf16.mxu1 %v3148_v53  ;;  %3153 = vmatprep.subr.bf16.mxu0 %v3152_v54  ;;  %v1659_v53 = vld [vmem:[#allocation9 + $0xc8] sm:$0xff]  ;;  %v3190_v57 = vpack.c.bf16 %v1686_v48, %v1654_v47 }
 0x1a1   : > { %3049 = vmatmul.mubr.msk.f32.vlgmr.msra.gmra.mrb[14].mxu1 %vm355_vm1, %v3753_v39  ;;  %3050 = vmatmul.mubr.msk.f32.vlgmr.msra.gmra.mrb[16].mxu0 %vm355_vm1, %v3753_v39  ;;  %v1676_v39 = vld [vmem:[#allocation9 + $0x150] sm:$0xff]  ;;  %v1691_v54 = vld [vmem:[#allocation9 + $0x1c8] sm:$0xff] }
 0x1a2   : > { %3151 = vmatpush1.bf16.msra.mxu1 %v3150_v59  ;;  %3155 = vmatpush1.bf16.msra.mxu0 %v3154_v60  ;;  %v3170_v21 = vpack.c.bf16 %v1676_v39, %v1644_v13  ;;  %v1658_v59 = vld [vmem:[#allocation9 + $0xc0] sm:$0xff]  ;;  %v3196_v63 = vpack.c.bf16 %v1691_v54, %v1659_v53  ;;  %v3208_v39 = vpack.c.bf16 %v1697_v5, %v1665_v4 }
 0x1a3   : > { %1765 = vmatprep.mubr.f32.mxu1 %v3493_v1  ;;  %1836 = vmatprep.mubr.f32.mxu0 %v3493_v1  ;;  %v1690_v60 = vld [vmem:[#allocation9 + $0x1c0] sm:$0xff] }
 0x1a4   : > { %3157 = vmatprep.subr.bf16.mxu1 %v3156_v2  ;;  %3161 = vmatprep.subr.bf16.mxu0 %v3160_v3  ;;  %v1663_v2 = vld [vmem:[#allocation9 + $0xe8] sm:$0xff]  ;;  %v3198_v6 = vpack.c.bf16 %v1690_v60, %v1658_v59 }
 0x1a5   : > { %3051 = vmatmul.mubr.msk.f32.vlgmr.msra.gmra.mrb[16].mxu1 %vm355_vm1, %v3804_v8  ;;  %3052 = vmatmul.mubr.msk.f32.vlgmr.msra.gmra.mrb[18].mxu0 %vm355_vm1, %v3804_v8  ;;  %v1695_v3 = vld [vmem:[#allocation9 + $0x1e8] sm:$0xff] }
 0x1a6   : > { %3159 = vmatpush1.bf16.msra.mxu1 %v3158_v9  ;;  %3163 = vmatpush1.bf16.msra.mxu0 %v3162_v10  ;;  %v1662_v9 = vld [vmem:[#allocation9 + $0xe0] sm:$0xff]  ;;  %v3204_v13 = vpack.c.bf16 %v1695_v3, %v1663_v2 }
 0x1a7   : > { %1907 = vmatprep.mubr.f32.mxu1 %v3493_v1  ;;  %1978 = vmatprep.mubr.f32.mxu0 %v3493_v1  ;;  %v1694_v10 = vld [vmem:[#allocation9 + $0x1e0] sm:$0xff] }
 0x1a8   : > { %3165 = vmatprep.subr.bf16.mxu1 %v3164_v14  ;;  %3169 = vmatprep.subr.bf16.mxu0 %v3168_v15  ;;  %v3206_v14 = vpack.c.bf16 %v1694_v10, %v1662_v9  ;;  %v3210_v15 = vpack.c.bf16 %v1696_v12, %v1664_v11 }
 0x1a9   : > { %3053 = vmatmul.mubr.msk.f32.vlgmr.msra.gmra.mrb[18].mxu1 %vm355_vm1, %v3804_v8  ;;  %3054 = vmatmul.mubr.msk.f32.vlgmr.msra.gmra.mrb[20].mxu0 %vm355_vm1, %v3804_v8 }
 0x1aa   : > { %3167 = vmatpush1.bf16.msra.mxu1 %v3166_v20  ;;  %3171 = vmatpush1.bf16.msra.mxu0 %v3170_v21 }
 0x1ab   : > { %2049 = vmatprep.mubr.f32.mxu1 %v3493_v1  ;;  %2120 = vmatprep.mubr.f32.mxu0 %v3493_v1 }
 0x1ac   : > { %3173 = vmatprep.subr.bf16.mxu1 %v3172_v26  ;;  %3177 = vmatprep.subr.bf16.mxu0 %v3176_v27 }
 0x1ad   : > { %3055 = vmatmul.mubr.msk.f32.vlgmr.msra.gmra.mrb[20].mxu1 %vm355_vm1, %v3804_v8  ;;  %3056 = vmatmul.mubr.msk.f32.vlgmr.msra.gmra.mrb[22].mxu0 %vm355_vm1, %v3804_v8 }
 0x1ae   : > { %3175 = vmatpush1.bf16.msra.mxu1 %v3174_v32  ;;  %3179 = vmatpush1.bf16.msra.mxu0 %v3178_v33 }
 0x1af   : > { %2191 = vmatprep.mubr.f32.mxu1 %v3493_v1  ;;  %2262 = vmatprep.mubr.f32.mxu0 %v3493_v1 }
 0x1b0   : > { %3181 = vmatprep.subr.bf16.mxu1 %v3180_v38  ;;  %3185 = vmatprep.subr.bf16.mxu0 %v3184_v40 }
 0x1b1   : > { %3057 = vmatmul.mubr.msk.f32.vlgmr.msra.gmra.mrb[22].mxu1 %vm355_vm1, %v3804_v8  ;;  %3058 = vmatmul.mubr.msk.f32.vlgmr.msra.gmra.mrb[24].mxu0 %vm355_vm1, %v3804_v8 }
 0x1b2   : > { %3183 = vmatpush1.bf16.msra.mxu1 %v3182_v45  ;;  %3187 = vmatpush1.bf16.msra.mxu0 %v3186_v46 }
 0x1b3   : > { %2333 = vmatprep.mubr.f32.mxu1 %v3493_v1  ;;  %2404 = vmatprep.mubr.f32.mxu0 %v3493_v1 }
 0x1b4   : > { %3189 = vmatprep.subr.bf16.mxu1 %v3188_v51  ;;  %3193 = vmatprep.subr.bf16.mxu0 %v3192_v52 }
 0x1b5   : > { %3059 = vmatmul.mubr.msk.f32.vlgmr.msra.gmra.mrb[24].mxu1 %vm355_vm1, %v3804_v8  ;;  %3060 = vmatmul.mubr.msk.f32.vlgmr.msra.gmra.mrb[26].mxu0 %vm355_vm1, %v3804_v8 }
 0x1b6   : > { %3191 = vmatpush1.bf16.msra.mxu1 %v3190_v57  ;;  %3195 = vmatpush1.bf16.msra.mxu0 %v3194_v58 }
 0x1b7   : > { %2475 = vmatprep.mubr.f32.mxu1 %v3493_v1  ;;  %2546 = vmatprep.mubr.f32.mxu0 %v3493_v1 }
 0x1b8   : > { %3197 = vmatprep.subr.bf16.mxu1 %v3196_v63  ;;  %3201 = vmatprep.subr.bf16.mxu0 %v3200_v0 }
 0x1b9   : > { %3061 = vmatmul.mubr.msk.f32.vlgmr.msra.gmra.mrb[26].mxu1 %vm355_vm1, %v3804_v8  ;;  %3062 = vmatmul.mubr.msk.f32.vlgmr.msra.gmra.mrb[28].mxu0 %vm355_vm1, %v3804_v8 }
 0x1ba   : > { %3199 = vmatpush1.bf16.msra.mxu1 %v3198_v6  ;;  %3203 = vmatpush1.bf16.msra.mxu0 %v3202_v7 }
 0x1bb   : > { %2617 = vmatprep.mubr.f32.mxu1 %v3493_v1  ;;  %2688 = vmatprep.mubr.f32.mxu0 %v3493_v1 }
 0x1bc   : > { %3205 = vmatprep.subr.bf16.mxu1 %v3204_v13  ;;  %3209 = vmatprep.subr.bf16.mxu0 %v3208_v39 }
 0x1bd   : > { %3063 = vmatmul.mubr.msk.f32.vlgmr.msra.gmra.mrb[28].mxu1 %vm355_vm1, %v3804_v8  ;;  %3064 = vmatmul.mubr.msk.f32.vlgmr.msra.gmra.mrb[30].mxu0 %vm355_vm1, %v3804_v8 }
 0x1be   : > { %3207 = vmatpush1.bf16.msra.mxu1 %v3206_v14  ;;  %3211 = vmatpush1.bf16.msra.mxu0 %v3210_v15 }
 0x1bf   : > { %2759 = vmatprep.mubr.f32.mxu1 %v3493_v1  ;;  %2830 = vmatprep.mubr.f32.mxu0 %v3493_v1 }
 0x1c1   : > { %3065 = vmatmul.mubr.msk.f32.vlgmr.msra.gmra.mrb[30].mxu1 %vm355_vm1, %v3804_v8  ;;  %3066 = vmatmul.mubr.msk.f32.vlgmr.msra.gmra.mrb[32].mxu0 %vm355_vm1, %v3804_v8 }
 0x258   : > { %v563_v16 = vpop.f32.mrb[0].mxu1  ;;  %v634_v17 = vpop.f32.mrb[2].mxu0 }
 0x259   : > { %v565_v18 = vpop.f32.mrb[1].mxu1  ;;  %v636_v19 = vpop.f32.mrb[3].mxu0 }
 0x25c   : > { %v705_v20 = vpop.f32.mrb[2].mxu1  ;;  %v776_v21 = vpop.f32.mrb[4].mxu0 }
 0x25d   : > { %v707_v22 = vpop.f32.mrb[3].mxu1  ;;  %v778_v23 = vpop.f32.mrb[5].mxu0 }
 0x260   : > { %v847_v24 = vpop.f32.mrb[4].mxu1  ;;  %v918_v25 = vpop.f32.mrb[6].mxu0 }
 0x261   : > { %v849_v26 = vpop.f32.mrb[5].mxu1  ;;  %v920_v27 = vpop.f32.mrb[7].mxu0 }
 0x264   : > { %v989_v1 = vpop.f32.mrb[6].mxu1  ;;  %v1060_v28 = vpop.f32.mrb[8].mxu0 }
 0x265   : > { %v3854_v29 = vpop.f32.mrb[7].mxu1  ;;  %v3856_v30 = vpop.f32.mrb[9].mxu0 }
 0x268   : > { %v3858_v8 = vpop.f32.mrb[8].mxu1  ;;  %v3860_v31 = vpop.f32.mrb[10].mxu0 }
 0x269   : > { %v3862_v32 = vpop.f32.mrb[9].mxu1  ;;  %v3864_v33 = vpop.f32.mrb[11].mxu0 }
 0x26c   : > { %v3866_v34 = vpop.f32.mrb[10].mxu1  ;;  %v3868_v35 = vpop.f32.mrb[12].mxu0 }
 0x26d   : > { %v3870_v36 = vpop.f32.mrb[11].mxu1  ;;  %v3872_v37 = vpop.f32.mrb[13].mxu0 }
 0x270   : > { %v3875_v38 = vpop.f32.mrb[12].mxu1  ;;  %v3877_v40 = vpop.f32.mrb[14].mxu0 }
 0x271   : > { %v3879_v41 = vpop.f32.mrb[13].mxu1  ;;  %v3881_v42 = vpop.f32.mrb[15].mxu0 }
 0x274   : > { %v3884_v43 = vpop.f32.mrb[14].mxu1  ;;  %v3886_v44 = vpop.f32.mrb[16].mxu0 }
 0x275   : > { %v3888_v45 = vpop.f32.mrb[15].mxu1  ;;  %v3890_v46 = vpop.f32.mrb[17].mxu0 }
 0x278   : > { %v1767_v47 = vpop.f32.mrb[16].mxu1  ;;  %v1838_v48 = vpop.f32.mrb[18].mxu0 }
 0x279   : > { %v2837_v49 = vmul.f32 %v1767_v47, %v563_v16  ;;  %v2839_v50 = vmul.f32 %v1838_v48, %v634_v17  ;;  %v1769_v51 = vpop.f32.mrb[17].mxu1  ;;  %v1840_v52 = vpop.f32.mrb[19].mxu0 }
 0x27a   : > { %v2838_v53 = vmul.f32 %v1769_v51, %v565_v18  ;;  %v2840_v54 = vmul.f32 %v1840_v52, %v636_v19 }
 0x27b   : > { %2869 = vst [vmem:[%s3895_s29] sm:$0xff] %v2837_v49  ;;  %2871 = vst [vmem:[%s3895_s29 + $0x10] sm:$0xff] %v2839_v50 }
 0x27c   : > { %2870 = vst [vmem:[%s3895_s29 + $0x8] sm:$0xff] %v2838_v53  ;;  %2872 = vst [vmem:[%s3895_s29 + $0x18] sm:$0xff] %v2840_v54  ;;  %v1909_v55 = vpop.f32.mrb[18].mxu1  ;;  %v1980_v56 = vpop.f32.mrb[20].mxu0 }
 0x27d   : > { %v2841_v57 = vmul.f32 %v1909_v55, %v705_v20  ;;  %v2843_v58 = vmul.f32 %v1980_v56, %v776_v21  ;;  %v1911_v59 = vpop.f32.mrb[19].mxu1  ;;  %v1982_v60 = vpop.f32.mrb[21].mxu0 }
 0x27e   : > { %v2842_v61 = vmul.f32 %v1911_v59, %v707_v22  ;;  %v2844_v62 = vmul.f32 %v1982_v60, %v778_v23 }
 0x27f   : > { %2873 = vst [vmem:[%s3895_s29 + $0x20] sm:$0xff] %v2841_v57  ;;  %2875 = vst [vmem:[%s3895_s29 + $0x30] sm:$0xff] %v2843_v58 }
 0x280   : > { %2874 = vst [vmem:[%s3895_s29 + $0x28] sm:$0xff] %v2842_v61  ;;  %2876 = vst [vmem:[%s3895_s29 + $0x38] sm:$0xff] %v2844_v62  ;;  %v2051_v63 = vpop.f32.mrb[20].mxu1  ;;  %v2122_v0 = vpop.f32.mrb[22].mxu0 }
 0x281   : > { %v2845_v2 = vmul.f32 %v2051_v63, %v847_v24  ;;  %v2847_v3 = vmul.f32 %v2122_v0, %v918_v25  ;;  %v2053_v4 = vpop.f32.mrb[21].mxu1  ;;  %v2124_v5 = vpop.f32.mrb[23].mxu0 }
 0x282   : > { %v2846_v6 = vmul.f32 %v2053_v4, %v849_v26  ;;  %v2848_v7 = vmul.f32 %v2124_v5, %v920_v27 }
 0x283   : > { %2877 = vst [vmem:[%s3895_s29 + $0x40] sm:$0xff] %v2845_v2  ;;  %2879 = vst [vmem:[%s3895_s29 + $0x50] sm:$0xff] %v2847_v3 }
 0x284   : > { %2878 = vst [vmem:[%s3895_s29 + $0x48] sm:$0xff] %v2846_v6  ;;  %2880 = vst [vmem:[%s3895_s29 + $0x58] sm:$0xff] %v2848_v7  ;;  %v2193_v9 = vpop.f32.mrb[22].mxu1  ;;  %v2264_v10 = vpop.f32.mrb[24].mxu0 }
 0x285   : > { %v2849_v11 = vmul.f32 %v2193_v9, %v989_v1  ;;  %v2851_v12 = vmul.f32 %v2264_v10, %v1060_v28  ;;  %v2195_v13 = vpop.f32.mrb[23].mxu1  ;;  %v2266_v39 = vpop.f32.mrb[25].mxu0 }
 0x286   : > { %v2850_v14 = vmul.f32 %v2195_v13, %v3854_v29  ;;  %v2852_v15 = vmul.f32 %v2266_v39, %v3856_v30 }
 0x287   : > { %2881 = vst [vmem:[%s3895_s29 + $0x60] sm:$0xff] %v2849_v11  ;;  %2883 = vst [vmem:[%s3895_s29 + $0x70] sm:$0xff] %v2851_v12 }
 0x288   : > { %2882 = vst [vmem:[%s3895_s29 + $0x68] sm:$0xff] %v2850_v14  ;;  %2884 = vst [vmem:[%s3895_s29 + $0x78] sm:$0xff] %v2852_v15  ;;  %v2335_v16 = vpop.f32.mrb[24].mxu1  ;;  %v2406_v17 = vpop.f32.mrb[26].mxu0 }
 0x289   : > { %v2853_v18 = vmul.f32 %v2335_v16, %v3858_v8  ;;  %v2855_v19 = vmul.f32 %v2406_v17, %v3860_v31  ;;  %v2337_v20 = vpop.f32.mrb[25].mxu1  ;;  %v2408_v21 = vpop.f32.mrb[27].mxu0 }
 0x28a   : > { %v2854_v22 = vmul.f32 %v2337_v20, %v3862_v32  ;;  %v2856_v23 = vmul.f32 %v2408_v21, %v3864_v33 }
 0x28b   : > { %2885 = vst [vmem:[%s3895_s29 + $0x80] sm:$0xff] %v2853_v18  ;;  %2887 = vst [vmem:[%s3895_s29 + $0x90] sm:$0xff] %v2855_v19 }
 0x28c   : > { %2886 = vst [vmem:[%s3895_s29 + $0x88] sm:$0xff] %v2854_v22  ;;  %2888 = vst [vmem:[%s3895_s29 + $0x98] sm:$0xff] %v2856_v23  ;;  %v2477_v24 = vpop.f32.mrb[26].mxu1  ;;  %v2548_v25 = vpop.f32.mrb[28].mxu0 }
 0x28d   : > { %v2857_v26 = vmul.f32 %v2477_v24, %v3866_v34  ;;  %v2859_v27 = vmul.f32 %v2548_v25, %v3868_v35  ;;  %v2479_v1 = vpop.f32.mrb[27].mxu1  ;;  %v2550_v28 = vpop.f32.mrb[29].mxu0 }
 0x28e   : > { %v2858_v29 = vmul.f32 %v2479_v1, %v3870_v36  ;;  %v2860_v30 = vmul.f32 %v2550_v28, %v3872_v37 }
 0x28f   : > { %2889 = vst [vmem:[%s3895_s29 + $0xa0] sm:$0xff] %v2857_v26  ;;  %2891 = vst [vmem:[%s3895_s29 + $0xb0] sm:$0xff] %v2859_v27 }
 0x290   : > { %2890 = vst [vmem:[%s3895_s29 + $0xa8] sm:$0xff] %v2858_v29  ;;  %2892 = vst [vmem:[%s3895_s29 + $0xb8] sm:$0xff] %v2860_v30  ;;  %v2619_v8 = vpop.f32.mrb[28].mxu1  ;;  %v2690_v31 = vpop.f32.mrb[30].mxu0 }
 0x291   : > { %v2861_v32 = vmul.f32 %v2619_v8, %v3875_v38  ;;  %v2863_v33 = vmul.f32 %v2690_v31, %v3877_v40  ;;  %v2621_v34 = vpop.f32.mrb[29].mxu1  ;;  %v2692_v35 = vpop.f32.mrb[31].mxu0 }
 0x292   : > { %v2862_v36 = vmul.f32 %v2621_v34, %v3879_v41  ;;  %v2864_v37 = vmul.f32 %v2692_v35, %v3881_v42 }
 0x293   : > { %2893 = vst [vmem:[%s3895_s29 + $0xc0] sm:$0xff] %v2861_v32  ;;  %2895 = vst [vmem:[%s3895_s29 + $0xd0] sm:$0xff] %v2863_v33 }
 0x294   : > { %2894 = vst [vmem:[%s3895_s29 + $0xc8] sm:$0xff] %v2862_v36  ;;  %2896 = vst [vmem:[%s3895_s29 + $0xd8] sm:$0xff] %v2864_v37  ;;  %v2761_v47 = vpop.f32.mrb[30].mxu1  ;;  %v2832_v48 = vpop.f32.mrb[32].mxu0 }
 0x295   : > { %v2865_v38 = vmul.f32 %v2761_v47, %v3884_v43  ;;  %v2867_v40 = vmul.f32 %v2832_v48, %v3886_v44  ;;  %v2763_v49 = vpop.f32.mrb[31].mxu1  ;;  %v2834_v50 = vpop.f32.mrb[33].mxu0 }
 0x296   : > { %v2866_v51 = vmul.f32 %v2763_v49, %v3888_v45  ;;  %v2868_v41 = vmul.f32 %v2834_v50, %v3890_v46 }
 0x297   : > { %2897 = vst [vmem:[%s3895_s29 + $0xe0] sm:$0xff] %v2865_v38  ;;  %2899 = vst [vmem:[%s3895_s29 + $0xf0] sm:$0xff] %v2867_v40 }
 0x298   : > { %2898 = vst [vmem:[%s3895_s29 + $0xe8] sm:$0xff] %v2866_v51  ;;  %2900 = vst [vmem:[%s3895_s29 + $0xf8] sm:$0xff] %v2868_v41 }
 0x299 PF: > { %p18_p1 = scmp.ge.s32.totalorder %s3573_s7, 5   ;;  %s3997_s21 = smov %s3472_s22 }
 0x29a   : > { %s3998_s22 = smov %s3476_s23  ;;  %s3999_s23 = smov %s3610_s10 }
 0x29b   : > { %s4000_s24 = smov %s3573_s7  ;;  %20 = sbr.rel (!%p18_p1) target bundleno = 8 (0x8), region = 108 }
 0x2a2   :  { %2922 = vsyncpa [#allocation3], 1 }
 0x2a3   :  { %2924 = vsyncpa [#allocation3 + $0x1], 1 }
 0x2a4   :  { %2925 = vsyncpa [#allocation5], 1 }
 0x2a5   :  { %2927 = vsyncpa [#allocation5 + $0x1], 1 }
 0x2a6   :  { %2928 = vsyncpa [#allocation8], 1 }

// kernel: reverse.5
= control target key start
LH: loop header
LB: loop body
LE: loop exit
PB: predicated region body
PF: predicated region fallthrough
CT: control target
= control target key end

     0   :  { %v2_v0 = vlaneseq  ;;  %s356_s0 = inlined_call_operand.vmem [shape: f32[3,8,4096], index: 0, kind: input, shape index: {}]   ;;  %s357_s1 = inlined_call_operand.vmem [shape: f32[3,8,4096], index: 1, kind: output, shape index: {}]  }
   0x2   :  { %v3_v1 = vsub.s32 127, %v2_v0 }
   0x4   :  { %4 = vset.pattern.permute.xlu0 %v3_v1 }
   0x5   :  { %s316_s6 = smov 0   ;;  %s318_s7 = smov 0  }
   0x6   :  { %s320_s8 = smov 0  }
   0x7 LB: > { %s243_s9 = sadd.s32 4294967295, %s304_s8   ;;  %s22_s10 = sadd.s32 1, %s300_s7  ;;  %s304_s8 = sphi %s320_s8, %s10_s8   ;;  %s300_s7 = sphi %s318_s7, %s359_s7   ;;  %s296_s6 = sphi %s316_s6, %s358_s6  }
   0x8   : > { %p23_p0 = scmp.ge.s32.totalorder %s22_s10, 32  ;;  %p245_p1 = scmp.ge.s32.totalorder %s304_s8, 32 }
   0x9   : > { %s45_s11 = sand.u32 (!%p245_p1), 1, %s304_s8   ;;  %s48_s12 = ssub.s32 (!%p245_p1), 31, %s300_s7 }
   0xa   : > { %s361_s10 = smov (%p23_p0, %s22_s10), 0  ;;  %43 = sbr.rel (%p245_p1) target bundleno = 17 (0x11), region = 16 }
   0xb   : > { %s255_s13 = smul.u32 (!%p245_p1), 24, %s45_s11  ;;  %s246_s14 = sshll.u32 (!%p245_p1), %s48_s12, 3 }
   0xc   : > { %s55_s17 = scalar_lea.vmem (!%p245_p1), %s356_s0, %s246_s14 }
   0xd   : > { %v87_v2 = vld [vmem:[%s55_s17] sm:$0xff] (!%p245_p1)  ;;  %s47_s18 = scalar_lea.vmem (!%p245_p1), [#allocation0], %s255_s13 }
   0xe   : > { %v89_v3 = vld [vmem:[%s55_s17 + $0x100] sm:$0xff] (!%p245_p1)  ;;  %88 = vst [vmem:[%s47_s18] sm:$0xff] (!%p245_p1), %v87_v2 }
   0xf   : > { %v91_v4 = vld [vmem:[%s55_s17 + $0x200] sm:$0xff] (!%p245_p1)  ;;  %90 = vst [vmem:[%s47_s18 + $0x8] sm:$0xff] (!%p245_p1), %v89_v3 }
  0x10   : > { %92 = vst [vmem:[%s47_s18 + $0x10] sm:$0xff] (!%p245_p1), %v91_v4 }
  0x11 PF: > { %p247_p2 = scmp.ge.s32.totalorder %s304_s8, 1  ;;  %p97_p3 = scmp.lt.s32.totalorder %s304_s8, 33 }
  0x13   : > { %p98_p4 = pnand %p247_p2, %p97_p3 }
  0x14   : > { %s104_s19 = sand.u32 (!%p98_p4), 1, %s243_s9   ;;  %281 = vset.pattern.permute.xlu1 (!%p98_p4), %v3_v1  ;;  %s252_s22 = sshll.u32 (!%p98_p4), %s296_s6, 3 }
  0x15   : > { %101 = sbr.rel (%p98_p4) target bundleno = 159 (0x9f), region = 54  ;;  %s144_s25 = scalar_lea.vmem (!%p98_p4), %s357_s1, %s252_s22 }
  0x16   : > { %s256_s20 = smul.u32 (!%p98_p4), 24, %s104_s19 }
  0x18   : > { %s106_s21 = scalar_lea.vmem (!%p98_p4), [#allocation0], %s256_s20 }
  0x19   : > { %v118_v5 = vld [vmem:[%s106_s21] sm:$0xff] (!%p98_p4)  ;;  %v250_v6 = vld [vmem:[%s106_s21 + $0x10] sm:$0xff] (!%p98_p4)  ;;  %v248_v7 = vld [vmem:[%s106_s21 + $0x8] sm:$0xff] (!%p98_p4) }
  0x1a   : > { %119 = vperm.xlu0 (!%p98_p4), %4, %v118_v5   ;;  %131 = vperm.xlu1 (!%p98_p4), %281, %v250_v6  }
  0x1e   : > { %125 = vperm.xlu0 %4, %v248_v7  }
  0x99   : > { %v120_v8 = vpop.permute.xlu0 %119  ;;  %v132_v9 = vpop.permute.xlu1 %131 }
  0x9a   : > { %177 = vst [vmem:[%s144_s25] sm:$0xff] %v120_v8  ;;  %181 = vst [vmem:[%s144_s25 + $0x200] sm:$0xff] %v132_v9 }
  0x9d   : > { %v126_v10 = vpop.permute.xlu0 %125 }
  0x9e   : > { %179 = vst [vmem:[%s144_s25 + $0x100] sm:$0xff] %v126_v10 }
  0x9f PF: > { %s10_s8 = sadd.s32 1, %s304_s8   ;;  %s358_s6 = smov %s300_s7 }
  0xa0   : > { %p7_p5 = scmp.ge.s32.totalorder %s10_s8, 34   ;;  %s359_s7 = smov %s361_s10 }
  0xa2   :  { %9 = sbr.rel (!%p7_p5) target bundleno = 7 (0x7), region = 122 }

// kernel: _lambda_.5
= control target key start
LH: loop header
LB: loop body
LE: loop exit
PB: predicated region body
PF: predicated region fallthrough
CT: control target
= control target key end

     0   :  { %s2978_s12 = smov 0   ;;  %s2980_s13 = smov 0   ;;  %s3716_s0 = inlined_call_operand.vmem [shape: f32[3,8,16], index: 0, kind: input, shape index: {}]   ;;  %s3717_s1 = inlined_call_operand.vmem [shape: f32[16,4096], index: 1, kind: input, shape index: {}]   ;;  %s3718_s2 = inlined_call_operand.vmem [shape: f32[3,8,4096], index: 2, kind: input, shape index: {}]   ;;  %s3719_s3 = inlined_call_operand.vmem [shape: f32[8,4096], index: 3, kind: output, shape index: {}]  }
   0x1   :  { %s2982_s14 = smov 0  }
   0x2 LB: > { %s2607_s15 = sadd.s32 4294967295, %s2955_s14   ;;  %s2995_s16 = sadd.s32 1, %s2955_s14   ;;  %s2955_s14 = sphi %s2982_s14, %s3728_s14   ;;  %s2951_s13 = sphi %s2980_s13, %s3727_s13   ;;  %s2947_s12 = sphi %s2978_s12, %s3726_s12  }
   0x3   : > { %s38_s17 = ssub.s32 %s2955_s14, %s2995_s16  ;;  %s41_s18 = sadd.s32 1, %s2951_s13 }
   0x4   : > { %p39_p0 = scmp.eq.s32.totalorder %s38_s17, 0  ;;  %p48_p1 = scmp.ne.s32.totalorder %s2951_s13, %s2947_s12 }
   0x5   : > { %p49_p2 = scmp.eq.s32.totalorder %s2955_s14, 0  ;;  %p2610_p4 = scmp.ge.s32.totalorder %s2955_s14, 2 }
   0x6   : > { %s3004_s19 = scalar_select %p39_p0, %s2951_s13, %s41_s18  }
   0x7   : > { %p3006_p3 = por %p49_p2, %p48_p1  ;;  %129 = sbr.rel (%p2610_p4) target bundleno = 63 (0x3f), region = 20 }
   0xe   : > { %132 = sbr.rel (!%p3006_p3) target bundleno = 34 (0x22), region = 24  ;;  %s134_s21 = sand.u32 (%p3006_p3), 1, %s2951_s13  }
   0xf   : > { %s2680_s22 = sshll.u32 (%p3006_p3), %s2955_s14, 7  ;;  %s2611_s23 = sshll.u32 (%p3006_p3), %s134_s21, 8 }
  0x10   : > { %s3018_s26 = scalar_lea.vmem (%p3006_p3), %s3717_s1, %s2680_s22  ;;  %s3023_s27 = scalar_lea.vmem (%p3006_p3), [#allocation2], %s2611_s23 }
  0x11   : > { %v152_v0 = vld [vmem:[%s3018_s26] sm:$0xff] (%p3006_p3)  ;;  %v154_v1 = vld [vmem:[%s3018_s26 + $0x8] sm:$0xff] (%p3006_p3)  ;;  %v156_v2 = vld [vmem:[%s3018_s26 + $0x10] sm:$0xff] (%p3006_p3) }
  0x12   : > { %153 = vst [vmem:[%s3023_s27] sm:$0xff] (%p3006_p3), %v152_v0  ;;  %155 = vst [vmem:[%s3023_s27 + $0x8] sm:$0xff] (%p3006_p3), %v154_v1  ;;  %v158_v3 = vld [vmem:[%s3018_s26 + $0x18] sm:$0xff] (%p3006_p3)  ;;  %v160_v4 = vld [vmem:[%s3018_s26 + $0x20] sm:$0xff] (%p3006_p3) }
  0x13   : > { %157 = vst [vmem:[%s3023_s27 + $0x10] sm:$0xff] (%p3006_p3), %v156_v2  ;;  %v162_v5 = vld [vmem:[%s3018_s26 + $0x28] sm:$0xff] (%p3006_p3)  ;;  %159 = vst [vmem:[%s3023_s27 + $0x18] sm:$0xff] (%p3006_p3), %v158_v3  ;;  %v164_v6 = vld [vmem:[%s3018_s26 + $0x30] sm:$0xff] (%p3006_p3) }
  0x14   : > { %161 = vst [vmem:[%s3023_s27 + $0x20] sm:$0xff] (%p3006_p3), %v160_v4  ;;  %163 = vst [vmem:[%s3023_s27 + $0x28] sm:$0xff] (%p3006_p3), %v162_v5  ;;  %v166_v7 = vld [vmem:[%s3018_s26 + $0x38] sm:$0xff] (%p3006_p3)  ;;  %v168_v8 = vld [vmem:[%s3018_s26 + $0x40] sm:$0xff] (%p3006_p3) }
  0x15   : > { %165 = vst [vmem:[%s3023_s27 + $0x30] sm:$0xff] %v164_v6  ;;  %167 = vst [vmem:[%s3023_s27 + $0x38] sm:$0xff] %v166_v7  ;;  %v170_v9 = vld [vmem:[%s3018_s26 + $0x48] sm:$0xff]  ;;  %v172_v10 = vld [vmem:[%s3018_s26 + $0x50] sm:$0xff] }
  0x16   : > { %169 = vst [vmem:[%s3023_s27 + $0x40] sm:$0xff] %v168_v8  ;;  %v174_v11 = vld [vmem:[%s3018_s26 + $0x58] sm:$0xff]  ;;  %171 = vst [vmem:[%s3023_s27 + $0x48] sm:$0xff] %v170_v9  ;;  %v176_v12 = vld [vmem:[%s3018_s26 + $0x60] sm:$0xff] }
  0x17   : > { %173 = vst [vmem:[%s3023_s27 + $0x50] sm:$0xff] %v172_v10  ;;  %175 = vst [vmem:[%s3023_s27 + $0x58] sm:$0xff] %v174_v11  ;;  %v178_v13 = vld [vmem:[%s3018_s26 + $0x68] sm:$0xff]  ;;  %v180_v14 = vld [vmem:[%s3018_s26 + $0x70] sm:$0xff] }
  0x18   : > { %177 = vst [vmem:[%s3023_s27 + $0x60] sm:$0xff] %v176_v12  ;;  %179 = vst [vmem:[%s3023_s27 + $0x68] sm:$0xff] %v178_v13  ;;  %v182_v15 = vld [vmem:[%s3018_s26 + $0x78] sm:$0xff]  ;;  %v184_v16 = vld [vmem:[%s3018_s26 + $0x100] sm:$0xff] }
  0x19   : > { %181 = vst [vmem:[%s3023_s27 + $0x70] sm:$0xff] %v180_v14  ;;  %v186_v17 = vld [vmem:[%s3018_s26 + $0x108] sm:$0xff]  ;;  %183 = vst [vmem:[%s3023_s27 + $0x78] sm:$0xff] %v182_v15  ;;  %v188_v18 = vld [vmem:[%s3018_s26 + $0x110] sm:$0xff] }
  0x1a   : > { %185 = vst [vmem:[%s3023_s27 + $0x80] sm:$0xff] %v184_v16  ;;  %187 = vst [vmem:[%s3023_s27 + $0x88] sm:$0xff] %v186_v17  ;;  %v190_v19 = vld [vmem:[%s3018_s26 + $0x118] sm:$0xff]  ;;  %v192_v20 = vld [vmem:[%s3018_s26 + $0x120] sm:$0xff] }
  0x1b   : > { %189 = vst [vmem:[%s3023_s27 + $0x90] sm:$0xff] %v188_v18  ;;  %191 = vst [vmem:[%s3023_s27 + $0x98] sm:$0xff] %v190_v19  ;;  %v194_v21 = vld [vmem:[%s3018_s26 + $0x128] sm:$0xff]  ;;  %v196_v22 = vld [vmem:[%s3018_s26 + $0x130] sm:$0xff] }
  0x1c   : > { %193 = vst [vmem:[%s3023_s27 + $0xa0] sm:$0xff] %v192_v20  ;;  %v198_v23 = vld [vmem:[%s3018_s26 + $0x138] sm:$0xff]  ;;  %195 = vst [vmem:[%s3023_s27 + $0xa8] sm:$0xff] %v194_v21  ;;  %v200_v24 = vld [vmem:[%s3018_s26 + $0x140] sm:$0xff] }
  0x1d   : > { %197 = vst [vmem:[%s3023_s27 + $0xb0] sm:$0xff] %v196_v22  ;;  %199 = vst [vmem:[%s3023_s27 + $0xb8] sm:$0xff] %v198_v23  ;;  %v202_v25 = vld [vmem:[%s3018_s26 + $0x148] sm:$0xff]  ;;  %v204_v26 = vld [vmem:[%s3018_s26 + $0x150] sm:$0xff] }
  0x1e   : > { %201 = vst [vmem:[%s3023_s27 + $0xc0] sm:$0xff] %v200_v24  ;;  %203 = vst [vmem:[%s3023_s27 + $0xc8] sm:$0xff] %v202_v25  ;;  %v206_v27 = vld [vmem:[%s3018_s26 + $0x158] sm:$0xff]  ;;  %v208_v28 = vld [vmem:[%s3018_s26 + $0x160] sm:$0xff] }
  0x1f   : > { %205 = vst [vmem:[%s3023_s27 + $0xd0] sm:$0xff] %v204_v26  ;;  %v210_v29 = vld [vmem:[%s3018_s26 + $0x168] sm:$0xff]  ;;  %207 = vst [vmem:[%s3023_s27 + $0xd8] sm:$0xff] %v206_v27  ;;  %v212_v30 = vld [vmem:[%s3018_s26 + $0x170] sm:$0xff] }
  0x20   : > { %209 = vst [vmem:[%s3023_s27 + $0xe0] sm:$0xff] %v208_v28  ;;  %211 = vst [vmem:[%s3023_s27 + $0xe8] sm:$0xff] %v210_v29  ;;  %v214_v31 = vld [vmem:[%s3018_s26 + $0x178] sm:$0xff] }
  0x21   : > { %213 = vst [vmem:[%s3023_s27 + $0xf0] sm:$0xff] %v212_v30  ;;  %215 = vst [vmem:[%s3023_s27 + $0xf8] sm:$0xff] %v214_v31 }
  0x22 PF: > { %221 = sbr.rel (!%p3006_p3) target bundleno = 63 (0x3f), region = 47  ;;  %s223_s28 = sand.u32 (%p3006_p3), 1, %s2951_s13  }
  0x23   : > { %s2681_s29 = sshll.u32 (%p3006_p3), %s2955_s14, 7  ;;  %s2778_s30 = smul.u32 (%p3006_p3), 384, %s223_s28 }
  0x24   : > { %s3093_s6 = scalar_lea.vmem (%p3006_p3), %s3718_s2, %s2681_s29 }
  0x25   : > { %v241_v32 = vld [vmem:[%s3093_s6] sm:$0xff] (%p3006_p3)  ;;  %v243_v33 = vld [vmem:[%s3093_s6 + $0x8] sm:$0xff] (%p3006_p3)  ;;  %v245_v34 = vld [vmem:[%s3093_s6 + $0x10] sm:$0xff] (%p3006_p3)  ;;  %s3101_s7 = scalar_lea.vmem (%p3006_p3), [#allocation3], %s2778_s30 }
  0x26   : > { %v247_v35 = vld [vmem:[%s3093_s6 + $0x18] sm:$0xff] (%p3006_p3)  ;;  %v249_v36 = vld [vmem:[%s3093_s6 + $0x20] sm:$0xff] (%p3006_p3)  ;;  %v251_v37 = vld [vmem:[%s3093_s6 + $0x28] sm:$0xff] (%p3006_p3)  ;;  %242 = vst [vmem:[%s3101_s7] sm:$0xff] (%p3006_p3), %v241_v32 }
  0x27   : > { %244 = vst [vmem:[%s3101_s7 + $0x8] sm:$0xff] (%p3006_p3), %v243_v33  ;;  %246 = vst [vmem:[%s3101_s7 + $0x10] sm:$0xff] (%p3006_p3), %v245_v34  ;;  %v253_v38 = vld [vmem:[%s3093_s6 + $0x30] sm:$0xff] (%p3006_p3)  ;;  %v255_v39 = vld [vmem:[%s3093_s6 + $0x38] sm:$0xff] (%p3006_p3) }
  0x28   : > { %248 = vst [vmem:[%s3101_s7 + $0x18] sm:$0xff] (%p3006_p3), %v247_v35  ;;  %250 = vst [vmem:[%s3101_s7 + $0x20] sm:$0xff] (%p3006_p3), %v249_v36  ;;  %v257_v40 = vld [vmem:[%s3093_s6 + $0x40] sm:$0xff] (%p3006_p3)  ;;  %v259_v41 = vld [vmem:[%s3093_s6 + $0x48] sm:$0xff] (%p3006_p3) }
  0x29   : > { %252 = vst [vmem:[%s3101_s7 + $0x28] sm:$0xff] %v251_v37  ;;  %254 = vst [vmem:[%s3101_s7 + $0x30] sm:$0xff] %v253_v38  ;;  %v261_v42 = vld [vmem:[%s3093_s6 + $0x50] sm:$0xff]  ;;  %v263_v43 = vld [vmem:[%s3093_s6 + $0x58] sm:$0xff] }
  0x2a   : > { %256 = vst [vmem:[%s3101_s7 + $0x38] sm:$0xff] %v255_v39  ;;  %258 = vst [vmem:[%s3101_s7 + $0x40] sm:$0xff] %v257_v40  ;;  %v265_v44 = vld [vmem:[%s3093_s6 + $0x60] sm:$0xff]  ;;  %v267_v45 = vld [vmem:[%s3093_s6 + $0x68] sm:$0xff] }
  0x2b   : > { %260 = vst [vmem:[%s3101_s7 + $0x48] sm:$0xff] %v259_v41  ;;  %262 = vst [vmem:[%s3101_s7 + $0x50] sm:$0xff] %v261_v42  ;;  %v269_v46 = vld [vmem:[%s3093_s6 + $0x70] sm:$0xff]  ;;  %v271_v47 = vld [vmem:[%s3093_s6 + $0x78] sm:$0xff] }
  0x2c   : > { %264 = vst [vmem:[%s3101_s7 + $0x58] sm:$0xff] %v263_v43  ;;  %266 = vst [vmem:[%s3101_s7 + $0x60] sm:$0xff] %v265_v44  ;;  %v273_v48 = vld [vmem:[%s3093_s6 + $0x100] sm:$0xff]  ;;  %v275_v49 = vld [vmem:[%s3093_s6 + $0x108] sm:$0xff] }
  0x2d   : > { %268 = vst [vmem:[%s3101_s7 + $0x68] sm:$0xff] %v267_v45  ;;  %270 = vst [vmem:[%s3101_s7 + $0x70] sm:$0xff] %v269_v46  ;;  %v277_v50 = vld [vmem:[%s3093_s6 + $0x110] sm:$0xff]  ;;  %v279_v51 = vld [vmem:[%s3093_s6 + $0x118] sm:$0xff] }
  0x2e   : > { %272 = vst [vmem:[%s3101_s7 + $0x78] sm:$0xff] %v271_v47  ;;  %274 = vst [vmem:[%s3101_s7 + $0x80] sm:$0xff] %v273_v48  ;;  %v281_v52 = vld [vmem:[%s3093_s6 + $0x120] sm:$0xff]  ;;  %v283_v53 = vld [vmem:[%s3093_s6 + $0x128] sm:$0xff] }
  0x2f   : > { %276 = vst [vmem:[%s3101_s7 + $0x88] sm:$0xff] %v275_v49  ;;  %278 = vst [vmem:[%s3101_s7 + $0x90] sm:$0xff] %v277_v50  ;;  %v285_v54 = vld [vmem:[%s3093_s6 + $0x130] sm:$0xff]  ;;  %v287_v55 = vld [vmem:[%s3093_s6 + $0x138] sm:$0xff] }
  0x30   : > { %280 = vst [vmem:[%s3101_s7 + $0x98] sm:$0xff] %v279_v51  ;;  %282 = vst [vmem:[%s3101_s7 + $0xa0] sm:$0xff] %v281_v52  ;;  %v289_v56 = vld [vmem:[%s3093_s6 + $0x140] sm:$0xff]  ;;  %v291_v57 = vld [vmem:[%s3093_s6 + $0x148] sm:$0xff] }
  0x31   : > { %284 = vst [vmem:[%s3101_s7 + $0xa8] sm:$0xff] %v283_v53  ;;  %286 = vst [vmem:[%s3101_s7 + $0xb0] sm:$0xff] %v285_v54  ;;  %v293_v58 = vld [vmem:[%s3093_s6 + $0x150] sm:$0xff]  ;;  %v295_v59 = vld [vmem:[%s3093_s6 + $0x158] sm:$0xff] }
  0x32   : > { %288 = vst [vmem:[%s3101_s7 + $0xb8] sm:$0xff] %v287_v55  ;;  %290 = vst [vmem:[%s3101_s7 + $0xc0] sm:$0xff] %v289_v56  ;;  %v297_v60 = vld [vmem:[%s3093_s6 + $0x160] sm:$0xff]  ;;  %v299_v61 = vld [vmem:[%s3093_s6 + $0x168] sm:$0xff] }
  0x33   : > { %292 = vst [vmem:[%s3101_s7 + $0xc8] sm:$0xff] %v291_v57  ;;  %294 = vst [vmem:[%s3101_s7 + $0xd0] sm:$0xff] %v293_v58  ;;  %v301_v62 = vld [vmem:[%s3093_s6 + $0x170] sm:$0xff]  ;;  %v303_v63 = vld [vmem:[%s3093_s6 + $0x178] sm:$0xff] }
  0x34   : > { %296 = vst [vmem:[%s3101_s7 + $0xd8] sm:$0xff] %v295_v59  ;;  %298 = vst [vmem:[%s3101_s7 + $0xe0] sm:$0xff] %v297_v60  ;;  %v305_v0 = vld [vmem:[%s3093_s6 + $0x200] sm:$0xff]  ;;  %v307_v1 = vld [vmem:[%s3093_s6 + $0x208] sm:$0xff] }
  0x35   : > { %300 = vst [vmem:[%s3101_s7 + $0xe8] sm:$0xff] %v299_v61  ;;  %302 = vst [vmem:[%s3101_s7 + $0xf0] sm:$0xff] %v301_v62  ;;  %v309_v2 = vld [vmem:[%s3093_s6 + $0x210] sm:$0xff]  ;;  %v311_v3 = vld [vmem:[%s3093_s6 + $0x218] sm:$0xff] }
  0x36   : > { %304 = vst [vmem:[%s3101_s7 + $0xf8] sm:$0xff] %v303_v63  ;;  %306 = vst [vmem:[%s3101_s7 + $0x100] sm:$0xff] %v305_v0  ;;  %v313_v4 = vld [vmem:[%s3093_s6 + $0x220] sm:$0xff]  ;;  %v315_v5 = vld [vmem:[%s3093_s6 + $0x228] sm:$0xff] }
  0x37   : > { %308 = vst [vmem:[%s3101_s7 + $0x108] sm:$0xff] %v307_v1  ;;  %310 = vst [vmem:[%s3101_s7 + $0x110] sm:$0xff] %v309_v2  ;;  %v317_v6 = vld [vmem:[%s3093_s6 + $0x230] sm:$0xff]  ;;  %v319_v7 = vld [vmem:[%s3093_s6 + $0x238] sm:$0xff] }
  0x38   : > { %312 = vst [vmem:[%s3101_s7 + $0x118] sm:$0xff] %v311_v3  ;;  %314 = vst [vmem:[%s3101_s7 + $0x120] sm:$0xff] %v313_v4  ;;  %v321_v8 = vld [vmem:[%s3093_s6 + $0x240] sm:$0xff]  ;;  %v323_v9 = vld [vmem:[%s3093_s6 + $0x248] sm:$0xff] }
  0x39   : > { %316 = vst [vmem:[%s3101_s7 + $0x128] sm:$0xff] %v315_v5  ;;  %318 = vst [vmem:[%s3101_s7 + $0x130] sm:$0xff] %v317_v6  ;;  %v325_v10 = vld [vmem:[%s3093_s6 + $0x250] sm:$0xff]  ;;  %v327_v11 = vld [vmem:[%s3093_s6 + $0x258] sm:$0xff] }
  0x3a   : > { %320 = vst [vmem:[%s3101_s7 + $0x138] sm:$0xff] %v319_v7  ;;  %322 = vst [vmem:[%s3101_s7 + $0x140] sm:$0xff] %v321_v8  ;;  %v329_v12 = vld [vmem:[%s3093_s6 + $0x260] sm:$0xff]  ;;  %v331_v13 = vld [vmem:[%s3093_s6 + $0x268] sm:$0xff] }
  0x3b   : > { %324 = vst [vmem:[%s3101_s7 + $0x148] sm:$0xff] %v323_v9  ;;  %326 = vst [vmem:[%s3101_s7 + $0x150] sm:$0xff] %v325_v10  ;;  %v333_v14 = vld [vmem:[%s3093_s6 + $0x270] sm:$0xff]  ;;  %v335_v15 = vld [vmem:[%s3093_s6 + $0x278] sm:$0xff] }
  0x3c   : > { %328 = vst [vmem:[%s3101_s7 + $0x158] sm:$0xff] %v327_v11  ;;  %330 = vst [vmem:[%s3101_s7 + $0x160] sm:$0xff] %v329_v12 }
  0x3d   : > { %332 = vst [vmem:[%s3101_s7 + $0x168] sm:$0xff] %v331_v13  ;;  %334 = vst [vmem:[%s3101_s7 + $0x170] sm:$0xff] %v333_v14 }
  0x3e   : > { %336 = vst [vmem:[%s3101_s7 + $0x178] sm:$0xff] %v335_v15 }
  0x3f PF: > { %p2616_p5 = scmp.ge.s32.totalorder %s2955_s14, 1  ;;  %p341_p6 = scmp.lt.s32.totalorder %s2955_s14, 3 }
  0x41   : > { %p342_p7 = pnand %p2616_p5, %p341_p6 }
  0x42   : > { %s348_s8 = sand.u32 (!%p342_p7), 1, %s2947_s12   ;;  %v2957_v16 = vmov (!%p342_p7), 0.0   ;;  %v3219_v28 = vld [vmem:[%s3716_s0] sm:$0xff] (!%p342_p7)  ;;  %vm423_vm0 = vcmask (!%p342_p7), 130048   ;;  %v2628_v2 = vld [vmem:[%s3716_s0 + $0x8] sm:$0xff] (!%p342_p7)  ;;  %v2637_v3 = vld [vmem:[%s3716_s0 + $0x10] sm:$0xff] (!%p342_p7) }
  0x43   : > { %345 = sbr.rel (%p342_p7) target bundleno = 423 (0x1a7), region = 70  ;;  %s2617_s9 = sshll.u32 (!%p342_p7), %s348_s8, 8  ;;  %491 = vmatprep.mubr.f32.mxu0 (!%p342_p7), %v2957_v16  ;;  %562 = vmatprep.mubr.f32.mxu1 (!%p342_p7), %v2957_v16 }
  0x44   : > { %s3200_s10 = scalar_lea.vmem (!%p342_p7), [#allocation2], %s2617_s9  ;;  %s3472_s23 = smul.u32 (!%p342_p7), 384, %s348_s8 }
  0x45   : > { %v391_v17 = vld [vmem:[%s3200_s10 + $0x8] sm:$0xff] (!%p342_p7)  ;;  %v393_v19 = vld [vmem:[%s3200_s10 + $0x18] sm:$0xff] (!%p342_p7)  ;;  %v390_v22 = vld [vmem:[%s3200_s10] sm:$0xff] (!%p342_p7)  ;;  %s3539_s24 = sshll.u32 (!%p342_p7), %s2607_s15, 4 }
  0x46   : > { %v407_v18 = vld [vmem:[%s3200_s10 + $0x88] sm:$0xff] (!%p342_p7)  ;;  %v409_v21 = vld [vmem:[%s3200_s10 + $0x98] sm:$0xff] (!%p342_p7)  ;;  %v406_v23 = vld [vmem:[%s3200_s10 + $0x80] sm:$0xff] (!%p342_p7)  ;;  %s3499_s12 = scalar_lea.vmem (!%p342_p7), [#allocation3], %s3472_s23  ;;  %p385_p8 = scmp.lt.s32.totalorder (!%p342_p7), %s3539_s24, 31 }
  0x47   : > { %v3205_v20 = vpack.c.bf16 (!%p342_p7), %v407_v18, %v391_v17  ;;  %v3210_v24 = vpack.c.bf16 (!%p342_p7), %v409_v21, %v393_v19  ;;  %v3212_v25 = vpack.c.bf16 (!%p342_p7), %v406_v23, %v390_v22  ;;  %v392_v26 = vld [vmem:[%s3200_s10 + $0x10] sm:$0xff] (!%p342_p7)  ;;  %v395_v29 = vld [vmem:[%s3200_s10 + $0x28] sm:$0xff] (!%p342_p7)  ;;  %v397_v32 = vld [vmem:[%s3200_s10 + $0x38] sm:$0xff] (!%p342_p7) }
  0x48   : > { %v408_v27 = vld [vmem:[%s3200_s10 + $0x90] sm:$0xff] (!%p342_p7)  ;;  %v411_v31 = vld [vmem:[%s3200_s10 + $0xa8] sm:$0xff] (!%p342_p7)  ;;  %v413_v33 = vld [vmem:[%s3200_s10 + $0xb8] sm:$0xff] (!%p342_p7) }
  0x49   : > { %2683 = vmatprep.subr.bf16.mxu0 (!%p342_p7), %v3205_v20  ;;  %v3223_v30 = vpack.c.bf16 (!%p342_p7), %v408_v27, %v392_v26  ;;  %2687 = vmatprep.subr.bf16.mxu1 (!%p342_p7), %v3210_v24  ;;  %v3230_v34 = vpack.c.bf16 (!%p342_p7), %v411_v31, %v395_v29  ;;  %v3232_v35 = vpack.c.bf16 (!%p342_p7), %v413_v33, %v397_v32  ;;  %v394_v36 = vld [vmem:[%s3200_s10 + $0x20] sm:$0xff] (!%p342_p7)  ;;  %v396_v38 = vld [vmem:[%s3200_s10 + $0x30] sm:$0xff] (!%p342_p7)  ;;  %v399_v41 = vld [vmem:[%s3200_s10 + $0x48] sm:$0xff] (!%p342_p7) }
  0x4a   : > { %2685 = vmatpush1.bf16.msra.mxu0 %v3212_v25  ;;  %v410_v37 = vld [vmem:[%s3200_s10 + $0xa0] sm:$0xff]  ;;  %v412_v40 = vld [vmem:[%s3200_s10 + $0xb0] sm:$0xff]  ;;  %v415_v42 = vld [vmem:[%s3200_s10 + $0xc8] sm:$0xff]  ;;  %s3730_s24 = smov (!%p385_p8, %s3539_s24), 31 }
  0x4b   : > { %2689 = vmatpush1.bf16.msra.mxu1 %v3223_v30  ;;  %v3238_v39 = vpack.c.bf16 %v410_v37, %v394_v36  ;;  %2691 = vmatprep.subr.bf16.mxu0 %v3230_v34  ;;  %v3245_v43 = vpack.c.bf16 %v412_v40, %v396_v38  ;;  %v3247_v44 = vpack.c.bf16 %v415_v42, %v399_v41  ;;  %v401_v45 = vld [vmem:[%s3200_s10 + $0x58] sm:$0xff]  ;;  %v398_v47 = vld [vmem:[%s3200_s10 + $0x40] sm:$0xff]  ;;  %v400_v50 = vld [vmem:[%s3200_s10 + $0x50] sm:$0xff]  ;;  %s2619_s14 = sshll.u32 %s3730_s24, 3 }
  0x4c   : > { %2695 = vmatprep.subr.bf16.mxu1 %v3232_v35  ;;  %v417_v46 = vld [vmem:[%s3200_s10 + $0xd8] sm:$0xff]  ;;  %v414_v49 = vld [vmem:[%s3200_s10 + $0xc0] sm:$0xff]  ;;  %v416_v51 = vld [vmem:[%s3200_s10 + $0xd0] sm:$0xff]  ;;  %s3595_s26 = scalar_lea.vmem %s3719_s3, %s2619_s14 }
  0x4d   : > { %2620 = vmatmul.mubr.msk.f32.vlgmr.msra.gmra.mrb[0].mxu0 %vm423_vm0, %v3219_v28  ;;  %v3254_v48 = vpack.c.bf16 %v417_v46, %v401_v45  ;;  %v3262_v52 = vpack.c.bf16 %v414_v49, %v398_v47  ;;  %v403_v53 = vld [vmem:[%s3200_s10 + $0x68] sm:$0xff]  ;;  %v405_v55 = vld [vmem:[%s3200_s10 + $0x78] sm:$0xff]  ;;  %v3269_v56 = vpack.c.bf16 %v416_v51, %v400_v50  ;;  %v402_v58 = vld [vmem:[%s3200_s10 + $0x60] sm:$0xff] }
  0x4e   : > { %2621 = vmatmul.mubr.msk.f32.vlgmr.msra.gmra.mrb[0].mxu1 %vm423_vm0, %v3219_v28  ;;  %2693 = vmatpush1.bf16.msra.mxu0 %v3238_v39  ;;  %v419_v54 = vld [vmem:[%s3200_s10 + $0xe8] sm:$0xff]  ;;  %v421_v57 = vld [vmem:[%s3200_s10 + $0xf8] sm:$0xff]  ;;  %v418_v59 = vld [vmem:[%s3200_s10 + $0xe0] sm:$0xff] }
  0x4f   : > { %2697 = vmatpush1.bf16.msra.mxu1 %v3245_v43  ;;  %633 = vmatprep.mubr.f32.mxu0 %v2957_v16  ;;  %v3276_v60 = vpack.c.bf16 %v419_v54, %v403_v53  ;;  %v404_v61 = vld [vmem:[%s3200_s10 + $0x70] sm:$0xff]  ;;  %v3283_v63 = vpack.c.bf16 %v421_v57, %v405_v55  ;;  %v3288_v0 = vpack.c.bf16 %v418_v59, %v402_v58 }
  0x50   : > { %704 = vmatprep.mubr.f32.mxu1 %v2957_v16  ;;  %2699 = vmatprep.subr.bf16.mxu0 %v3247_v44  ;;  %v420_v62 = vld [vmem:[%s3200_s10 + $0xf0] sm:$0xff] }
  0x51   : > { %2622 = vmatmul.mubr.msk.f32.vlgmr.msra.gmra.mrb[2].mxu0 %vm423_vm0, %v3219_v28  ;;  %2703 = vmatprep.subr.bf16.mxu1 %v3254_v48  ;;  %v3292_v1 = vpack.c.bf16 %v420_v62, %v404_v61 }
  0x52   : > { %2623 = vmatmul.mubr.msk.f32.vlgmr.msra.gmra.mrb[2].mxu1 %vm423_vm0, %v3219_v28  ;;  %2701 = vmatpush1.bf16.msra.mxu0 %v3262_v52 }
  0x53   : > { %2705 = vmatpush1.bf16.msra.mxu1 %v3269_v56  ;;  %775 = vmatprep.mubr.f32.mxu0 %v2957_v16 }
  0x54   : > { %846 = vmatprep.mubr.f32.mxu1 %v2957_v16  ;;  %2707 = vmatprep.subr.bf16.mxu0 %v3276_v60 }
  0x55   : > { %2624 = vmatmul.mubr.msk.f32.vlgmr.msra.gmra.mrb[4].mxu0 %vm423_vm0, %v3219_v28  ;;  %2711 = vmatprep.subr.bf16.mxu1 %v3283_v63 }
  0x56   : > { %2625 = vmatmul.mubr.msk.f32.vlgmr.msra.gmra.mrb[4].mxu1 %vm423_vm0, %v3219_v28  ;;  %2709 = vmatpush1.bf16.msra.mxu0 %v3288_v0 }
  0x57   : > { %2713 = vmatpush1.bf16.msra.mxu1 %v3292_v1  ;;  %917 = vmatprep.mubr.f32.mxu0 %v2957_v16 }
  0x58   : > { %988 = vmatprep.mubr.f32.mxu1 %v2957_v16  ;;  %2715 = vmatprep.subr.bf16.mxu0 %v3205_v20 }
  0x59   : > { %2626 = vmatmul.mubr.msk.f32.vlgmr.msra.gmra.mrb[6].mxu0 %vm423_vm0, %v3219_v28  ;;  %2719 = vmatprep.subr.bf16.mxu1 %v3210_v24 }
  0x5a   : > { %2627 = vmatmul.mubr.msk.f32.vlgmr.msra.gmra.mrb[6].mxu1 %vm423_vm0, %v3219_v28  ;;  %2717 = vmatpush1.bf16.msra.mxu0 %v3212_v25 }
  0x5b   : > { %2721 = vmatpush1.bf16.msra.mxu1 %v3223_v30  ;;  %1064 = vmatprep.mubr.f32.mxu0 %v2957_v16 }
  0x5c   : > { %1135 = vmatprep.mubr.f32.mxu1 %v2957_v16  ;;  %2723 = vmatprep.subr.bf16.mxu0 %v3230_v34 }
  0x5d   : > { %2629 = vmatmul.mubr.msk.f32.vlgmr.msra.gmra.mrb[8].mxu0 %vm423_vm0, %v2628_v2  ;;  %2727 = vmatprep.subr.bf16.mxu1 %v3232_v35 }
  0x5e   : > { %2630 = vmatmul.mubr.msk.f32.vlgmr.msra.gmra.mrb[8].mxu1 %vm423_vm0, %v2628_v2  ;;  %2725 = vmatpush1.bf16.msra.mxu0 %v3238_v39 }
  0x5f   : > { %2729 = vmatpush1.bf16.msra.mxu1 %v3245_v43  ;;  %1206 = vmatprep.mubr.f32.mxu0 %v2957_v16 }
  0x60   : > { %1277 = vmatprep.mubr.f32.mxu1 %v2957_v16  ;;  %2731 = vmatprep.subr.bf16.mxu0 %v3247_v44 }
  0x61   : > { %2631 = vmatmul.mubr.msk.f32.vlgmr.msra.gmra.mrb[10].mxu0 %vm423_vm0, %v2628_v2  ;;  %2735 = vmatprep.subr.bf16.mxu1 %v3254_v48 }
  0x62   : > { %2632 = vmatmul.mubr.msk.f32.vlgmr.msra.gmra.mrb[10].mxu1 %vm423_vm0, %v2628_v2  ;;  %2733 = vmatpush1.bf16.msra.mxu0 %v3262_v52 }
  0x63   : > { %2737 = vmatpush1.bf16.msra.mxu1 %v3269_v56  ;;  %1348 = vmatprep.mubr.f32.mxu0 %v2957_v16 }
  0x64   : > { %1419 = vmatprep.mubr.f32.mxu1 %v2957_v16  ;;  %2739 = vmatprep.subr.bf16.mxu0 %v3276_v60 }
  0x65   : > { %2633 = vmatmul.mubr.msk.f32.vlgmr.msra.gmra.mrb[12].mxu0 %vm423_vm0, %v2628_v2  ;;  %2743 = vmatprep.subr.bf16.mxu1 %v3283_v63 }
  0x66   : > { %2634 = vmatmul.mubr.msk.f32.vlgmr.msra.gmra.mrb[12].mxu1 %vm423_vm0, %v2628_v2  ;;  %2741 = vmatpush1.bf16.msra.mxu0 %v3288_v0 }
  0x67   : > { %2745 = vmatpush1.bf16.msra.mxu1 %v3292_v1  ;;  %1490 = vmatprep.mubr.f32.mxu0 %v2957_v16 }
  0x68   : > { %1561 = vmatprep.mubr.f32.mxu1 %v2957_v16  ;;  %2747 = vmatprep.subr.bf16.mxu0 %v3205_v20 }
  0x69   : > { %2635 = vmatmul.mubr.msk.f32.vlgmr.msra.gmra.mrb[14].mxu0 %vm423_vm0, %v2628_v2  ;;  %2751 = vmatprep.subr.bf16.mxu1 %v3210_v24 }
  0x6a   : > { %2636 = vmatmul.mubr.msk.f32.vlgmr.msra.gmra.mrb[14].mxu1 %vm423_vm0, %v2628_v2  ;;  %2749 = vmatpush1.bf16.msra.mxu0 %v3212_v25 }
  0x6b   : > { %2753 = vmatpush1.bf16.msra.mxu1 %v3223_v30  ;;  %1637 = vmatprep.mubr.f32.mxu0 %v2957_v16 }
  0x6c   : > { %1708 = vmatprep.mubr.f32.mxu1 %v2957_v16  ;;  %2755 = vmatprep.subr.bf16.mxu0 %v3230_v34 }
  0x6d   : > { %2638 = vmatmul.mubr.msk.f32.vlgmr.msra.gmra.mrb[16].mxu0 %vm423_vm0, %v2637_v3  ;;  %2759 = vmatprep.subr.bf16.mxu1 %v3232_v35 }
  0x6e   : > { %2639 = vmatmul.mubr.msk.f32.vlgmr.msra.gmra.mrb[16].mxu1 %vm423_vm0, %v2637_v3  ;;  %2757 = vmatpush1.bf16.msra.mxu0 %v3238_v39 }
  0x6f   : > { %2761 = vmatpush1.bf16.msra.mxu1 %v3245_v43  ;;  %1779 = vmatprep.mubr.f32.mxu0 %v2957_v16 }
  0x70   : > { %1850 = vmatprep.mubr.f32.mxu1 %v2957_v16  ;;  %2763 = vmatprep.subr.bf16.mxu0 %v3247_v44 }
  0x71   : > { %2640 = vmatmul.mubr.msk.f32.vlgmr.msra.gmra.mrb[18].mxu0 %vm423_vm0, %v2637_v3  ;;  %2767 = vmatprep.subr.bf16.mxu1 %v3254_v48 }
  0x72   : > { %2641 = vmatmul.mubr.msk.f32.vlgmr.msra.gmra.mrb[18].mxu1 %vm423_vm0, %v2637_v3  ;;  %2765 = vmatpush1.bf16.msra.mxu0 %v3262_v52 }
  0x73   : > { %2769 = vmatpush1.bf16.msra.mxu1 %v3269_v56  ;;  %1921 = vmatprep.mubr.f32.mxu0 %v2957_v16 }
  0x74   : > { %1992 = vmatprep.mubr.f32.mxu1 %v2957_v16  ;;  %2771 = vmatprep.subr.bf16.mxu0 %v3276_v60 }
  0x75   : > { %2642 = vmatmul.mubr.msk.f32.vlgmr.msra.gmra.mrb[20].mxu0 %vm423_vm0, %v2637_v3  ;;  %2775 = vmatprep.subr.bf16.mxu1 %v3283_v63 }
  0x76   : > { %2643 = vmatmul.mubr.msk.f32.vlgmr.msra.gmra.mrb[20].mxu1 %vm423_vm0, %v2637_v3  ;;  %2773 = vmatpush1.bf16.msra.mxu0 %v3288_v0 }
  0x77   : > { %2777 = vmatpush1.bf16.msra.mxu1 %v3292_v1  ;;  %2063 = vmatprep.mubr.f32.mxu0 %v2957_v16 }
  0x78   : > { %2134 = vmatprep.mubr.f32.mxu1 %v2957_v16 }
  0x79   : > { %2644 = vmatmul.mubr.msk.f32.vlgmr.msra.gmra.mrb[22].mxu0 %vm423_vm0, %v2637_v3 }
  0x7a   : > { %2645 = vmatmul.mubr.msk.f32.vlgmr.msra.gmra.mrb[22].mxu1 %vm423_vm0, %v2637_v3 }
 0x120   : > { %v3379_v4 = vpop.f32.mrb[0].mxu0 }
 0x121   : > { %v3381_v5 = vpop.f32.mrb[0].mxu1  ;;  %v3383_v6 = vpop.f32.mrb[1].mxu0 }
 0x122   : > { %v3385_v7 = vpop.f32.mrb[1].mxu1 }
 0x124   : > { %v3387_v8 = vpop.f32.mrb[2].mxu0 }
 0x125   : > { %v3389_v9 = vpop.f32.mrb[2].mxu1  ;;  %v3391_v10 = vpop.f32.mrb[3].mxu0 }
 0x126   : > { %v3393_v11 = vpop.f32.mrb[3].mxu1 }
 0x128   : > { %v3395_v12 = vpop.f32.mrb[4].mxu0 }
 0x129   : > { %v3397_v13 = vpop.f32.mrb[4].mxu1  ;;  %v3399_v14 = vpop.f32.mrb[5].mxu0 }
 0x12a   : > { %v3401_v15 = vpop.f32.mrb[5].mxu1 }
 0x12c   : > { %v3403_v16 = vpop.f32.mrb[6].mxu0 }
 0x12d   : > { %v3405_v17 = vpop.f32.mrb[6].mxu1  ;;  %v3407_v18 = vpop.f32.mrb[7].mxu0 }
 0x12e   : > { %v3409_v19 = vpop.f32.mrb[7].mxu1 }
 0x130   : > { %v1066_v20 = vpop.f32.mrb[8].mxu0 }
 0x131   : > { %v2141_v21 = vmax.f32 %v3379_v4, %v1066_v20  ;;  %v1137_v22 = vpop.f32.mrb[8].mxu1  ;;  %v1068_v23 = vpop.f32.mrb[9].mxu0 }
 0x132   : > { %v2143_v24 = vmax.f32 %v3381_v5, %v1137_v22  ;;  %v2142_v25 = vmax.f32 %v3383_v6, %v1068_v23  ;;  %v3414_v26 = vpop.f32.mrb[9].mxu1 }
 0x133   : > { %v2144_v27 = vmax.f32 %v3385_v7, %v3414_v26 }
 0x134   : > { %v3418_v28 = vpop.f32.mrb[10].mxu0 }
 0x135   : > { %v2145_v29 = vmax.f32 %v3387_v8, %v3418_v28  ;;  %v3422_v30 = vpop.f32.mrb[10].mxu1  ;;  %v3424_v31 = vpop.f32.mrb[11].mxu0 }
 0x136   : > { %v2147_v32 = vmax.f32 %v3389_v9, %v3422_v30  ;;  %v2146_v33 = vmax.f32 %v3391_v10, %v3424_v31  ;;  %v3430_v34 = vpop.f32.mrb[11].mxu1 }
 0x137   : > { %v2148_v35 = vmax.f32 %v3393_v11, %v3430_v34 }
 0x138   : > { %v3434_v36 = vpop.f32.mrb[12].mxu0 }
 0x139   : > { %v2149_v37 = vmax.f32 %v3395_v12, %v3434_v36  ;;  %v3438_v38 = vpop.f32.mrb[12].mxu1  ;;  %v3440_v39 = vpop.f32.mrb[13].mxu0 }
 0x13a   : > { %v2151_v40 = vmax.f32 %v3397_v13, %v3438_v38  ;;  %v2150_v41 = vmax.f32 %v3399_v14, %v3440_v39  ;;  %v3446_v42 = vpop.f32.mrb[13].mxu1 }
 0x13c   : > { %v3450_v44 = vpop.f32.mrb[14].mxu0 }
 0x13d   : > { %v3454_v46 = vpop.f32.mrb[14].mxu1  ;;  %v3456_v47 = vpop.f32.mrb[15].mxu0 }
 0x13e   : > { %v3462_v50 = vpop.f32.mrb[15].mxu1 }
 0x140   : > { %v1639_v52 = vpop.f32.mrb[16].mxu0 }
 0x141   : > { %v2157_v53 = vmax.f32 %v2141_v21, %v1639_v52  ;;  %v1710_v54 = vpop.f32.mrb[16].mxu1  ;;  %v1641_v55 = vpop.f32.mrb[17].mxu0 }
 0x142   : > { %v2159_v56 = vmax.f32 %v2143_v24, %v1710_v54  ;;  %v2158_v57 = vmax.f32 %v2142_v25, %v1641_v55  ;;  %v1712_v58 = vpop.f32.mrb[17].mxu1 }
 0x143   : > { %v2173_v59 = vsub.f32 %v3379_v4, %v2157_v53  ;;  %v2221_v60 = vsub.f32 %v1066_v20, %v2157_v53  ;;  %v2269_v61 = vsub.f32 %v1639_v52, %v2157_v53  ;;  %v2160_v62 = vmax.f32 %v2144_v27, %v1712_v58 }
 0x144   : > { %v2175_v63 = vsub.f32 %v3381_v5, %v2159_v56  ;;  %v2223_v0 = vsub.f32 %v1137_v22, %v2159_v56  ;;  %v2271_v1 = vsub.f32 %v1710_v54, %v2159_v56  ;;  %v2174_v2 = vsub.f32 %v3383_v6, %v2158_v57  ;;  %v1781_v3 = vpop.f32.mrb[18].mxu0 }
 0x145   : > { %v2189_v51 = vmul.f32 1.442695, %v2173_v59  ;;  %v2237_v21 = vmul.f32 1.442695, %v2221_v60  ;;  %v2285_v49 = vmul.f32 1.442695, %v2269_v61  ;;  %v2222_v48 = vsub.f32 %v1068_v23, %v2158_v57 }
 0x146   : > { %v2193_v24 = vmul.f32 1.442695, %v2175_v63  ;;  %v2241_v25 = vmul.f32 1.442695, %v2223_v0  ;;  %v2289_v45 = vmul.f32 1.442695, %v2271_v1  ;;  %v2270_v43 = vsub.f32 %v1641_v55, %v2158_v57 }
 0x147   : > { %2805 = vpow2.f32 %v2189_v51  ;;  %v2191_v4 = vmul.f32 1.442695, %v2174_v2  ;;  %v2239_v20 = vmul.f32 1.442695, %v2222_v48  ;;  %v2176_v27 = vsub.f32 %v3385_v7, %v2160_v62  ;;  %v1852_v5 = vpop.f32.mrb[18].mxu1  ;;  %v1783_v22 = vpop.f32.mrb[19].mxu0 }
 0x148   : > { %2807 = vpow2.f32 %v2237_v21  ;;  %v2287_v6 = vmul.f32 1.442695, %v2270_v43  ;;  %v2224_v52 = vsub.f32 %v3414_v26, %v2160_v62  ;;  %v2272_v53 = vsub.f32 %v1712_v58, %v2160_v62  ;;  %v3475_v23 = vpop.f32.mrb[19].mxu1  ;;  %v3477_v54 = vpop.f32.mrb[20].mxu0 }
 0x149   : > { %2809 = vpow2.f32 %v2285_v49  ;;  %v2195_v51 = vmul.f32 1.442695, %v2176_v27  ;;  %v2161_v55 = vmax.f32 %v2145_v29, %v1781_v3  ;;  %v2163_v48 = vmax.f32 %v2147_v32, %v1852_v5  ;;  %v3479_v56 = vpop.f32.mrb[20].mxu1  ;;  %v3481_v7 = vpop.f32.mrb[21].mxu0 }
 0x14a   : > { %2811 = vpow2.f32 %v2193_v24  ;;  %v2243_v57 = vmul.f32 1.442695, %v2224_v52  ;;  %v2291_v59 = vmul.f32 1.442695, %v2272_v53  ;;  %v2162_v26 = vmax.f32 %v2146_v33, %v1783_v22  ;;  %v3486_v43 = vpop.f32.mrb[21].mxu1  ;;  %v2646_v24 = vld [vmem:[%s3499_s12 + $0x80] sm:$0xff] }
 0x14b   : > { %2813 = vpow2.f32 %v2241_v25  ;;  %v2177_v58 = vsub.f32 %v3387_v8, %v2161_v55  ;;  %v2225_v29 = vsub.f32 %v3418_v28, %v2161_v55  ;;  %v2273_v32 = vsub.f32 %v1781_v3, %v2161_v55  ;;  %v2662_v25 = vld [vmem:[%s3499_s12 + $0x100] sm:$0xff]  ;;  %v2351_v52 = vld [vmem:[%s3499_s12 + $0x10] sm:$0xff] }
 0x14c   : > { %2815 = vpow2.f32 %v2289_v45  ;;  %v2179_v49 = vsub.f32 %v3389_v9, %v2163_v48  ;;  %v2227_v60 = vsub.f32 %v3422_v30, %v2163_v48  ;;  %v2275_v61 = vsub.f32 %v1852_v5, %v2163_v48  ;;  %v3492_v62 = vpop.f32.mrb[22].mxu0  ;;  %v2349_v9 = vld [vmem:[%s3499_s12] sm:$0xff] }
 0x14d   : > { %2817 = vpow2.f32 %v2191_v4  ;;  %v2197_v63 = vmul.f32 1.442695, %v2177_v58  ;;  %v2245_v33 = vmul.f32 1.442695, %v2225_v29  ;;  %v2293_v0 = vmul.f32 1.442695, %v2273_v32 }
 0x14e   : > { %2819 = vpow2.f32 %v2239_v20  ;;  %v2201_v1 = vmul.f32 1.442695, %v2179_v49  ;;  %v3494_v2 = vmul.f32 1.442695, %v2227_v60  ;;  %v3496_v8 = vmul.f32 1.442695, %v2275_v61 }
 0x14f   : > { %2821 = vpow2.f32 %v2287_v6  ;;  %v2178_v28 = vsub.f32 %v3391_v10, %v2162_v26  ;;  %v2226_v30 = vsub.f32 %v3424_v31, %v2162_v26  ;;  %v2274_v45 = vsub.f32 %v1783_v22, %v2162_v26  ;;  %v3504_v3 = vpop.f32.mrb[22].mxu1  ;;  %v3506_v21 = vpop.f32.mrb[23].mxu0 }
 0x150   : > { %2823 = vpow2.f32 %v2195_v51  ;;  %v2164_v4 = vmax.f32 %v2148_v35, %v3475_v23  ;;  %v3518_v10 = vmax.f32 %v2149_v37, %v3477_v54  ;;  %v3524_v31 = vmax.f32 %v2151_v40, %v3479_v56  ;;  %v3526_v20 = vpop.f32.mrb[23].mxu1 }
 0x151   : > { %v2806_v27 = vpop.eup %2805  ;;  %2825 = vpow2.f32 %v2243_v57  ;;  %v3528_v5 = vmul.f32 1.442695, %v2178_v28  ;;  %v3530_v35 = vmul.f32 1.442695, %v2226_v30  ;;  %v3532_v22 = vmul.f32 1.442695, %v2274_v45 }
 0x152   : > { %v2808_v37 = vpop.eup %2807  ;;  %v2365_v6 = vmul.f32 %v2806_v27, %v2349_v9  ;;  %2827 = vpow2.f32 %v2291_v59  ;;  %v2180_v53 = vsub.f32 %v3393_v11, %v2164_v4  ;;  %v2228_v40 = vsub.f32 %v3430_v34, %v2164_v4  ;;  %v2648_v57 = vld [vmem:[%s3499_s12 + $0x90] sm:$0xff]  ;;  %v2350_v9 = vld [vmem:[%s3499_s12 + $0x8] sm:$0xff] }
 0x153   : > { %v2810_v51 = vpop.eup %2809  ;;  %v2317_v55 = vadd.f32 %v2808_v37, %v2806_v27  ;;  %v2398_v48 = vmul.f32 %v2808_v37, %v2646_v24  ;;  %2829 = vpow2.f32 %v2197_v63  ;;  %v2276_v26 = vsub.f32 %v3475_v23, %v2164_v4  ;;  %v2664_v59 = vld [vmem:[%s3499_s12 + $0x110] sm:$0xff]  ;;  %v2647_v30 = vld [vmem:[%s3499_s12 + $0x88] sm:$0xff] }
 0x154   : > { %v2812_v58 = vpop.eup %2811  ;;  %v2447_v29 = vmul.f32 %v2810_v51, %v2662_v25  ;;  %2831 = vpow2.f32 %v2245_v33  ;;  %v3544_v11 = vmul.f32 1.442695, %v2180_v53  ;;  %v3546_v34 = vmul.f32 1.442695, %v2228_v40  ;;  %v2663_v4 = vld [vmem:[%s3499_s12 + $0x108] sm:$0xff] }
 0x155   : > { %v2814_v32 = vpop.eup %2813  ;;  %v2333_v49 = vadd.f32 %v2810_v51, %v2317_v55  ;;  %v2414_v60 = vadd.f32 %v2398_v48, %v2365_v6  ;;  %v2367_v61 = vmul.f32 %v2812_v58, %v2351_v52  ;;  %2833 = vpow2.f32 %v2293_v0  ;;  %v2649_v55 = vld [vmem:[%s3499_s12 + $0x98] sm:$0xff] }
 0x156   : > { %v2816_v28 = vpop.eup %2815  ;;  %v2319_v23 = vadd.f32 %v2814_v32, %v2812_v58  ;;  %v2400_v63 = vmul.f32 %v2814_v32, %v2648_v57  ;;  %2835 = vpow2.f32 %v2201_v1  ;;  %v3551_v45 = vmul.f32 1.442695, %v2276_v26  ;;  %v2352_v1 = vld [vmem:[%s3499_s12 + $0x18] sm:$0xff] }
 0x157   : > { %v2818_v33 = vpop.eup %2817  ;;  %v3553_v24 = vadd.f32 %v2447_v29, %v2414_v60  ;;  %2837 = vrcp.f32 %v2333_v49  ;;  %v2449_v25 = vmul.f32 %v2816_v28, %v2664_v59  ;;  %v2181_v0 = vsub.f32 %v3395_v12, %v3518_v10  ;;  %v2665_v58 = vld [vmem:[%s3499_s12 + $0x118] sm:$0xff]  ;;  %v2353_v49 = vld [vmem:[%s3499_s12 + $0x20] sm:$0xff] }
 0x158   : > { %v2820_v27 = vpop.eup %2819  ;;  %v2335_v37 = vadd.f32 %v2816_v28, %v2319_v23  ;;  %v2416_v6 = vadd.f32 %v2400_v63, %v2367_v61  ;;  %v2366_v52 = vmul.f32 %v2818_v33, %v2350_v9  ;;  %2839 = vpow2.f32 %v3494_v2  ;;  %v2650_v28 = vld [vmem:[%s3499_s12 + $0xa0] sm:$0xff] }
 0x159   : > { %v2822_v53 = vpop.eup %2821  ;;  %v2318_v40 = vadd.f32 %v2820_v27, %v2818_v33  ;;  %v2399_v51 = vmul.f32 %v2820_v27, %v2647_v30  ;;  %2841 = vpow2.f32 %v3496_v8  ;;  %v3562_v48 = vmul.f32 1.442695, %v2181_v0  ;;  %v2666_v33 = vld [vmem:[%s3499_s12 + $0x120] sm:$0xff] }
 0x15a   : > { %v2824_v57 = vpop.eup %2823  ;;  %v3569_v12 = vadd.f32 %v2449_v25, %v2416_v6  ;;  %2843 = vrcp.f32 %v2335_v37  ;;  %v2448_v26 = vmul.f32 %v2822_v53, %v2663_v4  ;;  %v2229_v2 = vsub.f32 %v3434_v36, %v3518_v10  ;;  %v2355_v37 = vld [vmem:[%s3499_s12 + $0x30] sm:$0xff] }
 0x15b   : > { %v2826_v29 = vpop.eup %2825  ;;  %v2334_v59 = vadd.f32 %v2822_v53, %v2318_v40  ;;  %v2415_v32 = vadd.f32 %v2399_v51, %v2366_v52  ;;  %v2368_v8 = vmul.f32 %v2824_v57, %v2352_v1  ;;  %2845 = vpow2.f32 %v3528_v5 }
 0x15c   : > { %v2828_v60 = vpop.eup %2827  ;;  %v2320_v61 = vadd.f32 %v2826_v29, %v2824_v57  ;;  %v2401_v9 = vmul.f32 %v2826_v29, %v2649_v55  ;;  %2847 = vpow2.f32 %v3530_v35  ;;  %v2253_v23 = vmul.f32 1.442695, %v2229_v2 }
 0x15d   : > { %v2830_v63 = vpop.eup %2829  ;;  %v3578_v30 = vadd.f32 %v2448_v26, %v2415_v32  ;;  %2849 = vrcp.f32 %v2334_v59  ;;  %v2450_v36 = vmul.f32 %v2828_v60, %v2665_v58  ;;  %v2277_v25 = vsub.f32 %v3477_v54, %v3518_v10  ;;  %v2652_v10 = vld [vmem:[%s3499_s12 + $0xb0] sm:$0xff] }
 0x15e   : > { %v2832_v4 = vpop.eup %2831  ;;  %v2336_v5 = vadd.f32 %v2828_v60, %v2320_v61  ;;  %v2417_v0 = vadd.f32 %v2401_v9, %v2368_v8  ;;  %v2369_v27 = vmul.f32 %v2830_v63, %v2353_v49  ;;  %2851 = vpow2.f32 %v3532_v22  ;;  %v2668_v26 = vld [vmem:[%s3499_s12 + $0x130] sm:$0xff]  ;;  %v2354_v60 = vld [vmem:[%s3499_s12 + $0x28] sm:$0xff] }
 0x15f   : > { %v2834_v35 = vpop.eup %2833  ;;  %v2321_v6 = vadd.f32 %v2832_v4, %v2830_v63  ;;  %v2402_v52 = vmul.f32 %v2832_v4, %v2650_v28  ;;  %2853 = vpow2.f32 %v3544_v11  ;;  %v2301_v1 = vmul.f32 1.442695, %v2277_v25  ;;  %v2651_v9 = vld [vmem:[%s3499_s12 + $0xa8] sm:$0xff] }
 0x160   : > { %v2836_v53 = vpop.eup %2835  ;;  %v3587_v40 = vadd.f32 %v2450_v36, %v2417_v0  ;;  %2855 = vrcp.f32 %v2336_v5  ;;  %v2451_v54 = vmul.f32 %v2834_v35, %v2666_v33  ;;  %v2183_v51 = vsub.f32 %v3397_v13, %v3524_v31  ;;  %v2667_v4 = vld [vmem:[%s3499_s12 + $0x128] sm:$0xff] }
 0x161   : > { %v2838_v55 = vpop.eup %2837  ;;  %v2337_v22 = vadd.f32 %v2834_v35, %v2321_v6  ;;  %v2418_v57 = vadd.f32 %v2402_v52, %v2369_v27  ;;  %v2371_v11 = vmul.f32 %v2836_v53, %v2355_v37  ;;  %2857 = vpow2.f32 %v3546_v34 }
 0x162   : > { %v2840_v58 = vpop.eup %2839  ;;  %v2495_v2 = vmul.f32 %v2838_v55, %v3553_v24  ;;  %2859 = vpow2.f32 %v3551_v45  ;;  %v2209_v13 = vmul.f32 1.442695, %v2183_v51  ;;  %v2231_v29 = vsub.f32 %v3438_v38, %v3524_v31  ;;  %v2669_v55 = vld [vmem:[%s3499_s12 + $0x138] sm:$0xff] }
 0x163   : > { %v2842_v59 = vpop.eup %2841  ;;  %v3603_v32 = vadd.f32 %v2451_v54, %v2418_v57  ;;  %2861 = vrcp.f32 %v2337_v22  ;;  %v2323_v8 = vadd.f32 %v2840_v58, %v2836_v53  ;;  %v2404_v49 = vmul.f32 %v2840_v58, %v2652_v10  ;;  %v2653_v54 = vld [vmem:[%s3499_s12 + $0xb8] sm:$0xff] }
 0x164   : > { %v2844_v61 = vpop.eup %2843  ;;  %2511 = vst [vmem:[%s3595_s26] sm:$0xff] %v2495_v2  ;;  %v2453_v34 = vmul.f32 %v2842_v59, %v2668_v26  ;;  %2863 = vpow2.f32 %v3562_v48  ;;  %v2257_v45 = vmul.f32 1.442695, %v2231_v29  ;;  %v2279_v24 = vsub.f32 %v3479_v56, %v3524_v31 }
 0x165   : > { %v2846_v38 = vpop.eup %2845  ;;  %v2497_v28 = vmul.f32 %v2844_v61, %v3569_v12  ;;  %v2339_v63 = vadd.f32 %v2842_v59, %v2323_v8  ;;  %v2420_v36 = vadd.f32 %v2404_v49, %v2371_v11  ;;  %2865 = vpow2.f32 %v2253_v23  ;;  %v2356_v23 = vld [vmem:[%s3499_s12 + $0x38] sm:$0xff] }
 0x166   : > { %v2848_v33 = vpop.eup %2847  ;;  %v2370_v25 = vmul.f32 %v2846_v38, %v2354_v60  ;;  %2867 = vpow2.f32 %v2301_v1  ;;  %v2305_v5 = vmul.f32 1.442695, %v2279_v24  ;;  %v2166_v48 = vmax.f32 %v2150_v41, %v3481_v7 }
 0x167   : > { %v2850_v0 = vpop.eup %2849  ;;  %2513 = vst [vmem:[%s3595_s26 + $0x10] sm:$0xff] %v2497_v28  ;;  %v3618_v56 = vadd.f32 %v2453_v34, %v2420_v36  ;;  %2869 = vrcp.f32 %v2339_v63  ;;  %v2322_v31 = vadd.f32 %v2848_v33, %v2846_v38  ;;  %v2403_v12 = vmul.f32 %v2848_v33, %v2651_v9  ;;  %v2670_v38 = vld [vmem:[%s3499_s12 + $0x140] sm:$0xff] }
 0x168   : > { %v2852_v27 = vpop.eup %2851  ;;  %v2496_v37 = vmul.f32 %v2850_v0, %v3578_v30  ;;  %2871 = vpow2.f32 %v2209_v13  ;;  %v2182_v35 = vsub.f32 %v3399_v14, %v2166_v48  ;;  %v2230_v6 = vsub.f32 %v3440_v39, %v2166_v48  ;;  %v2357_v13 = vld [vmem:[%s3499_s12 + $0x40] sm:$0xff]  ;;  %v2359_v0 = vld [vmem:[%s3499_s12 + $0x50] sm:$0xff] }
 0x169   : > { %v2854_v41 = vpop.eup %2853  ;;  %v2338_v52 = vadd.f32 %v2852_v27, %v2322_v31  ;;  %v2419_v1 = vadd.f32 %v2403_v12, %v2370_v25  ;;  %v2452_v53 = vmul.f32 %v2852_v27, %v2667_v4  ;;  %2873 = vpow2.f32 %v2257_v45  ;;  %v2656_v31 = vld [vmem:[%s3499_s12 + $0xd0] sm:$0xff] }
 0x16a   : > { %v2856_v10 = vpop.eup %2855  ;;  %2512 = vst [vmem:[%s3595_s26 + $0x8] sm:$0xff] %v2496_v37  ;;  %v2372_v51 = vmul.f32 %v2854_v41, %v2356_v23  ;;  %2875 = vpow2.f32 %v2305_v5  ;;  %v2207_v22 = vmul.f32 1.442695, %v2182_v35  ;;  %v2255_v30 = vmul.f32 1.442695, %v2230_v6 }
 0x16b   : > { %v2858_v57 = vpop.eup %2857  ;;  %v2498_v14 = vmul.f32 %v2856_v10, %v3587_v40  ;;  %v3628_v39 = vadd.f32 %v2452_v53, %v2419_v1  ;;  %2877 = vrcp.f32 %v2338_v52  ;;  %v2278_v11 = vsub.f32 %v3481_v7, %v2166_v48  ;;  %v2654_v40 = vld [vmem:[%s3499_s12 + $0xc0] sm:$0xff] }
 0x16c   : > { %v2860_v26 = vpop.eup %2859  ;;  %v2324_v58 = vadd.f32 %v2858_v57, %v2854_v41  ;;  %v2405_v2 = vmul.f32 %v2858_v57, %v2653_v54  ;;  %2879 = vpow2.f32 %v2207_v22  ;;  %v3721_v29 = vmax.f32 %v3401_v15, %v3446_v42  ;;  %v2672_v41 = vld [vmem:[%s3499_s12 + $0x150] sm:$0xff] }
 0x16d   : > { %v2862_v8 = vpop.eup %2861  ;;  %2514 = vst [vmem:[%s3595_s26 + $0x18] sm:$0xff] %v2498_v14  ;;  %v2454_v49 = vmul.f32 %v2860_v26, %v2669_v55  ;;  %2881 = vpow2.f32 %v2255_v30  ;;  %v2303_v60 = vmul.f32 1.442695, %v2278_v11  ;;  %v3722_v7 = vmax.f32 %v3403_v16, %v3450_v44  ;;  %v2358_v30 = vld [vmem:[%s3499_s12 + $0x48] sm:$0xff] }
 0x16e   : > { %v2168_v59 = vmax.f32 %v3721_v29, %v3486_v43  ;;  %v2864_v34 = vpop.eup %2863  ;;  %v2499_v9 = vmul.f32 %v2862_v8, %v3603_v32  ;;  %v2340_v45 = vadd.f32 %v2860_v26, %v2324_v58  ;;  %v2421_v24 = vadd.f32 %v2405_v2, %v2372_v51  ;;  %v2655_v11 = vld [vmem:[%s3499_s12 + $0xc8] sm:$0xff] }
 0x16f   : > { %v2169_v61 = vmax.f32 %v3722_v7, %v3492_v62  ;;  %v2866_v63 = vpop.eup %2865  ;;  %v2373_v36 = vmul.f32 %v2864_v34, %v2357_v13  ;;  %2883 = vpow2.f32 %v2303_v60 }
 0x170   : > { %v2184_v28 = vsub.f32 %v3401_v15, %v2168_v59  ;;  %v2232_v33 = vsub.f32 %v3446_v42, %v2168_v59  ;;  %v2280_v25 = vsub.f32 %v3486_v43, %v2168_v59  ;;  %v2868_v4 = vpop.eup %2867  ;;  %2515 = vst [vmem:[%s3595_s26 + $0x20] sm:$0xff] %v2499_v9  ;;  %v2470_v5 = vadd.f32 %v2454_v49, %v2421_v24  ;;  %v2671_v59 = vld [vmem:[%s3499_s12 + $0x148] sm:$0xff] }
 0x171   : > { %2885 = vrcp.f32 %v2340_v45  ;;  %v2325_v32 = vadd.f32 %v2866_v63, %v2864_v34  ;;  %v2406_v48 = vmul.f32 %v2866_v63, %v2654_v40  ;;  %v2870_v12 = vpop.eup %2869  ;;  %v2455_v23 = vmul.f32 %v2868_v4, %v2670_v38 }
 0x172   : > { %v2211_v15 = vmul.f32 1.442695, %v2184_v28  ;;  %v2259_v27 = vmul.f32 1.442695, %v2232_v33  ;;  %v2307_v37 = vmul.f32 1.442695, %v2280_v25  ;;  %v2872_v35 = vpop.eup %2871  ;;  %v2501_v42 = vmul.f32 %v2870_v12, %v3618_v56 }
 0x173   : > { %v2341_v43 = vadd.f32 %v2868_v4, %v2325_v32  ;;  %v2422_v6 = vadd.f32 %v2406_v48, %v2373_v36  ;;  %v2185_v52 = vsub.f32 %v3403_v16, %v2169_v61  ;;  %v2874_v1 = vpop.eup %2873  ;;  %v2375_v53 = vmul.f32 %v2872_v35, %v2359_v0  ;;  %v2360_v36 = vld [vmem:[%s3499_s12 + $0x58] sm:$0xff] }
 0x174   : > { %2887 = vpow2.f32 %v2211_v15  ;;  %v2233_v54 = vsub.f32 %v3450_v44, %v2169_v61  ;;  %v2281_v10 = vsub.f32 %v3492_v62, %v2169_v61  ;;  %v2876_v51 = vpop.eup %2875  ;;  %2517 = vst [vmem:[%s3595_s26 + $0x30] sm:$0xff] %v2501_v42  ;;  %v2327_v22 = vadd.f32 %v2874_v1, %v2872_v35  ;;  %v2657_v12 = vld [vmem:[%s3499_s12 + $0xd8] sm:$0xff] }
 0x175   : > { %v2471_v55 = vadd.f32 %v2455_v23, %v2422_v6  ;;  %2889 = vrcp.f32 %v2341_v43  ;;  %v2408_v56 = vmul.f32 %v2874_v1, %v2656_v31  ;;  %v2878_v57 = vpop.eup %2877  ;;  %v2457_v14 = vmul.f32 %v2876_v51, %v2672_v41  ;;  %v2673_v15 = vld [vmem:[%s3499_s12 + $0x158] sm:$0xff]  ;;  %v2361_v43 = vld [vmem:[%s3499_s12 + $0x60] sm:$0xff] }
 0x176   : > { %2891 = vpow2.f32 %v2259_v27  ;;  %v2213_v16 = vmul.f32 1.442695, %v2185_v52  ;;  %v2261_v26 = vmul.f32 1.442695, %v2233_v54  ;;  %v2880_v58 = vpop.eup %2879  ;;  %v2500_v44 = vmul.f32 %v2878_v57, %v3628_v39 }
 0x177   : > { %v2343_v2 = vadd.f32 %v2876_v51, %v2327_v22  ;;  %v2424_v62 = vadd.f32 %v2408_v56, %v2375_v53  ;;  %2893 = vpow2.f32 %v2307_v37  ;;  %v2882_v13 = vpop.eup %2881  ;;  %v2374_v29 = vmul.f32 %v2880_v58, %v2358_v30  ;;  %v2658_v22 = vld [vmem:[%s3499_s12 + $0xe0] sm:$0xff] }
 0x178   : > { %2895 = vpow2.f32 %v2213_v16  ;;  %v2309_v8 = vmul.f32 1.442695, %v2281_v10  ;;  %v3723_v49 = vmax.f32 %v3405_v17, %v3454_v46  ;;  %2516 = vst [vmem:[%s3595_s26 + $0x28] sm:$0xff] %v2500_v44  ;;  %v2326_v7 = vadd.f32 %v2882_v13, %v2880_v58 }
 0x179   : > { %v2473_v60 = vadd.f32 %v2457_v14, %v2424_v62  ;;  %2897 = vrcp.f32 %v2343_v2  ;;  %v2407_v61 = vmul.f32 %v2882_v13, %v2655_v11  ;;  %v2884_v39 = vpop.eup %2883  ;;  %v2674_v14 = vld [vmem:[%s3499_s12 + $0x160] sm:$0xff] }
 0x17a   : > { %v2171_v40 = vmax.f32 %v3723_v49, %v3504_v3  ;;  %2899 = vpow2.f32 %v2261_v26  ;;  %v2342_v38 = vadd.f32 %v2884_v39, %v2326_v7  ;;  %v2456_v63 = vmul.f32 %v2884_v39, %v2671_v59 }
 0x17b   : > { %v2886_v24 = vpop.eup %2885  ;;  %v2423_v28 = vadd.f32 %v2407_v61, %v2374_v29  ;;  %2901 = vpow2.f32 %v2309_v8  ;;  %v2363_v29 = vld [vmem:[%s3499_s12 + $0x70] sm:$0xff] }
 0x17c   : > { %v2187_v34 = vsub.f32 %v3405_v17, %v2171_v40  ;;  %v2235_v9 = vsub.f32 %v3454_v46, %v2171_v40  ;;  %v2283_v45 = vsub.f32 %v3504_v3, %v2171_v40  ;;  %v2502_v33 = vmul.f32 %v2886_v24, %v2470_v5  ;;  %v2676_v61 = vld [vmem:[%s3499_s12 + $0x170] sm:$0xff] }
 0x17d   : > { %v2472_v48 = vadd.f32 %v2456_v63, %v2423_v28  ;;  %2903 = vrcp.f32 %v2342_v38  ;;  %v3724_v17 = vmax.f32 %v3407_v18, %v3456_v47  ;;  %v3725_v3 = vmax.f32 %v3409_v19, %v3462_v50  ;;  %v2362_v63 = vld [vmem:[%s3499_s12 + $0x68] sm:$0xff] }
 0x17e   : > { %v2217_v25 = vmul.f32 1.442695, %v2187_v34  ;;  %v2265_v4 = vmul.f32 1.442695, %v2235_v9  ;;  %v2313_v32 = vmul.f32 1.442695, %v2283_v45  ;;  %v2888_v31 = vpop.eup %2887 }
 0x17f   : > { %v2170_v46 = vmax.f32 %v3724_v17, %v3506_v21  ;;  %v2172_v0 = vmax.f32 %v3725_v3, %v3526_v20  ;;  %2518 = vst [vmem:[%s3595_s26 + $0x38] sm:$0xff] %v2502_v33  ;;  %v2890_v5 = vpop.eup %2889  ;;  %v2376_v23 = vmul.f32 %v2888_v31, %v2360_v36 }
 0x180   : > { %2905 = vpow2.f32 %v2217_v25  ;;  %v2892_v35 = vpop.eup %2891  ;;  %v2503_v42 = vmul.f32 %v2890_v5, %v2471_v55  ;;  %v2659_v25 = vld [vmem:[%s3499_s12 + $0xe8] sm:$0xff] }
 0x181   : > { %2907 = vpow2.f32 %v2265_v4  ;;  %v2186_v27 = vsub.f32 %v3407_v18, %v2170_v46  ;;  %v2234_v37 = vsub.f32 %v3456_v47, %v2170_v46  ;;  %v2282_v6 = vsub.f32 %v3506_v21, %v2170_v46  ;;  %v2894_v52 = vpop.eup %2893  ;;  %v2675_v46 = vld [vmem:[%s3499_s12 + $0x168] sm:$0xff] }
 0x182   : > { %2909 = vpow2.f32 %v2313_v32  ;;  %v2188_v41 = vsub.f32 %v3409_v19, %v2172_v0  ;;  %v2328_v1 = vadd.f32 %v2892_v35, %v2888_v31  ;;  %v2409_v53 = vmul.f32 %v2892_v35, %v2657_v12  ;;  %v2896_v51 = vpop.eup %2895  ;;  %2519 = vst [vmem:[%s3595_s26 + $0x40] sm:$0xff] %v2503_v42  ;;  %v2364_v12 = vld [vmem:[%s3499_s12 + $0x78] sm:$0xff] }
 0x183   : > { %v2215_v54 = vmul.f32 1.442695, %v2186_v27  ;;  %v2263_v10 = vmul.f32 1.442695, %v2234_v37  ;;  %v2458_v18 = vmul.f32 %v2894_v52, %v2673_v15  ;;  %v2311_v56 = vmul.f32 1.442695, %v2282_v6  ;;  %v2898_v30 = vpop.eup %2897 }
 0x184   : > { %v2219_v47 = vmul.f32 1.442695, %v2188_v41  ;;  %v2236_v55 = vsub.f32 %v3462_v50, %v2172_v0  ;;  %v2344_v57 = vadd.f32 %v2894_v52, %v2328_v1  ;;  %v2425_v21 = vadd.f32 %v2409_v53, %v2376_v23  ;;  %v2900_v11 = vpop.eup %2899  ;;  %v2661_v15 = vld [vmem:[%s3499_s12 + $0xf8] sm:$0xff] }
 0x185   : > { %v2377_v19 = vmul.f32 %v2896_v51, %v2361_v43  ;;  %2911 = vpow2.f32 %v2215_v54  ;;  %v2505_v16 = vmul.f32 %v2898_v30, %v2473_v60  ;;  %v2284_v58 = vsub.f32 %v3526_v20, %v2172_v0  ;;  %v2902_v44 = vpop.eup %2901  ;;  %v2660_v60 = vld [vmem:[%s3499_s12 + $0xf0] sm:$0xff]  ;;  %v2677_v41 = vld [vmem:[%s3499_s12 + $0x178] sm:$0xff] }
 0x186   : > { %2913 = vpow2.f32 %v2263_v10  ;;  %v2267_v26 = vmul.f32 1.442695, %v2236_v55  ;;  %v2474_v2 = vadd.f32 %v2458_v18, %v2425_v21  ;;  %v2329_v50 = vadd.f32 %v2900_v11, %v2896_v51 }
 0x187   : > { %2915 = vrcp.f32 %v2344_v57  ;;  %v2410_v62 = vmul.f32 %v2900_v11, %v2658_v22  ;;  %2521 = vst [vmem:[%s3595_s26 + $0x50] sm:$0xff] %v2505_v16  ;;  %v2459_v13 = vmul.f32 %v2902_v44, %v2674_v14  ;;  %v2315_v59 = vmul.f32 1.442695, %v2284_v58  ;;  %v2904_v8 = vpop.eup %2903 }
 0x188   : > { %2917 = vpow2.f32 %v2311_v56  ;;  %v2345_v49 = vadd.f32 %v2902_v44, %v2329_v50  ;;  %v2504_v20 = vmul.f32 %v2904_v8, %v2472_v48 }
 0x189   : > { %v2426_v40 = vadd.f32 %v2410_v62, %v2377_v19  ;;  %2919 = vpow2.f32 %v2219_v47 }
 0x18a   : > { %v2906_v7 = vpop.eup %2905  ;;  %2921 = vpow2.f32 %v2267_v26  ;;  %2520 = vst [vmem:[%s3595_s26 + $0x48] sm:$0xff] %v2504_v20 }
 0x18b   : > { %v2908_v39 = vpop.eup %2907  ;;  %v2475_v34 = vadd.f32 %v2459_v13, %v2426_v40  ;;  %2923 = vrcp.f32 %v2345_v49  ;;  %v2379_v9 = vmul.f32 %v2906_v7, %v2363_v29 }
 0x18c   : > { %v2910_v45 = vpop.eup %2909  ;;  %v2331_v24 = vadd.f32 %v2908_v39, %v2906_v7  ;;  %v2412_v38 = vmul.f32 %v2908_v39, %v2660_v60  ;;  %2925 = vpow2.f32 %v2315_v59 }
 0x18d   : > { %v2461_v28 = vmul.f32 %v2910_v45, %v2676_v61 }
 0x18e   : > { %v2347_v36 = vadd.f32 %v2910_v45, %v2331_v24  ;;  %v2428_v33 = vadd.f32 %v2412_v38, %v2379_v9 }
 0x18f   : > { %v2912_v4 = vpop.eup %2911 }
 0x190   : > { %v2914_v32 = vpop.eup %2913  ;;  %v2477_v48 = vadd.f32 %v2461_v28, %v2428_v33  ;;  %2927 = vrcp.f32 %v2347_v36  ;;  %v2378_v17 = vmul.f32 %v2912_v4, %v2362_v63 }
 0x191   : > { %v2916_v3 = vpop.eup %2915  ;;  %v2330_v0 = vadd.f32 %v2914_v32, %v2912_v4  ;;  %v2411_v31 = vmul.f32 %v2914_v32, %v2659_v25 }
 0x192   : > { %v2918_v5 = vpop.eup %2917  ;;  %v2506_v23 = vmul.f32 %v2916_v3, %v2474_v2 }
 0x193   : > { %v2920_v27 = vpop.eup %2919  ;;  %v2346_v37 = vadd.f32 %v2918_v5, %v2330_v0  ;;  %v2427_v35 = vadd.f32 %v2411_v31, %v2378_v17  ;;  %v2460_v42 = vmul.f32 %v2918_v5, %v2675_v46 }
 0x194   : > { %v2922_v43 = vpop.eup %2921  ;;  %2522 = vst [vmem:[%s3595_s26 + $0x58] sm:$0xff] %v2506_v23  ;;  %v2380_v6 = vmul.f32 %v2920_v27, %v2364_v12 }
 0x195   : > { %v2924_v52 = vpop.eup %2923  ;;  %v2476_v1 = vadd.f32 %v2460_v42, %v2427_v35  ;;  %2929 = vrcp.f32 %v2346_v37  ;;  %v2332_v53 = vadd.f32 %v2922_v43, %v2920_v27  ;;  %v2413_v54 = vmul.f32 %v2922_v43, %v2661_v15 }
 0x196   : > { %v2926_v10 = vpop.eup %2925  ;;  %v2507_v51 = vmul.f32 %v2924_v52, %v2475_v34 }
 0x197   : > { %v2348_v18 = vadd.f32 %v2926_v10, %v2332_v53  ;;  %v2429_v22 = vadd.f32 %v2413_v54, %v2380_v6  ;;  %v2462_v56 = vmul.f32 %v2926_v10, %v2677_v41 }
 0x198   : > { %2523 = vst [vmem:[%s3595_s26 + $0x60] sm:$0xff] %v2507_v51 }
 0x199   : > { %v2478_v47 = vadd.f32 %v2462_v56, %v2429_v22  ;;  %2931 = vrcp.f32 %v2348_v18 }
 0x19a   : > { %v2928_v55 = vpop.eup %2927 }
 0x19b   : > { %v2509_v30 = vmul.f32 %v2928_v55, %v2477_v48 }
 0x19d   : > { %2525 = vst [vmem:[%s3595_s26 + $0x70] sm:$0xff] %v2509_v30 }
 0x19f   : > { %v2930_v57 = vpop.eup %2929 }
 0x1a0   : > { %v2508_v21 = vmul.f32 %v2930_v57, %v2476_v1 }
 0x1a2   : > { %2524 = vst [vmem:[%s3595_s26 + $0x68] sm:$0xff] %v2508_v21 }
 0x1a3   : > { %v2932_v19 = vpop.eup %2931 }
 0x1a4   : > { %v2510_v14 = vmul.f32 %v2932_v19, %v2478_v47 }
 0x1a6   : > { %2526 = vst [vmem:[%s3595_s26 + $0x78] sm:$0xff] %v2510_v14 }
 0x1a7 PF: > { %p10_p9 = scmp.ge.s32.totalorder %s2995_s16, 4   ;;  %s3726_s12 = smov %s2951_s13 }
 0x1a8   : > { %s3727_s13 = smov %s3004_s19  ;;  %s3728_s14 = smov %s2995_s16 }
 0x1a9   :  { %12 = sbr.rel (!%p10_p9) target bundleno = 2 (0x2), region = 125 }

// kernel: _lambda_.6
= control target key start
LH: loop header
LB: loop body
LE: loop exit
PB: predicated region body
PF: predicated region fallthrough
CT: control target
= control target key end

     0   :  { %v17_v0 = vlaneseq  ;;  %s1457_s1 = inlined_call_operand.vmem [shape: f32[1,512], index: 1, kind: input, shape index: {}]   ;;  %s1458_s0 = inlined_call_operand.vmem [shape: f32[8,4352], index: 0, kind: input, shape index: {}]   ;;  %s1459_s2 = inlined_call_operand.vmem [shape: f32[8,8192], index: 2, kind: output, shape index: {}]  }
   0x1   :  { %v11_v2 = vld [vmem:[%s1457_s1] sm:$0xf]  ;;  %v102_v8 = vld [vmem:[%s1458_s0 + $0x28] sm:$0xff]  ;;  %v103_v9 = vld [vmem:[%s1458_s0 + $0x30] sm:$0xff] }
   0x2   :  { %v18_v1 = vshrl.u32 %v17_v0, 7  ;;  %v101_v7 = vld [vmem:[%s1458_s0 + $0x20] sm:$0xff]  ;;  %v104_v10 = vld [vmem:[%s1458_s0 + $0x38] sm:$0xff]  ;;  %v13_v16 = vld [vmem:[%s1458_s0 + $0x8] sm:$0xff] }
   0x3   :  { %v12_v11 = vld [vmem:[%s1458_s0] sm:$0xff]  ;;  %v14_v17 = vld [vmem:[%s1458_s0 + $0x10] sm:$0xff]  ;;  %v15_v18 = vld [vmem:[%s1458_s0 + $0x18] sm:$0xff] }
   0x4   :  { %v19_v3 = vsub.s32 0, %v18_v1  ;;  %v23_v4 = vsub.s32 1, %v18_v1  ;;  %v27_v5 = vsub.s32 2, %v18_v1  ;;  %v31_v6 = vsub.s32 3, %v18_v1  ;;  %v137_v27 = vld [vmem:[%s1458_s0 + $0x40] sm:$0xff]  ;;  %v138_v32 = vld [vmem:[%s1458_s0 + $0x48] sm:$0xff] }
   0x5   :  { %v203_v49 = vld [vmem:[%s1458_s0 + $0x50] sm:$0xff]  ;;  %v204_v54 = vld [vmem:[%s1458_s0 + $0x58] sm:$0xff]  ;;  %v205_v55 = vld [vmem:[%s1458_s0 + $0x60] sm:$0xff] }
   0x6   :  { %v678_v12 = vrot.slane %v11_v2, %v19_v3  ;;  %v680_v13 = vrot.slane %v11_v2, %v23_v4  ;;  %v682_v14 = vrot.slane %v11_v2, %v27_v5  ;;  %v684_v15 = vrot.slane %v11_v2, %v31_v6  ;;  %v206_v60 = vld [vmem:[%s1458_s0 + $0x68] sm:$0xff] }
   0x8   :  { %v696_v19 = vmul.f32 %v101_v7, %v678_v12  ;;  %v699_v20 = vmul.f32 %v102_v8, %v680_v13  ;;  %v702_v21 = vmul.f32 %v103_v9, %v682_v14  ;;  %v705_v22 = vmul.f32 %v104_v10, %v684_v15 }
   0x9   :  { %v708_v23 = vmul.f32 %v678_v12, %v12_v11  ;;  %v711_v24 = vmul.f32 %v680_v13, %v13_v16  ;;  %v714_v25 = vmul.f32 %v682_v14, %v14_v17  ;;  %v717_v26 = vmul.f32 %v684_v15, %v15_v18 }
   0xa   :  { %v109_v28 = vmul.f32 %v696_v19, %v696_v19  ;;  %v110_v29 = vmul.f32 %v699_v20, %v699_v20  ;;  %v111_v30 = vmul.f32 %v702_v21, %v702_v21  ;;  %v112_v31 = vmul.f32 %v705_v22, %v705_v22 }
   0xb   :  { %v41_v33 = vmul.f32 %v708_v23, %v708_v23  ;;  %v42_v34 = vmul.f32 %v711_v24, %v711_v24  ;;  %v43_v35 = vmul.f32 %v714_v25, %v714_v25  ;;  %v44_v36 = vmul.f32 %v717_v26, %v717_v26 }
   0xc   :  { %v113_v37 = vadd.f32 %v110_v29, %v109_v28  ;;  %v742_v38 = vmul.f32 %v103_v9, %v678_v12  ;;  %v745_v39 = vmul.f32 %v104_v10, %v680_v13  ;;  %v748_v40 = vmul.f32 %v137_v27, %v682_v14  ;;  %v271_v9 = vld [vmem:[%s1458_s0 + $0x70] sm:$0xff] }
   0xd   :  { %v45_v41 = vadd.f32 %v42_v34, %v41_v33  ;;  %v751_v42 = vmul.f32 %v138_v32, %v684_v15  ;;  %v754_v43 = vmul.f32 %v678_v12, %v14_v17  ;;  %v757_v44 = vmul.f32 %v680_v13, %v15_v18  ;;  %v272_v18 = vld [vmem:[%s1458_s0 + $0x78] sm:$0xff] }
   0xe   :  { %v114_v45 = vadd.f32 %v113_v37, %v111_v30  ;;  %v143_v46 = vmul.f32 %v742_v38, %v742_v38  ;;  %v144_v47 = vmul.f32 %v745_v39, %v745_v39  ;;  %v145_v48 = vmul.f32 %v748_v40, %v748_v40 }
   0xf   :  { %v46_v50 = vadd.f32 %v45_v41, %v43_v35  ;;  %v146_v51 = vmul.f32 %v751_v42, %v751_v42  ;;  %v771_v52 = vmul.f32 %v101_v7, %v682_v14  ;;  %v774_v53 = vmul.f32 %v102_v8, %v684_v15 }
  0x10   :  { %v115_v56 = vadd.f32 %v114_v45, %v112_v31  ;;  %v147_v57 = vadd.f32 %v144_v47, %v143_v46  ;;  %v75_v58 = vmul.f32 %v754_v43, %v754_v43  ;;  %v76_v59 = vmul.f32 %v757_v44, %v757_v44 }
  0x11   :  { %v47_v61 = vadd.f32 %v46_v50, %v44_v36  ;;  %v77_v62 = vmul.f32 %v771_v52, %v771_v52  ;;  %v78_v63 = vmul.f32 %v774_v53, %v774_v53  ;;  %v794_v0 = vmul.f32 %v203_v49, %v678_v12 }
  0x12   :  { %116 = vadd.xlane.f32.xlu1 %v115_v56  ;;  %v148_v1 = vadd.f32 %v147_v57, %v145_v48  ;;  %v79_v2 = vadd.f32 %v76_v59, %v75_v58  ;;  %v797_v3 = vmul.f32 %v204_v54, %v680_v13  ;;  %v800_v4 = vmul.f32 %v205_v55, %v682_v14  ;;  %v339_v58 = vld [vmem:[%s1458_s0 + $0x90] sm:$0xff]  ;;  %v340_v59 = vld [vmem:[%s1458_s0 + $0x98] sm:$0xff] }
  0x13   :  { %48 = vadd.xlane.f32.xlu0 %v47_v61  ;;  %v803_v5 = vmul.f32 %v206_v60, %v684_v15  ;;  %v211_v6 = vmul.f32 %v794_v0, %v794_v0  ;;  %v808_v7 = vmul.f32 %v137_v27, %v678_v12  ;;  %v811_v8 = vmul.f32 %v138_v32, %v680_v13  ;;  %v273_v27 = vld [vmem:[%s1458_s0 + $0x80] sm:$0xff]  ;;  %v274_v32 = vld [vmem:[%s1458_s0 + $0x88] sm:$0xff] }
  0x14   :  { %v149_v10 = vadd.f32 %v148_v1, %v146_v51  ;;  %v80_v11 = vadd.f32 %v79_v2, %v77_v62  ;;  %v212_v16 = vmul.f32 %v797_v3, %v797_v3  ;;  %v213_v17 = vmul.f32 %v800_v4, %v800_v4 }
  0x15   :  { %v214_v28 = vmul.f32 %v803_v5, %v803_v5  ;;  %v829_v29 = vmul.f32 %v203_v49, %v682_v14  ;;  %v832_v30 = vmul.f32 %v204_v54, %v684_v15  ;;  %v177_v31 = vmul.f32 %v808_v7, %v808_v7 }
  0x16   :  { %150 = vadd.xlane.f32.xlu1 %v149_v10  ;;  %v81_v33 = vadd.f32 %v80_v11, %v78_v63  ;;  %v215_v34 = vadd.f32 %v212_v16, %v211_v6  ;;  %v178_v35 = vmul.f32 %v811_v8, %v811_v8  ;;  %v842_v36 = vmul.f32 %v271_v9, %v678_v12  ;;  %v342_v11 = vld [vmem:[%s1458_s0 + $0xa8] sm:$0xff] }
  0x17   :  { %v179_v37 = vmul.f32 %v829_v29, %v829_v29  ;;  %v180_v41 = vmul.f32 %v832_v30, %v832_v30  ;;  %v849_v45 = vmul.f32 %v272_v18, %v680_v13  ;;  %v852_v46 = vmul.f32 %v273_v27, %v682_v14 }
  0x18   :  { %82 = vadd.xlane.f32.xlu0 %v81_v33  ;;  %v216_v47 = vadd.f32 %v215_v34, %v213_v17  ;;  %v181_v48 = vadd.f32 %v178_v35, %v177_v31  ;;  %v855_v49 = vmul.f32 %v274_v32, %v684_v15  ;;  %v279_v50 = vmul.f32 %v842_v36, %v842_v36 }
  0x19   :  { %v280_v51 = vmul.f32 %v849_v45, %v849_v45  ;;  %v281_v54 = vmul.f32 %v852_v46, %v852_v46  ;;  %v864_v56 = vmul.f32 %v205_v55, %v678_v12  ;;  %v867_v57 = vmul.f32 %v206_v60, %v680_v13  ;;  %v341_v55 = vld [vmem:[%s1458_s0 + $0xa0] sm:$0xff] }
  0x1a   :  { %v217_v61 = vadd.f32 %v216_v47, %v214_v28  ;;  %v182_v62 = vadd.f32 %v181_v48, %v179_v37  ;;  %v282_v63 = vmul.f32 %v855_v49, %v855_v49  ;;  %v878_v1 = vmul.f32 %v271_v9, %v682_v14  ;;  %v407_v48 = vld [vmem:[%s1458_s0 + $0xb0] sm:$0xff] }
  0x1b   :  { %v283_v60 = vadd.f32 %v280_v51, %v279_v50  ;;  %v884_v2 = vmul.f32 %v272_v18, %v684_v15  ;;  %v245_v6 = vmul.f32 %v864_v56, %v864_v56  ;;  %v246_v10 = vmul.f32 %v867_v57, %v867_v57 }
  0x1c   :  { %218 = vadd.xlane.f32.xlu1 %v217_v61  ;;  %v183_v9 = vadd.f32 %v182_v62, %v180_v41  ;;  %v247_v16 = vmul.f32 %v878_v1, %v878_v1  ;;  %v896_v17 = vmul.f32 %v339_v58, %v678_v12  ;;  %v899_v18 = vmul.f32 %v340_v59, %v680_v13  ;;  %v408_v62 = vld [vmem:[%s1458_s0 + $0xb8] sm:$0xff] }
  0x1d   :  { %v284_v28 = vadd.f32 %v283_v60, %v281_v54  ;;  %v248_v31 = vmul.f32 %v884_v2, %v884_v2  ;;  %v249_v33 = vadd.f32 %v246_v10, %v245_v6  ;;  %v904_v34 = vmul.f32 %v341_v55, %v682_v14  ;;  %v409_v10 = vld [vmem:[%s1458_s0 + $0xc0] sm:$0xff] }
  0x1e   :  { %184 = vadd.xlane.f32.xlu0 %v183_v9  ;;  %v907_v35 = vmul.f32 %v342_v11, %v684_v15  ;;  %v347_v37 = vmul.f32 %v896_v17, %v896_v17  ;;  %v348_v41 = vmul.f32 %v899_v18, %v899_v18  ;;  %v914_v47 = vmul.f32 %v273_v27, %v678_v12 }
  0x1f   :  { %v285_v50 = vadd.f32 %v284_v28, %v282_v63  ;;  %v250_v51 = vadd.f32 %v249_v33, %v247_v16  ;;  %v349_v54 = vmul.f32 %v904_v34, %v904_v34  ;;  %v922_v61 = vmul.f32 %v274_v32, %v680_v13  ;;  %v410_v32 = vld [vmem:[%s1458_s0 + $0xc8] sm:$0xff] }
  0x20   :  { %1482 = vst [vmem:[#allocation2_spill] sm:$0xff] %v914_v47  ;;  %v350_v27 = vmul.f32 %v907_v35, %v907_v35  ;;  %v351_v60 = vadd.f32 %v348_v41, %v347_v37  ;;  %v930_v6 = vmul.f32 %v339_v58, %v682_v14  ;;  %v933_v63 = vmul.f32 %v340_v59, %v684_v15 }
  0x21   :  { %1483 = vst [vmem:[#allocation3_spill] sm:$0xff] %v922_v61  ;;  %286 = vadd.xlane.f32.xlu1 %v285_v50  ;;  %v251_v9 = vadd.f32 %v250_v51, %v248_v31  ;;  %v313_v16 = vmul.f32 %v914_v47, %v914_v47  ;;  %v314_v58 = vmul.f32 %v922_v61, %v922_v61 }
  0x22   :  { %1484 = vst [vmem:[#allocation4_spill] sm:$0xff] %v930_v6  ;;  %1485 = vst [vmem:[#allocation5_spill] sm:$0xff] %v933_v63  ;;  %v946_v28 = vmul.f32 %v407_v48, %v678_v12  ;;  %v352_v59 = vadd.f32 %v351_v60, %v349_v54  ;;  %v315_v33 = vmul.f32 %v930_v6, %v930_v6 }
  0x23   :  { %v316_v37 = vmul.f32 %v933_v63, %v933_v63  ;;  %v953_v41 = vmul.f32 %v408_v62, %v680_v13  ;;  %252 = vadd.xlane.f32.xlu0 %v251_v9  ;;  %v317_v31 = vadd.f32 %v314_v58, %v313_v16  ;;  %v956_v50 = vmul.f32 %v409_v10, %v682_v14  ;;  %v475_v9 = vld [vmem:[%s1458_s0 + $0xd0] sm:$0xff]  ;;  %v476_v16 = vld [vmem:[%s1458_s0 + $0xd8] sm:$0xff] }
  0x24   :  { %1486 = vst [vmem:[#allocation6_spill] sm:$0xff] %v946_v28  ;;  %v959_v51 = vmul.f32 %v410_v32, %v684_v15  ;;  %v415_v54 = vmul.f32 %v946_v28, %v946_v28  ;;  %v353_v60 = vadd.f32 %v352_v59, %v350_v27  ;;  %v966_v63 = vmul.f32 %v341_v55, %v678_v12 }
  0x25   :  { %1487 = vst [vmem:[#allocation7_spill] sm:$0xff] %v953_v41  ;;  %1488 = vst [vmem:[#allocation8_spill] sm:$0xff] %v956_v50  ;;  %v416_v6 = vmul.f32 %v953_v41, %v953_v41  ;;  %v969_v61 = vmul.f32 %v342_v11, %v680_v13  ;;  %v318_v58 = vadd.f32 %v317_v31, %v315_v33  ;;  %v477_v11 = vld [vmem:[%s1458_s0 + $0xe0] sm:$0xff] }
  0x26   :  { %1489 = vst [vmem:[#allocation9_spill] sm:$0xff] %v959_v51  ;;  %1490 = vst [vmem:[#allocation10_spill] sm:$0xff] %v966_v63  ;;  %v417_v27 = vmul.f32 %v956_v50, %v956_v50  ;;  %v418_v59 = vmul.f32 %v959_v51, %v959_v51  ;;  %v982_v55 = vmul.f32 %v407_v48, %v682_v14  ;;  %354 = vadd.xlane.f32.xlu1 %v353_v60  ;;  %v478_v48 = vld [vmem:[%s1458_s0 + $0xe8] sm:$0xff] }
  0x27   :  { %1491 = vst [vmem:[#allocation11_spill] sm:$0xff] %v969_v61  ;;  %v419_v41 = vadd.f32 %v416_v6, %v415_v54  ;;  %v988_v28 = vmul.f32 %v408_v62, %v684_v15  ;;  %v381_v33 = vmul.f32 %v966_v63, %v966_v63  ;;  %v382_v31 = vmul.f32 %v969_v61, %v969_v61 }
  0x28   :  { %1492 = vst [vmem:[#allocation12_spill] sm:$0xff] %v982_v55  ;;  %v319_v51 = vadd.f32 %v318_v58, %v316_v37  ;;  %v383_v50 = vmul.f32 %v982_v55, %v982_v55  ;;  %v1000_v60 = vmul.f32 %v475_v9, %v678_v12  ;;  %v1003_v62 = vmul.f32 %v476_v16, %v680_v13 }
  0x29   :  { %1493 = vst [vmem:[#allocation13_spill] sm:$0xff] %v988_v28  ;;  %v420_v6 = vadd.f32 %v419_v41, %v417_v27  ;;  %v384_v54 = vmul.f32 %v988_v28, %v988_v28  ;;  %v385_v63 = vadd.f32 %v382_v31, %v381_v33  ;;  %v1008_v61 = vmul.f32 %v477_v11, %v682_v14  ;;  %v543_v41 = vld [vmem:[%s1458_s0 + $0xf0] sm:$0xff] }
  0x2a   :  { %1494 = vst [vmem:[#allocation14_spill] sm:$0xff] %v1000_v60  ;;  %1495 = vst [vmem:[#allocation15_spill] sm:$0xff] %v1003_v62  ;;  %320 = vadd.xlane.f32.xlu0 %v319_v51  ;;  %v1011_v37 = vmul.f32 %v478_v48, %v684_v15  ;;  %v483_v58 = vmul.f32 %v1000_v60, %v1000_v60  ;;  %v484_v55 = vmul.f32 %v1003_v62, %v1003_v62  ;;  %v544_v60 = vld [vmem:[%s1458_s0 + $0xf8] sm:$0xff] }
  0x2b   :  { %1496 = vst [vmem:[#allocation16_spill] sm:$0xff] %v1008_v61  ;;  %v1018_v47 = vmul.f32 %v409_v10, %v678_v12  ;;  %v421_v27 = vadd.f32 %v420_v6, %v418_v59  ;;  %v386_v33 = vadd.f32 %v385_v63, %v383_v50  ;;  %v485_v51 = vmul.f32 %v1008_v61, %v1008_v61  ;;  %v545_v63 = vld [vmem:[%s1458_s0 + $0x100] sm:$0xff] }
  0x2c   :  { %1497 = vst [vmem:[#allocation17_spill] sm:$0xff] %v1011_v37  ;;  %v1026_v31 = vmul.f32 %v410_v32, %v680_v13  ;;  %v486_v10 = vmul.f32 %v1011_v37, %v1011_v37  ;;  %v487_v62 = vadd.f32 %v484_v55, %v483_v58  ;;  %v1034_v28 = vmul.f32 %v475_v9, %v682_v14  ;;  %v546_v32 = vld [vmem:[%s1458_s0 + $0x108] sm:$0xff] }
  0x2d   :  { %v1037_v59 = vmul.f32 %v476_v16, %v684_v15  ;;  %422 = vadd.xlane.f32.xlu1 %v421_v27  ;;  %v387_v50 = vadd.f32 %v386_v33, %v384_v54  ;;  %v449_v6 = vmul.f32 %v1018_v47, %v1018_v47  ;;  %v1050_v55 = vmul.f32 %v543_v41, %v678_v12 }
  0x2e   :  { %1498 = vst [vmem:[#allocation18_spill] sm:$0xff] %v1026_v31  ;;  %1499 = vst [vmem:[#allocation19_spill] sm:$0xff] %v1034_v28  ;;  %v450_v9 = vmul.f32 %v1026_v31, %v1026_v31  ;;  %v488_v16 = vadd.f32 %v487_v62, %v485_v51  ;;  %v451_v58 = vmul.f32 %v1034_v28, %v1034_v28 }
  0x2f   :  { %1500 = vst [vmem:[#allocation20_spill] sm:$0xff] %v1037_v59  ;;  %v452_v37 = vmul.f32 %v1037_v59, %v1037_v59  ;;  %v1057_v61 = vmul.f32 %v544_v60, %v680_v13  ;;  %388 = vadd.xlane.f32.xlu0 %v387_v50  ;;  %v1060_v27 = vmul.f32 %v545_v63, %v682_v14 }
  0x30   :  { %v453_v54 = vadd.f32 %v450_v9, %v449_v6  ;;  %v1063_v33 = vmul.f32 %v546_v32, %v684_v15  ;;  %v551_v62 = vmul.f32 %v1050_v55, %v1050_v55  ;;  %v489_v51 = vadd.f32 %v488_v16, %v486_v10 }
  0x31   :  { %v552_v28 = vmul.f32 %v1057_v61, %v1057_v61  ;;  %v1070_v59 = vmul.f32 %v477_v11, %v678_v12  ;;  %v1073_v31 = vmul.f32 %v478_v48, %v680_v13  ;;  %v553_v63 = vmul.f32 %v1060_v27, %v1060_v27 }
  0x32   :  { %v454_v50 = vadd.f32 %v453_v54, %v451_v58  ;;  %v554_v32 = vmul.f32 %v1063_v33, %v1063_v33  ;;  %v1080_v6 = vmul.f32 %v543_v41, %v682_v14  ;;  %490 = vadd.xlane.f32.xlu1 %v489_v51  ;;  %v1083_v9 = vmul.f32 %v544_v60, %v684_v15 }
  0x33   :  { %1501 = vst [vmem:[#allocation21_spill] sm:$0xff] %v1073_v31  ;;  %v555_v10 = vadd.f32 %v552_v28, %v551_v62  ;;  %v517_v12 = vmul.f32 %v1070_v59, %v1070_v59  ;;  %v518_v13 = vmul.f32 %v1073_v31, %v1073_v31 }
  0x34   :  { %1502 = vst [vmem:[#allocation22_spill] sm:$0xff] %v1080_v6  ;;  %1503 = vst [vmem:[#allocation23_spill] sm:$0xff] %v1083_v9  ;;  %v455_v11 = vadd.f32 %v454_v50, %v452_v37  ;;  %v519_v48 = vmul.f32 %v1080_v6, %v1080_v6  ;;  %v520_v14 = vmul.f32 %v1083_v9, %v1083_v9 }
  0x35   :  { %v556_v16 = vadd.f32 %v555_v10, %v553_v63  ;;  %v521_v41 = vadd.f32 %v518_v13, %v517_v12 }
  0x36   :  { %456 = vadd.xlane.f32.xlu0 %v455_v11 }
  0x37   :  { %v557_v28 = vadd.f32 %v556_v16, %v554_v32  ;;  %v522_v58 = vadd.f32 %v521_v41, %v519_v48 }
  0x39   :  { %558 = vadd.xlane.f32.xlu1 %v557_v28  ;;  %v523_v15 = vadd.f32 %v522_v58, %v520_v14 }
  0x3b   :  { %524 = vadd.xlane.f32.xlu0 %v523_v15 }
  0x9f   :  { %v117_v60 = vpop.xlane.xlu1 %116 }
  0xa0   :  { %581 = vrsqrt.f32 %v117_v60  ;;  %v49_v54 = vpop.xlane.xlu0 %48  ;;  %vm120_vm0 = vcmp.eq.f32.partialorder %v117_v60, inf  ;;  %v123_v32 = vand.u32 2147483648, %v117_v60  ;;  %vm122_vm1 = vcmp.eq.f32.partialorder %v117_v60, 0.0 }
  0xa1   :  { %583 = vrsqrt.f32 %v49_v54  ;;  %vm52_vm2 = vcmp.eq.f32.partialorder %v49_v54, inf  ;;  %v55_v48 = vand.u32 2147483648, %v49_v54  ;;  %vm54_vm3 = vcmp.eq.f32.partialorder %v49_v54, 0.0 }
  0xa3   :  { %v151_v62 = vpop.xlane.xlu1 %150 }
  0xa4   :  { %585 = vrsqrt.f32 %v151_v62  ;;  %vm154_vm4 = vcmp.eq.f32.partialorder %v151_v62, inf  ;;  %vm156_vm5 = vcmp.eq.f32.partialorder %v151_v62, 0.0 }
  0xa5   :  { %v83_v37 = vpop.xlane.xlu0 %82 }
  0xa6   :  { %587 = vrsqrt.f32 %v83_v37  ;;  %vm86_vm6 = vcmp.eq.f32.partialorder %v83_v37, inf  ;;  %vm88_vm7 = vcmp.eq.f32.partialorder %v83_v37, 0.0 }
  0xa9   :  { %v219_v51 = vpop.xlane.xlu1 %218 }
  0xaa   :  { %v582_v50 = vpop.eup %581  ;;  %589 = vrsqrt.f32 %v219_v51  ;;  %vm222_vm8 = vcmp.eq.f32.partialorder %v219_v51, inf  ;;  %vm224_vm9 = vcmp.eq.f32.partialorder %v219_v51, 0.0 }
  0xab   :  { %v584_v63 = vpop.eup %583  ;;  %v119_v10 = vmul.f32 %v582_v50, %v117_v60  ;;  %v1093_v12 = vpop.xlane.xlu0 %184 }
  0xac   :  { %v51_v13 = vmul.f32 %v584_v63, %v49_v54  ;;  %591 = vrsqrt.f32 %v1093_v12  ;;  %v157_v63 = vand.u32 2147483648, %v151_v62  ;;  %vm188_vm10 = vcmp.eq.f32.partialorder %v1093_v12, inf }
  0xad   :  { %v121_v11 = vsel %vm120_vm0, %v117_v60, %v119_v10  ;;  %vm190_vm11 = vcmp.eq.f32.partialorder %v1093_v12, 0.0 }
  0xae   :  { %v586_v16 = vpop.eup %585  ;;  %v124_v14 = vsel %vm122_vm1, %v123_v32, %v121_v11  ;;  %v53_v41 = vsel %vm52_vm2, %v49_v54, %v51_v13  ;;  %v1096_v28 = vpop.xlane.xlu1 %286  ;;  %v89_v54 = vand.u32 2147483648, %v83_v37 }
  0xaf   :  { %v125_v58 = vadd.f32 1e-08, %v124_v14  ;;  %v56_v15 = vsel %vm54_vm3, %v55_v48, %v53_v41  ;;  %v153_v50 = vmul.f32 %v586_v16, %v151_v62  ;;  %593 = vrsqrt.f32 %v1096_v28 }
  0xb0   :  { %v588_v9 = vpop.eup %587  ;;  %v57_v6 = vadd.f32 1e-08, %v56_v15  ;;  %v1099_v31 = vpop.xlane.xlu0 %252  ;;  %vm290_vm12 = vcmp.eq.f32.partialorder %v1096_v28, inf  ;;  %vm292_vm13 = vcmp.eq.f32.partialorder %v1096_v28, 0.0 }
  0xb1   :  { %595 = vrcp.f32 %v125_v58  ;;  %v155_v60 = vsel %vm154_vm4, %v151_v62, %v153_v50  ;;  %v85_v10 = vmul.f32 %v588_v9, %v83_v37  ;;  %v191_v50 = vand.u32 2147483648, %v1093_v12 }
  0xb2   :  { %597 = vrcp.f32 %v57_v6  ;;  %v158_v32 = vsel %vm156_vm5, %v157_v63, %v155_v60  ;;  %v225_v6 = vand.u32 2147483648, %v219_v51  ;;  %vm256_vm14 = vcmp.eq.f32.partialorder %v1099_v31, inf }
  0xb3   :  { %v159_v13 = vadd.f32 1e-08, %v158_v32  ;;  %v87_v11 = vsel %vm86_vm6, %v83_v37, %v85_v10  ;;  %599 = vrsqrt.f32 %v1099_v31  ;;  %v1102_v48 = vpop.xlane.xlu1 %354  ;;  %vm258_vm15 = vcmp.eq.f32.partialorder %v1099_v31, 0.0 }
  0xb4   :  { %v590_v16 = vpop.eup %589  ;;  %v90_v14 = vsel %vm88_vm7, %v89_v54, %v87_v11  ;;  %601 = vrsqrt.f32 %v1102_v48  ;;  %v293_v54 = vand.u32 2147483648, %v1096_v28  ;;  %vm358_vm0 = vcmp.eq.f32.partialorder %v1102_v48, inf }
  0xb5   :  { %603 = vrcp.f32 %v159_v13  ;;  %v91_v41 = vadd.f32 1e-08, %v90_v14  ;;  %v221_v58 = vmul.f32 %v590_v16, %v219_v51  ;;  %v259_v16 = vand.u32 2147483648, %v1099_v31 }
  0xb6   :  { %v592_v9 = vpop.eup %591  ;;  %vm360_vm1 = vcmp.eq.f32.partialorder %v1102_v48, 0.0 }
  0xb7   :  { %v1107_v62 = vpop.xlane.xlu0 %320  ;;  %605 = vrcp.f32 %v91_v41  ;;  %v223_v37 = vsel %vm222_vm8, %v219_v51, %v221_v58  ;;  %v187_v15 = vmul.f32 %v592_v9, %v1093_v12 }
  0xb8   :  { %v226_v63 = vsel %vm224_vm9, %v225_v6, %v223_v37  ;;  %607 = vrsqrt.f32 %v1107_v62  ;;  %vm324_vm2 = vcmp.eq.f32.partialorder %v1107_v62, inf  ;;  %vm326_vm3 = vcmp.eq.f32.partialorder %v1107_v62, 0.0 }
  0xb9   :  { %v594_v60 = vpop.eup %593  ;;  %v227_v10 = vadd.f32 1e-08, %v226_v63  ;;  %v189_v32 = vsel %vm188_vm10, %v1093_v12, %v187_v15 }
  0xba   :  { %v1117_v51 = vpop.xlane.xlu1 %422  ;;  %v192_v13 = vsel %vm190_vm11, %v191_v50, %v189_v32  ;;  %v289_v11 = vmul.f32 %v594_v60, %v1096_v28 }
  0xbb   :  { %609 = vrsqrt.f32 %v1117_v51  ;;  %v596_v14 = vpop.eup %595  ;;  %v193_v41 = vadd.f32 1e-08, %v192_v13  ;;  %vm426_vm4 = vcmp.eq.f32.partialorder %v1117_v51, inf  ;;  %vm428_vm5 = vcmp.eq.f32.partialorder %v1117_v51, 0.0 }
  0xbc   :  { %611 = vrcp.f32 %v227_v10  ;;  %v598_v58 = vpop.eup %597  ;;  %v127_v9 = vmul.f32 %v596_v14, %v696_v19  ;;  %v128_v12 = vmul.f32 %v596_v14, %v699_v20  ;;  %v129_v6 = vmul.f32 %v596_v14, %v702_v21  ;;  %v1131_v15 = vpop.xlane.xlu0 %388 }
  0xbd   :  { %v130_v37 = vmul.f32 %v596_v14, %v705_v22  ;;  %v600_v50 = vpop.eup %599  ;;  %v59_v63 = vmul.f32 %v598_v58, %v708_v23  ;;  %v60_v60 = vmul.f32 %v598_v58, %v711_v24  ;;  %v61_v10 = vmul.f32 %v598_v58, %v714_v25 }
  0xbe   :  { %v62_v32 = vmul.f32 %v598_v58, %v717_v26  ;;  %v602_v13 = vpop.eup %601  ;;  %131 = vst [vmem:[%s1459_s2 + $0x40] sm:$0xff] %v127_v9  ;;  %132 = vst [vmem:[%s1459_s2 + $0x48] sm:$0xff] %v128_v12  ;;  %613 = vrcp.f32 %v193_v41  ;;  %v291_v19 = vsel %vm290_vm12, %v1096_v28, %v289_v11  ;;  %v255_v20 = vmul.f32 %v600_v50, %v1099_v31 }
  0xbf   :  { %133 = vst [vmem:[%s1459_s2 + $0x50] sm:$0xff] %v129_v6  ;;  %134 = vst [vmem:[%s1459_s2 + $0x58] sm:$0xff] %v130_v37  ;;  %v361_v21 = vand.u32 2147483648, %v1102_v48  ;;  %v604_v22 = vpop.eup %603  ;;  %v294_v23 = vsel %vm292_vm13, %v293_v54, %v291_v19  ;;  %v357_v24 = vmul.f32 %v602_v13, %v1102_v48  ;;  %615 = vrsqrt.f32 %v1131_v15  ;;  %v1182_v9 = vpop.xlane.xlu1 %490 }
  0xc0   :  { %63 = vst [vmem:[%s1459_s2] sm:$0xff] %v59_v63  ;;  %64 = vst [vmem:[%s1459_s2 + $0x8] sm:$0xff] %v60_v60  ;;  %v161_v25 = vmul.f32 %v604_v22, %v742_v38  ;;  %v162_v26 = vmul.f32 %v604_v22, %v745_v39  ;;  %v163_v11 = vmul.f32 %v604_v22, %v748_v40  ;;  %v295_v58 = vadd.f32 1e-08, %v294_v23 }
  0xc1   :  { %65 = vst [vmem:[%s1459_s2 + $0x10] sm:$0xff] %v61_v10  ;;  %66 = vst [vmem:[%s1459_s2 + $0x18] sm:$0xff] %v62_v32  ;;  %v164_v14 = vmul.f32 %v604_v22, %v751_v42  ;;  %v606_v41 = vpop.eup %605  ;;  %v257_v28 = vsel %vm256_vm14, %v1099_v31, %v255_v20  ;;  %v359_v54 = vsel %vm358_vm0, %v1102_v48, %v357_v24  ;;  %vm392_vm6 = vcmp.eq.f32.partialorder %v1131_v15, inf }
  0xc2   :  { %v608_v38 = vpop.eup %607  ;;  %165 = vst [vmem:[%s1459_s2 + $0x60] sm:$0xff] %v161_v25  ;;  %166 = vst [vmem:[%s1459_s2 + $0x68] sm:$0xff] %v162_v26  ;;  %v93_v39 = vmul.f32 %v606_v41, %v754_v43  ;;  %v94_v40 = vmul.f32 %v606_v41, %v757_v44  ;;  %v95_v42 = vmul.f32 %v606_v41, %v771_v52  ;;  %617 = vrcp.f32 %v295_v58 }
  0xc3   :  { %167 = vst [vmem:[%s1459_s2 + $0x70] sm:$0xff] %v163_v11  ;;  %168 = vst [vmem:[%s1459_s2 + $0x78] sm:$0xff] %v164_v14  ;;  %v96_v12 = vmul.f32 %v606_v41, %v774_v53  ;;  %v260_v6 = vsel %vm258_vm15, %v259_v16, %v257_v28  ;;  %v362_v37 = vsel %vm360_vm1, %v361_v21, %v359_v54  ;;  %v327_v52 = vand.u32 2147483648, %v1107_v62  ;;  %v1229_v19 = vpop.xlane.xlu0 %456 }
  0xc4   :  { %v323_v50 = vmul.f32 %v608_v38, %v1107_v62  ;;  %97 = vst [vmem:[%s1459_s2 + $0x20] sm:$0xff] %v93_v39  ;;  %98 = vst [vmem:[%s1459_s2 + $0x28] sm:$0xff] %v94_v40  ;;  %v261_v43 = vadd.f32 1e-08, %v260_v6  ;;  %v363_v44 = vadd.f32 1e-08, %v362_v37  ;;  %619 = vrsqrt.f32 %v1182_v9 }
  0xc5   :  { %v610_v63 = vpop.eup %609  ;;  %99 = vst [vmem:[%s1459_s2 + $0x30] sm:$0xff] %v95_v42  ;;  %100 = vst [vmem:[%s1459_s2 + $0x38] sm:$0xff] %v96_v12  ;;  %v429_v16 = vand.u32 2147483648, %v1117_v51  ;;  %vm394_vm7 = vcmp.eq.f32.partialorder %v1131_v15, 0.0  ;;  %vm494_vm8 = vcmp.eq.f32.partialorder %v1182_v9, inf  ;;  %vm496_vm9 = vcmp.eq.f32.partialorder %v1182_v9, 0.0 }
  0xc6   :  { %v612_v53 = vpop.eup %611  ;;  %v325_v31 = vsel %vm324_vm2, %v1107_v62, %v323_v50  ;;  %v425_v48 = vmul.f32 %v610_v63, %v1117_v51  ;;  %621 = vrcp.f32 %v261_v43  ;;  %v1252_v26 = vpop.xlane.xlu1 %558  ;;  %vm460_vm10 = vcmp.eq.f32.partialorder %v1229_v19, inf }
  0xc7   :  { %v229_v60 = vmul.f32 %v612_v53, %v794_v0  ;;  %v230_v10 = vmul.f32 %v612_v53, %v797_v3  ;;  %v231_v32 = vmul.f32 %v612_v53, %v800_v4  ;;  %v232_v13 = vmul.f32 %v612_v53, %v803_v5 }
  0xc8   :  { %v328_v20 = vsel %vm326_vm3, %v327_v52, %v325_v31  ;;  %v427_v21 = vsel %vm426_vm4, %v1117_v51, %v425_v48  ;;  %v614_v22 = vpop.eup %613  ;;  %623 = vrcp.f32 %v363_v44  ;;  %v463_v48 = vand.u32 2147483648, %v1229_v19 }
  0xc9   :  { %233 = vst [vmem:[%s1459_s2 + $0xa0] sm:$0xff] %v229_v60  ;;  %234 = vst [vmem:[%s1459_s2 + $0xa8] sm:$0xff] %v230_v10  ;;  %v329_v0 = vadd.f32 1e-08, %v328_v20  ;;  %v430_v3 = vsel %vm428_vm5, %v429_v16, %v427_v21  ;;  %v616_v4 = vpop.eup %615  ;;  %v195_v5 = vmul.f32 %v614_v22, %v808_v7  ;;  %v196_v62 = vmul.f32 %v614_v22, %v811_v8  ;;  %v1508_v60 = vld [vmem:[#allocation6_spill] sm:$0xff]  ;;  %v1510_v20 = vld [vmem:[#allocation8_spill] sm:$0xff] }
  0xca   :  { %235 = vst [vmem:[%s1459_s2 + $0xb0] sm:$0xff] %v231_v32  ;;  %236 = vst [vmem:[%s1459_s2 + $0xb8] sm:$0xff] %v232_v13  ;;  %v197_v51 = vmul.f32 %v614_v22, %v829_v29  ;;  %v198_v23 = vmul.f32 %v614_v22, %v832_v30  ;;  %v431_v24 = vadd.f32 1e-08, %v430_v3  ;;  %v391_v25 = vmul.f32 %v616_v4, %v1131_v15  ;;  %v1271_v29 = vpop.xlane.xlu0 %524  ;;  %v1509_v32 = vld [vmem:[#allocation7_spill] sm:$0xff]  ;;  %v1511_v22 = vld [vmem:[#allocation9_spill] sm:$0xff] }
  0xcb   :  { %625 = vrcp.f32 %v329_v0  ;;  %199 = vst [vmem:[%s1459_s2 + $0x80] sm:$0xff] %v195_v5  ;;  %200 = vst [vmem:[%s1459_s2 + $0x88] sm:$0xff] %v196_v62  ;;  %v395_v7 = vand.u32 2147483648, %v1131_v15  ;;  %vm462_vm11 = vcmp.eq.f32.partialorder %v1229_v19, 0.0  ;;  %vm562_vm12 = vcmp.eq.f32.partialorder %v1252_v26, inf }
  0xcc   :  { %201 = vst [vmem:[%s1459_s2 + $0x90] sm:$0xff] %v197_v51  ;;  %202 = vst [vmem:[%s1459_s2 + $0x98] sm:$0xff] %v198_v23  ;;  %627 = vrsqrt.f32 %v1229_v19  ;;  %v393_v8 = vsel %vm392_vm6, %v1131_v15, %v391_v25  ;;  %v618_v30 = vpop.eup %617  ;;  %v565_v62 = vand.u32 2147483648, %v1252_v26  ;;  %vm564_vm13 = vcmp.eq.f32.partialorder %v1252_v26, 0.0 }
  0xcd   :  { %629 = vrcp.f32 %v431_v24  ;;  %v396_v11 = vsel %vm394_vm7, %v395_v7, %v393_v8  ;;  %v297_v41 = vmul.f32 %v618_v30, %v842_v36  ;;  %v298_v58 = vmul.f32 %v618_v30, %v849_v45 }
  0xce   :  { %631 = vrsqrt.f32 %v1252_v26  ;;  %v620_v14 = vpop.eup %619  ;;  %v299_v28 = vmul.f32 %v618_v30, %v852_v46  ;;  %v300_v54 = vmul.f32 %v618_v30, %v855_v49  ;;  %v397_v38 = vadd.f32 1e-08, %v396_v11  ;;  %v1512_v30 = vld [vmem:[#allocation10_spill] sm:$0xff] }
  0xcf   :  { %v493_v39 = vmul.f32 %v620_v14, %v1182_v9  ;;  %633 = vrsqrt.f32 %v1271_v29  ;;  %301 = vst [vmem:[%s1459_s2 + $0xe0] sm:$0xff] %v297_v41  ;;  %302 = vst [vmem:[%s1459_s2 + $0xe8] sm:$0xff] %v298_v58  ;;  %v497_v46 = vand.u32 2147483648, %v1182_v9  ;;  %vm528_vm14 = vcmp.eq.f32.partialorder %v1271_v29, inf  ;;  %v1513_v14 = vld [vmem:[#allocation11_spill] sm:$0xff]  ;;  %v1514_v58 = vld [vmem:[#allocation12_spill] sm:$0xff] }
  0xd0   :  { %303 = vst [vmem:[%s1459_s2 + $0xf0] sm:$0xff] %v299_v28  ;;  %304 = vst [vmem:[%s1459_s2 + $0xf8] sm:$0xff] %v300_v54  ;;  %v622_v36 = vpop.eup %621  ;;  %635 = vrcp.f32 %v397_v38  ;;  %v531_v8 = vand.u32 2147483648, %v1271_v29  ;;  %v1515_v54 = vld [vmem:[#allocation13_spill] sm:$0xff]  ;;  %vm530_vm15 = vcmp.eq.f32.partialorder %v1271_v29, 0.0 }
  0xd1   :  { %v495_v45 = vsel %vm494_vm8, %v1182_v9, %v493_v39  ;;  %v263_v15 = vmul.f32 %v622_v36, %v864_v56  ;;  %v264_v40 = vmul.f32 %v622_v36, %v867_v57  ;;  %v265_v42 = vmul.f32 %v622_v36, %v878_v1  ;;  %v1504_v1 = vld [vmem:[#allocation2_spill] sm:$0xff]  ;;  %v1507_v9 = vld [vmem:[#allocation5_spill] sm:$0xff] }
  0xd2   :  { %v624_v49 = vpop.eup %623  ;;  %v266_v12 = vmul.f32 %v622_v36, %v884_v2  ;;  %v498_v56 = vsel %vm496_vm9, %v497_v46, %v495_v45  ;;  %v1516_v46 = vld [vmem:[#allocation14_spill] sm:$0xff] }
  0xd3   :  { %v365_v6 = vmul.f32 %v624_v49, %v896_v17  ;;  %v366_v37 = vmul.f32 %v624_v49, %v899_v18  ;;  %v367_v50 = vmul.f32 %v624_v49, %v904_v34  ;;  %v368_v63 = vmul.f32 %v624_v49, %v907_v35  ;;  %267 = vst [vmem:[%s1459_s2 + $0xc0] sm:$0xff] %v263_v15  ;;  %v1505_v17 = vld [vmem:[#allocation3_spill] sm:$0xff]  ;;  %v1506_v34 = vld [vmem:[#allocation4_spill] sm:$0xff] }
  0xd4   :  { %268 = vst [vmem:[%s1459_s2 + $0xc8] sm:$0xff] %v264_v40  ;;  %269 = vst [vmem:[%s1459_s2 + $0xd0] sm:$0xff] %v265_v42  ;;  %v499_v53 = vadd.f32 1e-08, %v498_v56  ;;  %v1517_v15 = vld [vmem:[#allocation15_spill] sm:$0xff]  ;;  %v1518_v42 = vld [vmem:[#allocation16_spill] sm:$0xff] }
  0xd5   :  { %v626_v43 = vpop.eup %625  ;;  %270 = vst [vmem:[%s1459_s2 + $0xd8] sm:$0xff] %v266_v12  ;;  %369 = vst [vmem:[%s1459_s2 + $0x120] sm:$0xff] %v365_v6  ;;  %v1519_v6 = vld [vmem:[#allocation17_spill] sm:$0xff] }
  0xd6   :  { %v628_v57 = vpop.eup %627  ;;  %370 = vst [vmem:[%s1459_s2 + $0x128] sm:$0xff] %v366_v37  ;;  %371 = vst [vmem:[%s1459_s2 + $0x130] sm:$0xff] %v367_v50  ;;  %v331_v2 = vmul.f32 %v626_v43, %v1504_v1  ;;  %v332_v18 = vmul.f32 %v626_v43, %v1505_v17  ;;  %v333_v35 = vmul.f32 %v626_v43, %v1506_v34  ;;  %637 = vrcp.f32 %v499_v53  ;;  %v1525_v53 = vld [vmem:[#allocation23_spill] sm:$0xff] }
  0xd7   :  { %372 = vst [vmem:[%s1459_s2 + $0x138] sm:$0xff] %v368_v63  ;;  %v334_v44 = vmul.f32 %v626_v43, %v1507_v9  ;;  %v630_v52 = vpop.eup %629  ;;  %v459_v31 = vmul.f32 %v628_v57, %v1229_v19  ;;  %v1520_v43 = vld [vmem:[#allocation18_spill] sm:$0xff]  ;;  %v1521_v57 = vld [vmem:[#allocation19_spill] sm:$0xff] }
  0xd8   :  { %v632_v16 = vpop.eup %631  ;;  %335 = vst [vmem:[%s1459_s2 + $0x100] sm:$0xff] %v331_v2  ;;  %336 = vst [vmem:[%s1459_s2 + $0x108] sm:$0xff] %v332_v18  ;;  %v433_v10 = vmul.f32 %v630_v52, %v1508_v60  ;;  %v434_v13 = vmul.f32 %v630_v52, %v1509_v32  ;;  %v435_v21 = vmul.f32 %v630_v52, %v1510_v20  ;;  %v1522_v2 = vld [vmem:[#allocation20_spill] sm:$0xff] }
  0xd9   :  { %337 = vst [vmem:[%s1459_s2 + $0x110] sm:$0xff] %v333_v35  ;;  %338 = vst [vmem:[%s1459_s2 + $0x118] sm:$0xff] %v334_v44  ;;  %v436_v0 = vmul.f32 %v630_v52, %v1511_v22  ;;  %v461_v3 = vsel %vm460_vm10, %v1229_v19, %v459_v31  ;;  %v561_v4 = vmul.f32 %v632_v16, %v1252_v26  ;;  %v634_v5 = vpop.eup %633 }
  0xda   :  { %437 = vst [vmem:[%s1459_s2 + $0x160] sm:$0xff] %v433_v10  ;;  %438 = vst [vmem:[%s1459_s2 + $0x168] sm:$0xff] %v434_v13  ;;  %v464_v19 = vsel %vm462_vm11, %v463_v48, %v461_v3  ;;  %v527_v24 = vmul.f32 %v634_v5, %v1271_v29  ;;  %v636_v25 = vpop.eup %635 }
  0xdb   :  { %439 = vst [vmem:[%s1459_s2 + $0x170] sm:$0xff] %v435_v21  ;;  %440 = vst [vmem:[%s1459_s2 + $0x178] sm:$0xff] %v436_v0  ;;  %v465_v51 = vadd.f32 1e-08, %v464_v19  ;;  %v563_v23 = vsel %vm562_vm12, %v1252_v26, %v561_v4  ;;  %v399_v11 = vmul.f32 %v636_v25, %v1512_v30  ;;  %v400_v41 = vmul.f32 %v636_v25, %v1513_v14 }
  0xdc   :  { %v566_v7 = vsel %vm564_vm13, %v565_v62, %v563_v23  ;;  %v401_v28 = vmul.f32 %v636_v25, %v1514_v58  ;;  %v402_v38 = vmul.f32 %v636_v25, %v1515_v54  ;;  %v529_v26 = vsel %vm528_vm14, %v1271_v29, %v527_v24 }
  0xdd   :  { %639 = vrcp.f32 %v465_v51  ;;  %v567_v39 = vadd.f32 1e-08, %v566_v7  ;;  %403 = vst [vmem:[%s1459_s2 + $0x140] sm:$0xff] %v399_v11  ;;  %404 = vst [vmem:[%s1459_s2 + $0x148] sm:$0xff] %v400_v41  ;;  %v532_v36 = vsel %vm530_vm15, %v531_v8, %v529_v26 }
  0xde   :  { %405 = vst [vmem:[%s1459_s2 + $0x150] sm:$0xff] %v401_v28  ;;  %406 = vst [vmem:[%s1459_s2 + $0x158] sm:$0xff] %v402_v38  ;;  %v533_v45 = vadd.f32 1e-08, %v532_v36 }
  0xdf   :  { %641 = vrcp.f32 %v567_v39 }
  0xe0   :  { %643 = vrcp.f32 %v533_v45  ;;  %v638_v29 = vpop.eup %637 }
  0xe1   :  { %v501_v49 = vmul.f32 %v638_v29, %v1516_v46  ;;  %v502_v40 = vmul.f32 %v638_v29, %v1517_v15  ;;  %v503_v12 = vmul.f32 %v638_v29, %v1518_v42  ;;  %v504_v37 = vmul.f32 %v638_v29, %v1519_v6 }
  0xe3   :  { %505 = vst [vmem:[%s1459_s2 + $0x1a0] sm:$0xff] %v501_v49  ;;  %506 = vst [vmem:[%s1459_s2 + $0x1a8] sm:$0xff] %v502_v40 }
  0xe4   :  { %507 = vst [vmem:[%s1459_s2 + $0x1b0] sm:$0xff] %v503_v12  ;;  %508 = vst [vmem:[%s1459_s2 + $0x1b8] sm:$0xff] %v504_v37 }
  0xe7   :  { %v640_v50 = vpop.eup %639 }
  0xe8   :  { %v467_v63 = vmul.f32 %v640_v50, %v1018_v47  ;;  %v468_v56 = vmul.f32 %v640_v50, %v1520_v43  ;;  %v469_v1 = vmul.f32 %v640_v50, %v1521_v57  ;;  %v470_v17 = vmul.f32 %v640_v50, %v1522_v2 }
  0xe9   :  { %v642_v18 = vpop.eup %641 }
  0xea   :  { %471 = vst [vmem:[%s1459_s2 + $0x180] sm:$0xff] %v467_v63  ;;  %472 = vst [vmem:[%s1459_s2 + $0x188] sm:$0xff] %v468_v56  ;;  %v569_v47 = vmul.f32 %v642_v18, %v1050_v55  ;;  %v570_v34 = vmul.f32 %v642_v18, %v1057_v61  ;;  %v571_v35 = vmul.f32 %v642_v18, %v1060_v27  ;;  %v644_v44 = vpop.eup %643  ;;  %v1523_v55 = vld [vmem:[#allocation21_spill] sm:$0xff] }
  0xeb   :  { %473 = vst [vmem:[%s1459_s2 + $0x190] sm:$0xff] %v469_v1  ;;  %474 = vst [vmem:[%s1459_s2 + $0x198] sm:$0xff] %v470_v17  ;;  %v572_v9 = vmul.f32 %v642_v18, %v1063_v33  ;;  %v535_v61 = vmul.f32 %v644_v44, %v1070_v59  ;;  %v536_v27 = vmul.f32 %v644_v44, %v1523_v55  ;;  %v1524_v33 = vld [vmem:[#allocation22_spill] sm:$0xff] }
  0xec   :  { %573 = vst [vmem:[%s1459_s2 + $0x1e0] sm:$0xff] %v569_v47  ;;  %574 = vst [vmem:[%s1459_s2 + $0x1e8] sm:$0xff] %v570_v34  ;;  %v537_v52 = vmul.f32 %v644_v44, %v1524_v33  ;;  %v538_v31 = vmul.f32 %v644_v44, %v1525_v53 }
  0xed   :  { %575 = vst [vmem:[%s1459_s2 + $0x1f0] sm:$0xff] %v571_v35  ;;  %576 = vst [vmem:[%s1459_s2 + $0x1f8] sm:$0xff] %v572_v9 }
  0xee   :  { %539 = vst [vmem:[%s1459_s2 + $0x1c0] sm:$0xff] %v535_v61  ;;  %540 = vst [vmem:[%s1459_s2 + $0x1c8] sm:$0xff] %v536_v27 }
  0xef   :  { %541 = vst [vmem:[%s1459_s2 + $0x1d0] sm:$0xff] %v537_v52  ;;  %542 = vst [vmem:[%s1459_s2 + $0x1d8] sm:$0xff] %v538_v31 }

// kernel: reverse.7
= control target key start
LH: loop header
LB: loop body
LE: loop exit
PB: predicated region body
PF: predicated region fallthrough
CT: control target
= control target key end

     0   :  { %v2_v0 = vlaneseq  ;;  %s608_s0 = inlined_call_operand.vmem [shape: f32[8,16,256], index: 0, kind: input, shape index: {}]   ;;  %s609_s1 = inlined_call_operand.vmem [shape: f32[8,16,256], index: 1, kind: output, shape index: {}]  }
   0x2   :  { %v526_v1 = vsub.s32 127, %v2_v0 }
   0x4   :  { %4 = vset.pattern.permute.xlu0 %v526_v1 }
   0x5   :  { %s529_s6 = smov 0   ;;  %s531_s7 = smov 0  }
   0x6   :  { %s533_s8 = smov 0  }
   0x7 LB: > { %s425_s9 = sadd.s32 4294967295, %s514_s8   ;;  %s22_s10 = sadd.s32 1, %s510_s7  ;;  %s514_s8 = sphi %s533_s8, %s10_s8   ;;  %s510_s7 = sphi %s531_s7, %s611_s7   ;;  %s506_s6 = sphi %s529_s6, %s610_s6  }
   0x8   : > { %p23_p0 = scmp.ge.s32.totalorder %s22_s10, 2  ;;  %p427_p1 = scmp.ge.s32.totalorder %s514_s8, 2 }
   0x9   : > { %s45_s11 = sand.u32 (!%p427_p1), 1, %s514_s8   ;;  %s48_s12 = ssub.s32 (!%p427_p1), 1, %s510_s7 }
   0xa   : > { %s613_s10 = smov (%p23_p0, %s22_s10), 0  ;;  %43 = sbr.rel (%p427_p1) target bundleno = 22 (0x16), region = 16 }
   0xb   : > { %s428_s13 = sshll.u32 (!%p427_p1), %s45_s11, 7  ;;  %s429_s14 = sshll.u32 (!%p427_p1), %s48_s12, 3 }
   0xc   : > { %s554_s17 = scalar_lea.vmem (!%p427_p1), %s608_s0, %s429_s14  ;;  %s47_s18 = scalar_lea.vmem (!%p427_p1), [#allocation0], %s428_s13 }
   0xd   : > { %v113_v2 = vld [vmem:[%s554_s17] sm:$0xff] (!%p427_p1)  ;;  %v115_v3 = vld [vmem:[%s554_s17 + $0x10] sm:$0xff] (!%p427_p1) }
   0xe   : > { %v117_v4 = vld [vmem:[%s554_s17 + $0x20] sm:$0xff] (!%p427_p1)  ;;  %114 = vst [vmem:[%s47_s18] sm:$0xff] (!%p427_p1), %v113_v2  ;;  %116 = vst [vmem:[%s47_s18 + $0x8] sm:$0xff] (!%p427_p1), %v115_v3  ;;  %v119_v5 = vld [vmem:[%s554_s17 + $0x30] sm:$0xff] (!%p427_p1) }
   0xf   : > { %118 = vst [vmem:[%s47_s18 + $0x10] sm:$0xff] (!%p427_p1), %v117_v4  ;;  %v121_v6 = vld [vmem:[%s554_s17 + $0x40] sm:$0xff] (!%p427_p1)  ;;  %v123_v7 = vld [vmem:[%s554_s17 + $0x50] sm:$0xff] (!%p427_p1)  ;;  %120 = vst [vmem:[%s47_s18 + $0x18] sm:$0xff] (!%p427_p1), %v119_v5 }
  0x10   : > { %122 = vst [vmem:[%s47_s18 + $0x20] sm:$0xff] (!%p427_p1), %v121_v6  ;;  %124 = vst [vmem:[%s47_s18 + $0x28] sm:$0xff] (!%p427_p1), %v123_v7  ;;  %v125_v8 = vld [vmem:[%s554_s17 + $0x60] sm:$0xff] (!%p427_p1)  ;;  %v127_v9 = vld [vmem:[%s554_s17 + $0x70] sm:$0xff] (!%p427_p1) }
  0x11   : > { %v129_v10 = vld [vmem:[%s554_s17 + $0x80] sm:$0xff]  ;;  %126 = vst [vmem:[%s47_s18 + $0x30] sm:$0xff] %v125_v8  ;;  %128 = vst [vmem:[%s47_s18 + $0x38] sm:$0xff] %v127_v9  ;;  %v131_v11 = vld [vmem:[%s554_s17 + $0x90] sm:$0xff] }
  0x12   : > { %130 = vst [vmem:[%s47_s18 + $0x40] sm:$0xff] %v129_v10  ;;  %v133_v12 = vld [vmem:[%s554_s17 + $0xa0] sm:$0xff]  ;;  %v135_v13 = vld [vmem:[%s554_s17 + $0xb0] sm:$0xff]  ;;  %132 = vst [vmem:[%s47_s18 + $0x48] sm:$0xff] %v131_v11 }
  0x13   : > { %134 = vst [vmem:[%s47_s18 + $0x50] sm:$0xff] %v133_v12  ;;  %136 = vst [vmem:[%s47_s18 + $0x58] sm:$0xff] %v135_v13  ;;  %v137_v14 = vld [vmem:[%s554_s17 + $0xc0] sm:$0xff]  ;;  %v139_v15 = vld [vmem:[%s554_s17 + $0xd0] sm:$0xff] }
  0x14   : > { %v141_v16 = vld [vmem:[%s554_s17 + $0xe0] sm:$0xff]  ;;  %138 = vst [vmem:[%s47_s18 + $0x60] sm:$0xff] %v137_v14  ;;  %140 = vst [vmem:[%s47_s18 + $0x68] sm:$0xff] %v139_v15  ;;  %v143_v17 = vld [vmem:[%s554_s17 + $0xf0] sm:$0xff] }
  0x15   : > { %142 = vst [vmem:[%s47_s18 + $0x70] sm:$0xff] %v141_v16  ;;  %144 = vst [vmem:[%s47_s18 + $0x78] sm:$0xff] %v143_v17 }
  0x16 PF: > { %p430_p2 = scmp.ge.s32.totalorder %s514_s8, 1  ;;  %p149_p3 = scmp.lt.s32.totalorder %s514_s8, 3 }
  0x18   : > { %p150_p4 = pnand %p430_p2, %p149_p3 }
  0x19   : > { %491 = vset.pattern.permute.xlu1 (!%p150_p4), %v526_v1  ;;  %s156_s19 = sand.u32 (!%p150_p4), 1, %s425_s9   ;;  %s464_s22 = sshll.u32 (!%p150_p4), %s506_s6, 3 }
  0x1a   : > { %153 = sbr.rel (%p150_p4) target bundleno = 186 (0xba), region = 54  ;;  %s431_s20 = sshll.u32 (!%p150_p4), %s156_s19, 7 }
  0x1b   : > { %s158_s21 = scalar_lea.vmem (!%p150_p4), [#allocation0], %s431_s20  ;;  %s581_s25 = scalar_lea.vmem (!%p150_p4), %s609_s1, %s464_s22 }
  0x1c   : > { %v435_v18 = vld [vmem:[%s158_s21 + $0x10] sm:$0xff] (!%p150_p4)  ;;  %v170_v19 = vld [vmem:[%s158_s21] sm:$0xff] (!%p150_p4)  ;;  %v437_v20 = vld [vmem:[%s158_s21 + $0x18] sm:$0xff] (!%p150_p4) }
  0x1d   : > { %183 = vperm.xlu1 (!%p150_p4), %491, %v435_v18   ;;  %171 = vperm.xlu0 (!%p150_p4), %4, %v170_v19   ;;  %v433_v21 = vld [vmem:[%s158_s21 + $0x8] sm:$0xff] (!%p150_p4)  ;;  %v439_v23 = vld [vmem:[%s158_s21 + $0x20] sm:$0xff] (!%p150_p4)  ;;  %v445_v24 = vld [vmem:[%s158_s21 + $0x38] sm:$0xff] (!%p150_p4) }
  0x1e   : > { %v441_v22 = vld [vmem:[%s158_s21 + $0x28] sm:$0xff] (!%p150_p4)  ;;  %v443_v25 = vld [vmem:[%s158_s21 + $0x30] sm:$0xff] (!%p150_p4)  ;;  %v447_v27 = vld [vmem:[%s158_s21 + $0x40] sm:$0xff] (!%p150_p4) }
  0x1f   : > { %v449_v26 = vld [vmem:[%s158_s21 + $0x48] sm:$0xff] (!%p150_p4)  ;;  %v453_v28 = vld [vmem:[%s158_s21 + $0x58] sm:$0xff] (!%p150_p4)  ;;  %v451_v29 = vld [vmem:[%s158_s21 + $0x50] sm:$0xff] (!%p150_p4) }
  0x20   : > { %v457_v30 = vld [vmem:[%s158_s21 + $0x68] sm:$0xff] (!%p150_p4)  ;;  %v455_v31 = vld [vmem:[%s158_s21 + $0x60] sm:$0xff] (!%p150_p4)  ;;  %v461_v32 = vld [vmem:[%s158_s21 + $0x78] sm:$0xff] (!%p150_p4) }
  0x21   : > { %189 = vperm.xlu1 %491, %v437_v20   ;;  %177 = vperm.xlu0 %4, %v433_v21   ;;  %v459_v33 = vld [vmem:[%s158_s21 + $0x70] sm:$0xff] }
  0x25   : > { %201 = vperm.xlu1 %491, %v441_v22   ;;  %195 = vperm.xlu0 %4, %v439_v23  }
  0x29   : > { %213 = vperm.xlu1 %491, %v445_v24   ;;  %207 = vperm.xlu0 %4, %v443_v25  }
  0x2d   : > { %225 = vperm.xlu1 %491, %v449_v26   ;;  %219 = vperm.xlu0 %4, %v447_v27  }
  0x31   : > { %237 = vperm.xlu1 %491, %v453_v28   ;;  %231 = vperm.xlu0 %4, %v451_v29  }
  0x35   : > { %249 = vperm.xlu1 %491, %v457_v30   ;;  %243 = vperm.xlu0 %4, %v455_v31  }
  0x39   : > { %261 = vperm.xlu1 %491, %v461_v32   ;;  %255 = vperm.xlu0 %4, %v459_v33  }
  0x9c   : > { %v184_v34 = vpop.permute.xlu1 %183  ;;  %v172_v35 = vpop.permute.xlu0 %171 }
  0x9d   : > { %337 = vst [vmem:[%s581_s25 + $0x20] sm:$0xff] %v184_v34  ;;  %333 = vst [vmem:[%s581_s25] sm:$0xff] %v172_v35 }
  0xa0   : > { %v190_v36 = vpop.permute.xlu1 %189  ;;  %v178_v37 = vpop.permute.xlu0 %177 }
  0xa1   : > { %339 = vst [vmem:[%s581_s25 + $0x30] sm:$0xff] %v190_v36  ;;  %335 = vst [vmem:[%s581_s25 + $0x10] sm:$0xff] %v178_v37 }
  0xa4   : > { %v202_v38 = vpop.permute.xlu1 %201  ;;  %v196_v39 = vpop.permute.xlu0 %195 }
  0xa5   : > { %343 = vst [vmem:[%s581_s25 + $0x50] sm:$0xff] %v202_v38  ;;  %341 = vst [vmem:[%s581_s25 + $0x40] sm:$0xff] %v196_v39 }
  0xa8   : > { %v214_v40 = vpop.permute.xlu1 %213  ;;  %v208_v41 = vpop.permute.xlu0 %207 }
  0xa9   : > { %347 = vst [vmem:[%s581_s25 + $0x70] sm:$0xff] %v214_v40  ;;  %345 = vst [vmem:[%s581_s25 + $0x60] sm:$0xff] %v208_v41 }
  0xac   : > { %v226_v42 = vpop.permute.xlu1 %225  ;;  %v220_v43 = vpop.permute.xlu0 %219 }
  0xad   : > { %351 = vst [vmem:[%s581_s25 + $0x90] sm:$0xff] %v226_v42  ;;  %349 = vst [vmem:[%s581_s25 + $0x80] sm:$0xff] %v220_v43 }
  0xb0   : > { %v238_v44 = vpop.permute.xlu1 %237  ;;  %v232_v45 = vpop.permute.xlu0 %231 }
  0xb1   : > { %355 = vst [vmem:[%s581_s25 + $0xb0] sm:$0xff] %v238_v44  ;;  %353 = vst [vmem:[%s581_s25 + $0xa0] sm:$0xff] %v232_v45 }
  0xb4   : > { %v250_v46 = vpop.permute.xlu1 %249  ;;  %v244_v47 = vpop.permute.xlu0 %243 }
  0xb5   : > { %359 = vst [vmem:[%s581_s25 + $0xd0] sm:$0xff] %v250_v46  ;;  %357 = vst [vmem:[%s581_s25 + $0xc0] sm:$0xff] %v244_v47 }
  0xb8   : > { %v262_v48 = vpop.permute.xlu1 %261  ;;  %v256_v49 = vpop.permute.xlu0 %255 }
  0xb9   : > { %363 = vst [vmem:[%s581_s25 + $0xf0] sm:$0xff] %v262_v48  ;;  %361 = vst [vmem:[%s581_s25 + $0xe0] sm:$0xff] %v256_v49 }
  0xba PF: > { %s10_s8 = sadd.s32 1, %s514_s8   ;;  %s610_s6 = smov %s510_s7 }
  0xbb   : > { %p7_p5 = scmp.ge.s32.totalorder %s10_s8, 4   ;;  %s611_s7 = smov %s613_s10 }
  0xbd   :  { %9 = sbr.rel (!%p7_p5) target bundleno = 7 (0x7), region = 148 }

// kernel: _lambda_.7
= control target key start
LH: loop header
LB: loop body
LE: loop exit
PB: predicated region body
PF: predicated region fallthrough
CT: control target
= control target key end

     0   :  { %v338_v3 = vmov 0   ;;  %s914_s0 = inlined_call_operand.vmem [shape: f32[8,4096], index: 0, kind: input, shape index: {}]   ;;  %s915_s3 = inlined_call_operand.vmem [shape: f32[8,128], index: 3, kind: input, shape index: {}]   ;;  %s916_s2 = inlined_call_operand.vmem [shape: f32[8,128], index: 2, kind: input, shape index: {}]   ;;  %s917_s1 = inlined_call_operand.vmem [shape: f32[8,4096], index: 1, kind: input, shape index: {}]   ;;  %s918_s4 = inlined_call_operand.vmem [shape: f32[8,4096], index: 4, kind: output, shape index: {}]  }
   0x1   :  { %v367_v0 = vld [vmem:[%s914_s0] sm:$0xff]  ;;  %v372_v1 = vld [vmem:[%s914_s0 + $0x8] sm:$0xff]  ;;  %v377_v2 = vld [vmem:[%s914_s0 + $0x10] sm:$0xff]  ;;  %333 = vset.pattern.permute.xlu1 %v338_v3  ;;  %332 = vset.pattern.permute.xlu0 %v338_v3 }
   0x2   :  { %v382_v4 = vld [vmem:[%s914_s0 + $0x18] sm:$0xff]  ;;  %v49_v5 = vmul.f32 %v367_v0, %v367_v0  ;;  %v50_v6 = vmul.f32 %v372_v1, %v372_v1  ;;  %v51_v7 = vmul.f32 %v377_v2, %v377_v2  ;;  %v393_v8 = vld [vmem:[%s914_s0 + $0x20] sm:$0xff]  ;;  %v400_v11 = vld [vmem:[%s914_s0 + $0x28] sm:$0xff] }
   0x3   :  { %v52_v9 = vmul.f32 %v382_v4, %v382_v4  ;;  %v53_v12 = vmul.f32 %v393_v8, %v393_v8  ;;  %v407_v14 = vld [vmem:[%s914_s0 + $0x30] sm:$0xff]  ;;  %v54_v15 = vmul.f32 %v400_v11, %v400_v11  ;;  %v414_v17 = vld [vmem:[%s914_s0 + $0x38] sm:$0xff]  ;;  %v421_v20 = vld [vmem:[%s914_s0 + $0x40] sm:$0xff] }
   0x4   :  { %v81_v10 = vadd.f32 %v50_v6, %v49_v5  ;;  %v55_v18 = vmul.f32 %v407_v14, %v407_v14  ;;  %v156_v21 = vld [vmem:[%s915_s3] sm:$0xff]  ;;  %v56_v22 = vmul.f32 %v414_v17, %v414_v17  ;;  %v431_v24 = vld [vmem:[%s914_s0 + $0x48] sm:$0xff]  ;;  %v57_v25 = vmul.f32 %v421_v20, %v421_v20  ;;  %v438_v27 = vld [vmem:[%s914_s0 + $0x50] sm:$0xff] }
   0x5   :  { %228 = vperm.xlu1 %333, %v156_v21   ;;  %v58_v28 = vmul.f32 %v431_v24, %v431_v24  ;;  %v445_v30 = vld [vmem:[%s914_s0 + $0x58] sm:$0xff]  ;;  %v59_v31 = vmul.f32 %v438_v27, %v438_v27  ;;  %v452_v33 = vld [vmem:[%s914_s0 + $0x60] sm:$0xff]  ;;  %v459_v36 = vld [vmem:[%s914_s0 + $0x68] sm:$0xff] }
   0x6   :  { %v82_v13 = vadd.f32 %v81_v10, %v51_v7  ;;  %v60_v34 = vmul.f32 %v445_v30, %v445_v30  ;;  %v61_v37 = vmul.f32 %v452_v33, %v452_v33  ;;  %v466_v39 = vld [vmem:[%s914_s0 + $0x70] sm:$0xff]  ;;  %v62_v40 = vmul.f32 %v459_v36, %v459_v36  ;;  %v473_v42 = vld [vmem:[%s914_s0 + $0x78] sm:$0xff]  ;;  %v480_v45 = vld [vmem:[%s914_s0 + $0x80] sm:$0xff] }
   0x7   :  { %v63_v43 = vmul.f32 %v466_v39, %v466_v39  ;;  %v64_v46 = vmul.f32 %v473_v42, %v473_v42  ;;  %v487_v48 = vld [vmem:[%s914_s0 + $0x88] sm:$0xff]  ;;  %v65_v49 = vmul.f32 %v480_v45, %v480_v45  ;;  %v494_v51 = vld [vmem:[%s914_s0 + $0x90] sm:$0xff]  ;;  %v501_v54 = vld [vmem:[%s914_s0 + $0x98] sm:$0xff] }
   0x8   :  { %v83_v16 = vadd.f32 %v82_v13, %v52_v9  ;;  %v66_v52 = vmul.f32 %v487_v48, %v487_v48  ;;  %v67_v55 = vmul.f32 %v494_v51, %v494_v51  ;;  %v508_v57 = vld [vmem:[%s914_s0 + $0xa0] sm:$0xff]  ;;  %v68_v58 = vmul.f32 %v501_v54, %v501_v54  ;;  %v515_v60 = vld [vmem:[%s914_s0 + $0xa8] sm:$0xff]  ;;  %v522_v63 = vld [vmem:[%s914_s0 + $0xb0] sm:$0xff] }
   0x9   :  { %v69_v61 = vmul.f32 %v508_v57, %v508_v57  ;;  %v70_v3 = vmul.f32 %v515_v60, %v515_v60  ;;  %v529_v6 = vld [vmem:[%s914_s0 + $0xb8] sm:$0xff]  ;;  %v71_v7 = vmul.f32 %v522_v63, %v522_v63  ;;  %v536_v10 = vld [vmem:[%s914_s0 + $0xc0] sm:$0xff] }
   0xa   :  { %v84_v19 = vadd.f32 %v83_v16, %v53_v12  ;;  %v72_v12 = vmul.f32 %v529_v6, %v529_v6  ;;  %v73_v16 = vmul.f32 %v536_v10, %v536_v10 }
   0xc   :  { %v85_v23 = vadd.f32 %v84_v19, %v54_v15  ;;  %v543_v15 = vld [vmem:[%s914_s0 + $0xc8] sm:$0xff]  ;;  %v550_v19 = vld [vmem:[%s914_s0 + $0xd0] sm:$0xff] }
   0xd   :  { %v74_v21 = vmul.f32 %v543_v15, %v543_v15 }
   0xe   :  { %v86_v26 = vadd.f32 %v85_v23, %v55_v18  ;;  %v557_v23 = vld [vmem:[%s914_s0 + $0xd8] sm:$0xff] }
  0x10   :  { %v87_v29 = vadd.f32 %v86_v26, %v56_v22 }
  0x12   :  { %v88_v32 = vadd.f32 %v87_v29, %v57_v25  ;;  %v75_v25 = vmul.f32 %v550_v19, %v550_v19  ;;  %v76_v29 = vmul.f32 %v557_v23, %v557_v23 }
  0x14   :  { %v89_v35 = vadd.f32 %v88_v32, %v58_v28  ;;  %v564_v28 = vld [vmem:[%s914_s0 + $0xe0] sm:$0xff]  ;;  %v571_v32 = vld [vmem:[%s914_s0 + $0xe8] sm:$0xff] }
  0x16   :  { %v90_v38 = vadd.f32 %v89_v35, %v59_v31 }
  0x18   :  { %v91_v41 = vadd.f32 %v90_v38, %v60_v34  ;;  %v77_v34 = vmul.f32 %v564_v28, %v564_v28  ;;  %v78_v38 = vmul.f32 %v571_v32, %v571_v32 }
  0x1a   :  { %v92_v44 = vadd.f32 %v91_v41, %v61_v37  ;;  %v578_v37 = vld [vmem:[%s914_s0 + $0xf0] sm:$0xff]  ;;  %v585_v41 = vld [vmem:[%s914_s0 + $0xf8] sm:$0xff] }
  0x1c   :  { %v93_v47 = vadd.f32 %v92_v44, %v62_v40 }
  0x1e   :  { %v94_v50 = vadd.f32 %v93_v47, %v63_v43  ;;  %v79_v43 = vmul.f32 %v578_v37, %v578_v37 }
  0x20   :  { %v95_v53 = vadd.f32 %v94_v50, %v64_v46  ;;  %v80_v46 = vmul.f32 %v585_v41, %v585_v41 }
  0x22   :  { %v96_v56 = vadd.f32 %v95_v53, %v65_v49 }
  0x24   :  { %v97_v59 = vadd.f32 %v96_v56, %v66_v52  ;;  %v155_v52 = vld [vmem:[%s916_s2] sm:$0xff] }
  0x26   :  { %v98_v62 = vadd.f32 %v97_v59, %v67_v55 }
  0x28   :  { %v99_v5 = vadd.f32 %v98_v62, %v68_v58 }
  0x2a   :  { %v100_v9 = vadd.f32 %v99_v5, %v69_v61  ;;  %v195_v5 = vld [vmem:[%s917_s1 + $0x8] sm:$0xff] }
  0x2c   :  { %v101_v13 = vadd.f32 %v100_v9, %v70_v3  ;;  %v194_v3 = vld [vmem:[%s917_s1] sm:$0xff]  ;;  %v197_v9 = vld [vmem:[%s917_s1 + $0x18] sm:$0xff] }
  0x2e   :  { %v102_v18 = vadd.f32 %v101_v13, %v71_v7  ;;  %v196_v7 = vld [vmem:[%s917_s1 + $0x10] sm:$0xff]  ;;  %v199_v13 = vld [vmem:[%s917_s1 + $0x28] sm:$0xff] }
  0x30   :  { %v103_v22 = vadd.f32 %v102_v18, %v72_v12  ;;  %v198_v12 = vld [vmem:[%s917_s1 + $0x20] sm:$0xff]  ;;  %v201_v18 = vld [vmem:[%s917_s1 + $0x38] sm:$0xff] }
  0x32   :  { %v104_v26 = vadd.f32 %v103_v22, %v73_v16  ;;  %v200_v16 = vld [vmem:[%s917_s1 + $0x30] sm:$0xff]  ;;  %v202_v22 = vld [vmem:[%s917_s1 + $0x40] sm:$0xff] }
  0x34   :  { %v105_v31 = vadd.f32 %v104_v26, %v74_v21  ;;  %v204_v26 = vld [vmem:[%s917_s1 + $0x50] sm:$0xff] }
  0x36   :  { %v106_v35 = vadd.f32 %v105_v31, %v75_v25  ;;  %v203_v25 = vld [vmem:[%s917_s1 + $0x48] sm:$0xff]  ;;  %v206_v31 = vld [vmem:[%s917_s1 + $0x60] sm:$0xff] }
  0x38   :  { %v107_v40 = vadd.f32 %v106_v35, %v76_v29  ;;  %v205_v29 = vld [vmem:[%s917_s1 + $0x58] sm:$0xff]  ;;  %v208_v35 = vld [vmem:[%s917_s1 + $0x70] sm:$0xff] }
  0x3a   :  { %v108_v44 = vadd.f32 %v107_v40, %v77_v34  ;;  %v207_v34 = vld [vmem:[%s917_s1 + $0x68] sm:$0xff]  ;;  %v210_v40 = vld [vmem:[%s917_s1 + $0x80] sm:$0xff] }
  0x3c   :  { %v109_v47 = vadd.f32 %v108_v44, %v78_v38  ;;  %v209_v38 = vld [vmem:[%s917_s1 + $0x78] sm:$0xff]  ;;  %v212_v44 = vld [vmem:[%s917_s1 + $0x90] sm:$0xff] }
  0x3e   :  { %v110_v49 = vadd.f32 %v109_v47, %v79_v43  ;;  %v211_v43 = vld [vmem:[%s917_s1 + $0x88] sm:$0xff] }
  0x40   :  { %v111_v50 = vadd.f32 %v110_v49, %v80_v46  ;;  %v213_v46 = vld [vmem:[%s917_s1 + $0x98] sm:$0xff] }
  0x42   :  { %112 = vadd.xlane.f32.xlu0 %v111_v50 }
  0x58   :  { %159 = vperm.xlu0 %332, %v155_v52  }
  0x84   :  { %v229_v21 = vpop.permute.xlu1 %228 }
  0x85   :  { %v654_v47 = vmul.f32 %v229_v21, %v194_v3  ;;  %v656_v49 = vmul.f32 %v229_v21, %v195_v5  ;;  %v658_v50 = vmul.f32 %v229_v21, %v196_v7  ;;  %v660_v52 = vmul.f32 %v229_v21, %v197_v9  ;;  %v217_v3 = vld [vmem:[%s917_s1 + $0xb8] sm:$0xff]  ;;  %v218_v5 = vld [vmem:[%s917_s1 + $0xc0] sm:$0xff]  ;;  %v219_v7 = vld [vmem:[%s917_s1 + $0xc8] sm:$0xff] }
  0x86   :  { %v688_v9 = vmul.f32 %v229_v21, %v202_v22  ;;  %v705_v22 = vmul.f32 %v229_v21, %v206_v31  ;;  %v722_v31 = vmul.f32 %v229_v21, %v210_v40 }
  0x88   :  { %922 = vst [vmem:[#allocation5_spill] sm:$0xff] %v688_v9  ;;  %926 = vst [vmem:[#allocation9_spill] sm:$0xff] %v705_v22  ;;  %v736_v22 = vmul.f32 %v229_v21, %v217_v3  ;;  %v738_v9 = vmul.f32 %v229_v21, %v218_v5 }
  0x8a   :  { %932 = vst [vmem:[#allocation15_spill] sm:$0xff] %v736_v22  ;;  %933 = vst [vmem:[#allocation16_spill] sm:$0xff] %v738_v9 }
  0xcf   :  { %v113_v53 = vpop.xlane.xlu0 %112 }
  0xd0   :  { %334 = vrsqrt.f32 %v113_v53  ;;  %vm116_vm0 = vcmp.eq.f32.partialorder %v113_v53, inf  ;;  %v119_v58 = vand.u32 2147483648, %v113_v53  ;;  %vm118_vm1 = vcmp.eq.f32.partialorder %v113_v53, 0.0 }
  0xda   :  { %v335_v55 = vpop.eup %334 }
  0xdb   :  { %v115_v56 = vmul.f32 %v335_v55, %v113_v53  ;;  %v215_v55 = vld [vmem:[%s917_s1 + $0xa8] sm:$0xff] }
  0xdd   :  { %v117_v59 = vsel %vm116_vm0, %v113_v53, %v115_v56  ;;  %v214_v53 = vld [vmem:[%s917_s1 + $0xa0] sm:$0xff]  ;;  %v216_v56 = vld [vmem:[%s917_s1 + $0xb0] sm:$0xff] }
  0xde   :  { %v120_v61 = vsel %vm118_vm1, %v119_v58, %v117_v59  ;;  %v671_v58 = vmul.f32 %v229_v21, %v198_v12  ;;  %v673_v59 = vmul.f32 %v229_v21, %v199_v13  ;;  %v690_v12 = vmul.f32 %v229_v21, %v203_v25 }
  0xdf   :  { %v121_v62 = vadd.f32 1e-08, %v120_v61  ;;  %v675_v61 = vmul.f32 %v229_v21, %v200_v16  ;;  %v692_v13 = vmul.f32 %v229_v21, %v204_v26  ;;  %v694_v16 = vmul.f32 %v229_v21, %v205_v29 }
  0xe0   :  { %919 = vst [vmem:[#allocation2_spill] sm:$0xff] %v673_v59  ;;  %923 = vst [vmem:[#allocation6_spill] sm:$0xff] %v690_v12  ;;  %v707_v25 = vmul.f32 %v229_v21, %v207_v34  ;;  %v709_v26 = vmul.f32 %v229_v21, %v208_v35  ;;  %v711_v29 = vmul.f32 %v229_v21, %v209_v38  ;;  %v225_v12 = vld [vmem:[%s917_s1 + $0xf8] sm:$0xff] }
  0xe1   :  { %336 = vrcp.f32 %v121_v62  ;;  %920 = vst [vmem:[#allocation3_spill] sm:$0xff] %v675_v61  ;;  %v677_v62 = vmul.f32 %v229_v21, %v201_v18  ;;  %924 = vst [vmem:[#allocation7_spill] sm:$0xff] %v692_v13  ;;  %v220_v18 = vld [vmem:[%s917_s1 + $0xd0] sm:$0xff]  ;;  %v222_v61 = vld [vmem:[%s917_s1 + $0xe0] sm:$0xff]  ;;  %v724_v34 = vmul.f32 %v229_v21, %v211_v43  ;;  %v726_v35 = vmul.f32 %v229_v21, %v212_v44 }
  0xe2   :  { %925 = vst [vmem:[#allocation8_spill] sm:$0xff] %v694_v16  ;;  %927 = vst [vmem:[#allocation10_spill] sm:$0xff] %v707_v25  ;;  %v223_v16 = vld [vmem:[%s917_s1 + $0xe8] sm:$0xff]  ;;  %v224_v13 = vld [vmem:[%s917_s1 + $0xf0] sm:$0xff]  ;;  %v728_v38 = vmul.f32 %v229_v21, %v213_v46  ;;  %v734_v25 = vmul.f32 %v229_v21, %v216_v56  ;;  %v740_v59 = vmul.f32 %v229_v21, %v219_v7 }
  0xe3   :  { %921 = vst [vmem:[#allocation4_spill] sm:$0xff] %v677_v62  ;;  %v221_v62 = vld [vmem:[%s917_s1 + $0xd8] sm:$0xff]  ;;  %928 = vst [vmem:[#allocation11_spill] sm:$0xff] %v709_v26  ;;  %v732_v26 = vmul.f32 %v229_v21, %v215_v55  ;;  %v742_v40 = vmul.f32 %v229_v21, %v220_v18  ;;  %v748_v46 = vmul.f32 %v229_v21, %v223_v16 }
  0xe4   :  { %929 = vst [vmem:[#allocation12_spill] sm:$0xff] %v711_v29  ;;  %930 = vst [vmem:[#allocation13_spill] sm:$0xff] %v726_v35  ;;  %v730_v29 = vmul.f32 %v229_v21, %v214_v53  ;;  %v744_v43 = vmul.f32 %v229_v21, %v221_v62  ;;  %v746_v35 = vmul.f32 %v229_v21, %v222_v61 }
  0xe5   :  { %931 = vst [vmem:[#allocation14_spill] sm:$0xff] %v734_v25  ;;  %934 = vst [vmem:[#allocation17_spill] sm:$0xff] %v740_v59  ;;  %v750_v53 = vmul.f32 %v229_v21, %v224_v13  ;;  %v752_v55 = vmul.f32 %v229_v21, %v225_v12  ;;  %v160_v12 = vpop.permute.xlu0 %159 }
  0xe6   :  { %935 = vst [vmem:[#allocation18_spill] sm:$0xff] %v742_v40  ;;  %936 = vst [vmem:[#allocation19_spill] sm:$0xff] %v744_v43 }
  0xe7   :  { %937 = vst [vmem:[#allocation20_spill] sm:$0xff] %v746_v35  ;;  %938 = vst [vmem:[#allocation21_spill] sm:$0xff] %v748_v46 }
  0xe8   :  { %939 = vst [vmem:[#allocation22_spill] sm:$0xff] %v750_v53  ;;  %940 = vst [vmem:[#allocation23_spill] sm:$0xff] %v752_v55 }
  0xeb   :  { %v337_v44 = vpop.eup %336 }
  0xec   :  { %v123_v56 = vmul.f32 %v337_v44, %v367_v0  ;;  %v124_v3 = vmul.f32 %v337_v44, %v372_v1  ;;  %v125_v5 = vmul.f32 %v337_v44, %v377_v2  ;;  %v126_v7 = vmul.f32 %v337_v44, %v382_v4 }
  0xed   :  { %v127_v62 = vmul.f32 %v337_v44, %v393_v8  ;;  %v128_v18 = vmul.f32 %v337_v44, %v400_v11  ;;  %v129_v61 = vmul.f32 %v337_v44, %v407_v14  ;;  %v130_v16 = vmul.f32 %v337_v44, %v414_v17 }
  0xee   :  { %v131_v13 = vmul.f32 %v337_v44, %v421_v20  ;;  %v132_v21 = vmul.f32 %v337_v44, %v431_v24  ;;  %v133_v0 = vmul.f32 %v337_v44, %v438_v27  ;;  %v134_v1 = vmul.f32 %v337_v44, %v445_v30 }
  0xef   :  { %v135_v2 = vmul.f32 %v337_v44, %v452_v33  ;;  %v136_v4 = vmul.f32 %v337_v44, %v459_v36  ;;  %v137_v8 = vmul.f32 %v337_v44, %v466_v39  ;;  %v138_v11 = vmul.f32 %v337_v44, %v473_v42 }
  0xf0   :  { %v139_v14 = vmul.f32 %v337_v44, %v480_v45  ;;  %v140_v17 = vmul.f32 %v337_v44, %v487_v48  ;;  %v141_v20 = vmul.f32 %v337_v44, %v494_v51  ;;  %v142_v24 = vmul.f32 %v337_v44, %v501_v54 }
  0xf1   :  { %v143_v27 = vmul.f32 %v337_v44, %v508_v57  ;;  %v144_v30 = vmul.f32 %v337_v44, %v515_v60  ;;  %v145_v33 = vmul.f32 %v337_v44, %v522_v63  ;;  %v146_v36 = vmul.f32 %v337_v44, %v529_v6 }
  0xf2   :  { %v147_v39 = vmul.f32 %v337_v44, %v536_v10  ;;  %v148_v42 = vmul.f32 %v337_v44, %v543_v15  ;;  %v149_v45 = vmul.f32 %v337_v44, %v550_v19  ;;  %v150_v48 = vmul.f32 %v337_v44, %v557_v23 }
  0xf3   :  { %v151_v51 = vmul.f32 %v337_v44, %v564_v28  ;;  %v152_v54 = vmul.f32 %v337_v44, %v571_v32  ;;  %v153_v57 = vmul.f32 %v337_v44, %v578_v37  ;;  %v154_v60 = vmul.f32 %v337_v44, %v585_v41 }
  0xf4   :  { %v162_v63 = vmul.f32 %v160_v12, %v123_v56  ;;  %v163_v55 = vmul.f32 %v160_v12, %v124_v3  ;;  %v164_v6 = vmul.f32 %v160_v12, %v125_v5  ;;  %v165_v53 = vmul.f32 %v160_v12, %v126_v7 }
  0xf5   :  { %v166_v46 = vmul.f32 %v160_v12, %v127_v62  ;;  %v167_v10 = vmul.f32 %v160_v12, %v128_v18  ;;  %v168_v35 = vmul.f32 %v160_v12, %v129_v61  ;;  %v169_v15 = vmul.f32 %v160_v12, %v130_v16 }
  0xf6   :  { %v170_v43 = vmul.f32 %v160_v12, %v131_v13  ;;  %v171_v19 = vmul.f32 %v160_v12, %v132_v21  ;;  %v172_v40 = vmul.f32 %v160_v12, %v133_v0  ;;  %v173_v23 = vmul.f32 %v160_v12, %v134_v1 }
  0xf7   :  { %v174_v59 = vmul.f32 %v160_v12, %v135_v2  ;;  %v175_v28 = vmul.f32 %v160_v12, %v136_v4  ;;  %v176_v9 = vmul.f32 %v160_v12, %v137_v8  ;;  %v177_v32 = vmul.f32 %v160_v12, %v138_v11 }
  0xf8   :  { %v178_v22 = vmul.f32 %v160_v12, %v139_v14  ;;  %v179_v37 = vmul.f32 %v160_v12, %v140_v17  ;;  %v180_v25 = vmul.f32 %v160_v12, %v141_v20  ;;  %v181_v41 = vmul.f32 %v160_v12, %v142_v24  ;;  %v941_v14 = vld [vmem:[#allocation2_spill] sm:$0xff]  ;;  %v942_v20 = vld [vmem:[#allocation3_spill] sm:$0xff] }
  0xf9   :  { %v182_v44 = vmul.f32 %v160_v12, %v143_v27  ;;  %v183_v56 = vmul.f32 %v160_v12, %v144_v30  ;;  %v184_v3 = vmul.f32 %v160_v12, %v145_v33  ;;  %v185_v5 = vmul.f32 %v160_v12, %v146_v36  ;;  %v943_v27 = vld [vmem:[#allocation4_spill] sm:$0xff]  ;;  %v944_v33 = vld [vmem:[#allocation5_spill] sm:$0xff] }
  0xfa   :  { %v186_v7 = vmul.f32 %v160_v12, %v147_v39  ;;  %v187_v62 = vmul.f32 %v160_v12, %v148_v42  ;;  %v188_v18 = vmul.f32 %v160_v12, %v149_v45  ;;  %v189_v61 = vmul.f32 %v160_v12, %v150_v48  ;;  %v945_v39 = vld [vmem:[#allocation6_spill] sm:$0xff]  ;;  %v946_v42 = vld [vmem:[#allocation7_spill] sm:$0xff]  ;;  %v947_v45 = vld [vmem:[#allocation8_spill] sm:$0xff] }
  0xfb   :  { %v190_v16 = vmul.f32 %v160_v12, %v151_v51  ;;  %v191_v13 = vmul.f32 %v160_v12, %v152_v54  ;;  %v192_v21 = vmul.f32 %v160_v12, %v153_v57  ;;  %v193_v0 = vmul.f32 %v160_v12, %v154_v60  ;;  %v956_v57 = vld [vmem:[#allocation17_spill] sm:$0xff] }
  0xfc   :  { %v263_v1 = vadd.f32 %v654_v47, %v162_v63  ;;  %v264_v2 = vadd.f32 %v656_v49, %v163_v55  ;;  %v265_v4 = vadd.f32 %v658_v50, %v164_v6  ;;  %v266_v8 = vadd.f32 %v660_v52, %v165_v53  ;;  %v948_v50 = vld [vmem:[#allocation9_spill] sm:$0xff]  ;;  %v957_v63 = vld [vmem:[#allocation18_spill] sm:$0xff] }
  0xfd   :  { %v267_v11 = vadd.f32 %v671_v58, %v166_v46  ;;  %v268_v17 = vadd.f32 %v941_v14, %v167_v10  ;;  %v269_v24 = vadd.f32 %v942_v20, %v168_v35  ;;  %v270_v30 = vadd.f32 %v943_v27, %v169_v15  ;;  %v949_v58 = vld [vmem:[#allocation10_spill] sm:$0xff]  ;;  %v951_v46 = vld [vmem:[#allocation12_spill] sm:$0xff]  ;;  %v952_v55 = vld [vmem:[#allocation13_spill] sm:$0xff] }
  0xfe   :  { %v271_v36 = vadd.f32 %v944_v33, %v170_v43  ;;  %v272_v12 = vadd.f32 %v945_v39, %v171_v19  ;;  %v273_v47 = vadd.f32 %v946_v42, %v172_v40  ;;  %v274_v49 = vadd.f32 %v947_v45, %v173_v23  ;;  %295 = vst [vmem:[%s918_s4] sm:$0xff] %v263_v1  ;;  %v950_v40 = vld [vmem:[#allocation11_spill] sm:$0xff]  ;;  %v959_v19 = vld [vmem:[#allocation20_spill] sm:$0xff] }
  0xff   :  { %296 = vst [vmem:[%s918_s4 + $0x8] sm:$0xff] %v264_v2  ;;  %297 = vst [vmem:[%s918_s4 + $0x10] sm:$0xff] %v265_v4  ;;  %v275_v52 = vadd.f32 %v948_v50, %v174_v59  ;;  %v276_v35 = vadd.f32 %v949_v58, %v175_v28  ;;  %v277_v43 = vadd.f32 %v950_v40, %v176_v9  ;;  %v958_v10 = vld [vmem:[#allocation19_spill] sm:$0xff]  ;;  %v960_v28 = vld [vmem:[#allocation21_spill] sm:$0xff] }
 0x100   :  { %298 = vst [vmem:[%s918_s4 + $0x18] sm:$0xff] %v266_v8  ;;  %v278_v53 = vadd.f32 %v951_v46, %v177_v32  ;;  %299 = vst [vmem:[%s918_s4 + $0x20] sm:$0xff] %v267_v11  ;;  %v279_v59 = vadd.f32 %v722_v31, %v178_v22  ;;  %v280_v9 = vadd.f32 %v724_v34, %v179_v37  ;;  %v953_v31 = vld [vmem:[#allocation14_spill] sm:$0xff] }
 0x101   :  { %300 = vst [vmem:[%s918_s4 + $0x28] sm:$0xff] %v268_v17  ;;  %301 = vst [vmem:[%s918_s4 + $0x30] sm:$0xff] %v269_v24  ;;  %v281_v48 = vadd.f32 %v952_v55, %v180_v25  ;;  %v282_v51 = vadd.f32 %v728_v38, %v181_v41  ;;  %v283_v22 = vadd.f32 %v730_v29, %v182_v44  ;;  %v954_v38 = vld [vmem:[#allocation15_spill] sm:$0xff]  ;;  %v961_v37 = vld [vmem:[#allocation22_spill] sm:$0xff] }
 0x102   :  { %302 = vst [vmem:[%s918_s4 + $0x38] sm:$0xff] %v270_v30  ;;  %303 = vst [vmem:[%s918_s4 + $0x40] sm:$0xff] %v271_v36  ;;  %v284_v25 = vadd.f32 %v732_v26, %v183_v56  ;;  %v285_v34 = vadd.f32 %v953_v31, %v184_v3  ;;  %v286_v54 = vadd.f32 %v954_v38, %v185_v5  ;;  %v955_v26 = vld [vmem:[#allocation16_spill] sm:$0xff]  ;;  %v962_v44 = vld [vmem:[#allocation23_spill] sm:$0xff] }
 0x103   :  { %304 = vst [vmem:[%s918_s4 + $0x48] sm:$0xff] %v272_v12  ;;  %305 = vst [vmem:[%s918_s4 + $0x50] sm:$0xff] %v273_v47  ;;  %v287_v29 = vadd.f32 %v955_v26, %v186_v7  ;;  %v288_v60 = vadd.f32 %v956_v57, %v187_v62  ;;  %v289_v6 = vadd.f32 %v957_v63, %v188_v18 }
 0x104   :  { %306 = vst [vmem:[%s918_s4 + $0x58] sm:$0xff] %v274_v49  ;;  %307 = vst [vmem:[%s918_s4 + $0x60] sm:$0xff] %v275_v52  ;;  %v290_v15 = vadd.f32 %v958_v10, %v189_v61  ;;  %v291_v23 = vadd.f32 %v959_v19, %v190_v16  ;;  %v292_v32 = vadd.f32 %v960_v28, %v191_v13 }
 0x105   :  { %308 = vst [vmem:[%s918_s4 + $0x68] sm:$0xff] %v276_v35  ;;  %309 = vst [vmem:[%s918_s4 + $0x70] sm:$0xff] %v277_v43  ;;  %v293_v41 = vadd.f32 %v961_v37, %v192_v21  ;;  %v294_v56 = vadd.f32 %v962_v44, %v193_v0 }
 0x106   :  { %310 = vst [vmem:[%s918_s4 + $0x78] sm:$0xff] %v278_v53  ;;  %311 = vst [vmem:[%s918_s4 + $0x80] sm:$0xff] %v279_v59 }
 0x107   :  { %312 = vst [vmem:[%s918_s4 + $0x88] sm:$0xff] %v280_v9  ;;  %313 = vst [vmem:[%s918_s4 + $0x90] sm:$0xff] %v281_v48 }
 0x108   :  { %314 = vst [vmem:[%s918_s4 + $0x98] sm:$0xff] %v282_v51  ;;  %315 = vst [vmem:[%s918_s4 + $0xa0] sm:$0xff] %v283_v22 }
 0x109   :  { %316 = vst [vmem:[%s918_s4 + $0xa8] sm:$0xff] %v284_v25  ;;  %317 = vst [vmem:[%s918_s4 + $0xb0] sm:$0xff] %v285_v34 }
 0x10a   :  { %318 = vst [vmem:[%s918_s4 + $0xb8] sm:$0xff] %v286_v54  ;;  %319 = vst [vmem:[%s918_s4 + $0xc0] sm:$0xff] %v287_v29 }
 0x10b   :  { %320 = vst [vmem:[%s918_s4 + $0xc8] sm:$0xff] %v288_v60  ;;  %321 = vst [vmem:[%s918_s4 + $0xd0] sm:$0xff] %v289_v6 }
 0x10c   :  { %322 = vst [vmem:[%s918_s4 + $0xd8] sm:$0xff] %v290_v15  ;;  %323 = vst [vmem:[%s918_s4 + $0xe0] sm:$0xff] %v291_v23 }
 0x10d   :  { %324 = vst [vmem:[%s918_s4 + $0xe8] sm:$0xff] %v292_v32  ;;  %325 = vst [vmem:[%s918_s4 + $0xf0] sm:$0xff] %v293_v41 }
 0x10e   :  { %326 = vst [vmem:[%s918_s4 + $0xf8] sm:$0xff] %v294_v56 }

</bundles_post_ra>
